<compile_context>
chip_gen: v7x
topology: tpu7x:2x2x1
jax: 0.10.0
libtpu: 0.0.40
codegen_flags: <defaults>
</compile_context>

<pallas_src>
import jax
import jax.numpy as jnp
from jax.experimental import pallas as pl
from jax.experimental.pallas import tpu as pltpu


# ----------------------------- kernel ---------------------------------------


def actor_kernel(
    state_ref, aseq_ref,
    w1s_ref, w1a_ref, v1_ref,
    w2_ref, v2_ref,
    w3_ref, v3_ref,
    wr1_ref, vr1_ref,
    wr2_ref, vr2_ref,
    wo_ref, head_ref,
    o_ref,
):
    f32 = jnp.float32
    bf16 = jnp.bfloat16

    def ln_relu(z, vec):
        # z: (tb, D) f32 pre-bias activations; vec: (3, D) = [bias; gamma; beta]
        b = vec[0:1, :]
        g = vec[1:2, :]
        be = vec[2:3, :]
        x = z + b
        inv_n = 1.0 / x.shape[-1]
        s = jnp.sum(x, axis=-1, keepdims=True)
        s2 = jnp.sum(x * x, axis=-1, keepdims=True)
        mean = s * inv_n
        var = s2 * inv_n - mean * mean
        y = (x - mean) * jax.lax.rsqrt(var + 1e-5) * g + be
        return jnp.maximum(y, 0.0)

    # --- base layer 1: split-K matmul (state part + action part) ------------
    aseq = aseq_ref[...]
    z = (jnp.dot(state_ref[...].astype(bf16), w1s_ref[...], preferred_element_type=f32)
         + jnp.dot(aseq.astype(bf16), w1a_ref[...], preferred_element_type=f32))
    h = ln_relu(z, v1_ref[...])

    # --- base layer 2 --------------------------------------------------------
    z = jnp.dot(h.astype(bf16), w2_ref[...], preferred_element_type=f32)
    h = ln_relu(z, v2_ref[...])

    # --- base layer 3 --------------------------------------------------------
    z = jnp.dot(h.astype(bf16), w3_ref[...], preferred_element_type=f32)
    h = ln_relu(z, v3_ref[...])

    # --- res block 1 ---------------------------------------------------------
    res = h
    z = jnp.dot(h.astype(bf16), wr1_ref[...], preferred_element_type=f32)
    h = ln_relu(z, vr1_ref[...]) + res

    # --- res block 2 ---------------------------------------------------------
    res = h
    z = jnp.dot(h.astype(bf16), wr2_ref[...], preferred_element_type=f32)
    h = ln_relu(z, vr2_ref[...]) + res

    # --- output head + perturbation + clamp ----------------------------------
    head = head_ref[...]
    bo = head[0:1, :]          # output bias
    scaled_max = head[1:2, :]  # phi * max_action
    bound = head[2:3, :]       # tile(max_action[:action_dim], horizon)

    z = jnp.dot(h.astype(bf16), wo_ref[...], preferred_element_type=f32) + bo
    a = scaled_max * jnp.tanh(z)
    out = a + aseq
    o_ref[...] = jnp.clip(out, -bound, bound)


# ----------------------------- param preparation ------------------------------


def init_params(key, d_in, action_seq_dim):
    """Raw f32 parameters in PyTorch-equivalent layout (W stored as (in, out))."""
    dims = [(d_in, 1024), (1024, 512), (512, 256), (256, 256), (256, 256),
            (256, action_seq_dim)]
    names = ["1", "2", "3", "r1", "r2", "o"]
    params = {}
    keys = jax.random.split(key, 2 * len(dims))
    for i, ((din, dout), n) in enumerate(zip(dims, names)):
        scale = 1.0 / jnp.sqrt(jnp.float32(din))
        params["w" + n] = jax.random.normal(keys[2 * i], (din, dout), jnp.float32) * scale
        params["b" + n] = jax.random.normal(keys[2 * i + 1], (1, dout), jnp.float32) * scale
        if n != "o":
            params["g" + n] = jnp.ones((1, dout), jnp.float32)
            params["be" + n] = jnp.zeros((1, dout), jnp.float32)
    return params


def prepare_params(raw, max_action, *, phi, horizon, action_dim, state_dim):
    """One-time conversion to kernel-ready format: bf16 weights, packed vectors,
    precomputed phi*max_action and clip bound."""
    bf16 = jnp.bfloat16
    A = horizon * action_dim
    w1 = raw["w1"].astype(bf16)

    def pack_vec(n):
        return jnp.concatenate([raw["b" + n], raw["g" + n], raw["be" + n]], axis=0)

    head = jnp.concatenate(
        [raw["bo"].astype(jnp.float32),
         (phi * max_action).reshape(1, A).astype(jnp.float32),
         jnp.tile(max_action[:action_dim], horizon).reshape(1, A).astype(jnp.float32)],
        axis=0)

    return {
        "w1s": w1[:state_dim, :],
        "w1a": w1[state_dim:, :],
        "w2": raw["w2"].astype(bf16),
        "w3": raw["w3"].astype(bf16),
        "wr1": raw["wr1"].astype(bf16),
        "wr2": raw["wr2"].astype(bf16),
        "wo": raw["wo"].astype(bf16),
        "v1": pack_vec("1"),
        "v2": pack_vec("2"),
        "v3": pack_vec("3"),
        "vr1": pack_vec("r1"),
        "vr2": pack_vec("r2"),
        "head": head,
    }


# ----------------------------- wrapper ---------------------------------------


def actor_forward(state, action_seq_flat, kp, *, horizon, action_dim, block_b=128):
    """Pallas forward pass. Returns (B, horizon, action_dim)."""
    B, A = action_seq_flat.shape
    S = state.shape[1]
    tb = min(B, block_b)
    grid = (pl.cdiv(B, tb),)

    def batch_spec(d):
        return pl.BlockSpec((tb, d), lambda i: (i, 0))

    def const_spec(shape):
        return pl.BlockSpec(shape, lambda i: (0, 0))

    inputs = [
        state, action_seq_flat,
        kp["w1s"], kp["w1a"], kp["v1"],
        kp["w2"], kp["v2"],
        kp["w3"], kp["v3"],
        kp["wr1"], kp["vr1"],
        kp["wr2"], kp["vr2"],
        kp["wo"], kp["head"],
    ]
    in_specs = [batch_spec(S), batch_spec(A)] + [const_spec(x.shape) for x in inputs[2:]]

    H1, H2, H3 = 1024, 512, 256
    flops = 2 * B * (S * H1 + A * H1 + H1 * H2 + H2 * H3 + 2 * H3 * H3 + H3 * A)
    param_bytes = int(sum(int(x.size) * x.dtype.itemsize for x in inputs[2:]))
    io_bytes = int((state.size + action_seq_flat.size) * 4 + B * A * 4)

    out_flat = pl.pallas_call(
        actor_kernel,
        out_shape=jax.ShapeDtypeStruct((B, A), jnp.float32),
        grid=grid,
        in_specs=in_specs,
        out_specs=pl.BlockSpec((tb, A), lambda i: (i, 0)),
        compiler_params=pltpu.CompilerParams(dimension_semantics=("parallel",)),
        cost_estimate=pl.CostEstimate(
            flops=int(flops),
            transcendentals=int(B * A + 5 * B),
            bytes_accessed=param_bytes + io_bytes,
        ),
    )(*inputs)

    return out_flat.reshape(B, horizon, action_dim)


# ----------------------------- reference (pure JAX, bf16-matmul) --------------


def actor_reference(state, action_seq_flat, params, max_action, *, phi, horizon, action_dim):
    bf16 = jnp.bfloat16

    def mm(x, w):
        return jnp.dot(x.astype(bf16), w.astype(bf16), preferred_element_type=jnp.float32)

    def ln(x, g, b, eps=1e-5):
        m = jnp.mean(x, axis=-1, keepdims=True)
        v = jnp.mean((x - m) ** 2, axis=-1, keepdims=True)
        return (x - m) * jax.lax.rsqrt(v + eps) * g + b

    x = jnp.concatenate([state, action_seq_flat], axis=1)
    h = jnp.maximum(ln(mm(x, params["w1"]) + params["b1"], params["g1"], params["be1"]), 0.0)
    h = jnp.maximum(ln(mm(h, params["w2"]) + params["b2"], params["g2"], params["be2"]), 0.0)
    h = jnp.maximum(ln(mm(h, params["w3"]) + params["b3"], params["g3"], params["be3"]), 0.0)
    r = h
    h = jnp.maximum(ln(mm(h, params["wr1"]) + params["br1"], params["gr1"], params["ber1"]), 0.0) + r
    r = h
    h = jnp.maximum(ln(mm(h, params["wr2"]) + params["br2"], params["gr2"], params["ber2"]), 0.0) + r
    a = phi * max_action * jnp.tanh(mm(h, params["wo"]) + params["bo"])
    B = action_seq_flat.shape[0]
    a = a.reshape(B, horizon, action_dim)
    aseq = action_seq_flat.reshape(B, horizon, action_dim)
    bound = max_action[:action_dim]
    return jnp.clip(a + aseq, -bound, bound)


# ----------------------------- setup / main -----------------------------------


if __name__ == "__main__":
    # Small shapes consistent with the module's forward pass.
    B = 8                 # repeat_batch_size
    state_seq_dim = 24
    action_dim = 4
    horizon = 8
    action_seq_dim = horizon * action_dim   # 32
    phi = 0.05

    key = jax.random.PRNGKey(0)
    k_state, k_act, k_par = jax.random.split(key, 3)

    state = jax.random.normal(k_state, (B, state_seq_dim), jnp.float32)
    action_seq_flat = jax.random.normal(k_act, (B, action_seq_dim), jnp.float32) * 0.3
    max_action = jnp.linspace(0.5, 1.5, action_seq_dim, dtype=jnp.float32)

    raw_params = init_params(k_par, state_seq_dim + action_seq_dim, action_seq_dim)
    kparams = prepare_params(
        raw_params, max_action,
        phi=phi, horizon=horizon, action_dim=action_dim, state_dim=state_seq_dim,
    )

    out = actor_forward(
        state, action_seq_flat, kparams,
        horizon=horizon, action_dim=action_dim,
    )
    out = jax.block_until_ready(out)

    ref = actor_reference(
        state, action_seq_flat, raw_params, max_action,
        phi=phi, horizon=horizon, action_dim=action_dim,
    )
    assert out.shape == (B, horizon, action_dim)
    assert jnp.allclose(out, ref, rtol=2e-3, atol=2e-3), "mismatch vs bf16-matmul reference"

    print("KERNEL_OK")
</pallas_src>

<mosaic_0001>
module attributes {stable_mosaic.version = 11 : i64} {
  func.func @actor_kernel(%arg0: i32, %arg1: memref<8x24xf32, #tpu.memory_space<vmem>>, %arg2: memref<8x32xf32, #tpu.memory_space<vmem>>, %arg3: memref<24x1024xbf16, #tpu.memory_space<vmem>>, %arg4: memref<32x1024xbf16, #tpu.memory_space<vmem>>, %arg5: memref<3x1024xf32, #tpu.memory_space<vmem>>, %arg6: memref<1024x512xbf16, #tpu.memory_space<vmem>>, %arg7: memref<3x512xf32, #tpu.memory_space<vmem>>, %arg8: memref<512x256xbf16, #tpu.memory_space<vmem>>, %arg9: memref<3x256xf32, #tpu.memory_space<vmem>>, %arg10: memref<256x256xbf16, #tpu.memory_space<vmem>>, %arg11: memref<3x256xf32, #tpu.memory_space<vmem>>, %arg12: memref<256x256xbf16, #tpu.memory_space<vmem>>, %arg13: memref<3x256xf32, #tpu.memory_space<vmem>>, %arg14: memref<256x32xbf16, #tpu.memory_space<vmem>>, %arg15: memref<3x32xf32, #tpu.memory_space<vmem>>, %arg16: memref<8x32xf32, #tpu.memory_space<vmem>>) attributes {dimension_semantics = [#tpu.dimension_semantics<parallel>], iteration_bounds = array<i64: 1>, scalar_prefetch = 0 : i64, scratch_operands = 0 : i64, tpu.core_type = #tpu.core_type<tc>, window_params = [{transform_indices = @transform_0, window_bounds = array<i64: 8, 24>}, {transform_indices = @transform_1, window_bounds = array<i64: 8, 32>}, {pipeline_mode = #tpu.pipeline_mode<synchronous>, transform_indices = @transform_2, window_bounds = array<i64: 24, 1024>}, {pipeline_mode = #tpu.pipeline_mode<synchronous>, transform_indices = @transform_3, window_bounds = array<i64: 32, 1024>}, {pipeline_mode = #tpu.pipeline_mode<synchronous>, transform_indices = @transform_4, window_bounds = array<i64: 3, 1024>}, {pipeline_mode = #tpu.pipeline_mode<synchronous>, transform_indices = @transform_5, window_bounds = array<i64: 1024, 512>}, {pipeline_mode = #tpu.pipeline_mode<synchronous>, transform_indices = @transform_6, window_bounds = array<i64: 3, 512>}, {pipeline_mode = #tpu.pipeline_mode<synchronous>, transform_indices = @transform_7, window_bounds = array<i64: 512, 256>}, {pipeline_mode = #tpu.pipeline_mode<synchronous>, transform_indices = @transform_8, window_bounds = array<i64: 3, 256>}, {pipeline_mode = #tpu.pipeline_mode<synchronous>, transform_indices = @transform_9, window_bounds = array<i64: 256, 256>}, {pipeline_mode = #tpu.pipeline_mode<synchronous>, transform_indices = @transform_10, window_bounds = array<i64: 3, 256>}, {pipeline_mode = #tpu.pipeline_mode<synchronous>, transform_indices = @transform_11, window_bounds = array<i64: 256, 256>}, {pipeline_mode = #tpu.pipeline_mode<synchronous>, transform_indices = @transform_12, window_bounds = array<i64: 3, 256>}, {pipeline_mode = #tpu.pipeline_mode<synchronous>, transform_indices = @transform_13, window_bounds = array<i64: 256, 32>}, {pipeline_mode = #tpu.pipeline_mode<synchronous>, transform_indices = @transform_14, window_bounds = array<i64: 3, 32>}, {transform_indices = @transform_15, window_bounds = array<i64: 8, 32>}]} {
    %c0 = arith.constant 0 : index
    %c0_0 = arith.constant 0 : index
    %0 = vector.load %arg2[%c0, %c0_0] : memref<8x32xf32, #tpu.memory_space<vmem>>, vector<8x32xf32>
    %c0_1 = arith.constant 0 : index
    %c0_2 = arith.constant 0 : index
    %1 = vector.load %arg1[%c0_1, %c0_2] : memref<8x24xf32, #tpu.memory_space<vmem>>, vector<8x24xf32>
    %2 = arith.truncf %1 : vector<8x24xf32> to vector<8x24xbf16>
    %c0_3 = arith.constant 0 : index
    %c0_4 = arith.constant 0 : index
    %3 = vector.load %arg3[%c0_3, %c0_4] : memref<24x1024xbf16, #tpu.memory_space<vmem>>, vector<24x1024xbf16>
    %cst = arith.constant dense<0.000000e+00> : vector<8x1024xf32>
    %4 = tpu.matmul %2, %3, %cst {dimension_numbers = #tpu.dot_dimension_numbers<[1], [0], [0], [1], [0, 0, 1, 1], [], []>} : vector<8x24xbf16>, vector<24x1024xbf16>, vector<8x1024xf32> -> vector<8x1024xf32>
    %5 = arith.truncf %0 : vector<8x32xf32> to vector<8x32xbf16>
    %c0_5 = arith.constant 0 : index
    %c0_6 = arith.constant 0 : index
    %6 = vector.load %arg4[%c0_5, %c0_6] : memref<32x1024xbf16, #tpu.memory_space<vmem>>, vector<32x1024xbf16>
    %cst_7 = arith.constant dense<0.000000e+00> : vector<8x1024xf32>
    %7 = tpu.matmul %5, %6, %cst_7 {dimension_numbers = #tpu.dot_dimension_numbers<[1], [0], [0], [1], [0, 0, 1, 1], [], []>} : vector<8x32xbf16>, vector<32x1024xbf16>, vector<8x1024xf32> -> vector<8x1024xf32>
    %8 = arith.addf %4, %7 : vector<8x1024xf32>
    %c0_8 = arith.constant 0 : index
    %c0_9 = arith.constant 0 : index
    %9 = vector.load %arg5[%c0_8, %c0_9] : memref<3x1024xf32, #tpu.memory_space<vmem>>, vector<3x1024xf32>
    %10 = vector.extract_strided_slice %9 {offsets = [0, 0], sizes = [1, 1024], strides = [1, 1]} : vector<3x1024xf32> to vector<1x1024xf32>
    %11 = vector.extract_strided_slice %9 {offsets = [1, 0], sizes = [1, 1024], strides = [1, 1]} : vector<3x1024xf32> to vector<1x1024xf32>
    %12 = vector.extract_strided_slice %9 {offsets = [2, 0], sizes = [1, 1024], strides = [1, 1]} : vector<3x1024xf32> to vector<1x1024xf32>
    %13 = vector.broadcast %10 : vector<1x1024xf32> to vector<8x1024xf32>
    %14 = arith.addf %8, %13 : vector<8x1024xf32>
    %cst_10 = arith.constant dense<0.000000e+00> : vector<8xf32>
    %15 = vector.multi_reduction <add>, %14, %cst_10 [1] : vector<8x1024xf32> to vector<8xf32>
    %16 = vector.shape_cast %15 : vector<8xf32> to vector<8x1xf32>
    %17 = arith.mulf %14, %14 : vector<8x1024xf32>
    %cst_11 = arith.constant dense<0.000000e+00> : vector<8xf32>
    %18 = vector.multi_reduction <add>, %17, %cst_11 [1] : vector<8x1024xf32> to vector<8xf32>
    %19 = vector.shape_cast %18 : vector<8xf32> to vector<8x1xf32>
    %cst_12 = arith.constant 9.765625E-4 : f32
    %20 = vector.broadcast %cst_12 : f32 to vector<8x1xf32>
    %21 = arith.mulf %16, %20 : vector<8x1xf32>
    %cst_13 = arith.constant 9.765625E-4 : f32
    %22 = vector.broadcast %cst_13 : f32 to vector<8x1xf32>
    %23 = arith.mulf %19, %22 : vector<8x1xf32>
    %24 = arith.mulf %21, %21 : vector<8x1xf32>
    %25 = arith.subf %23, %24 : vector<8x1xf32>
    %26 = vector.broadcast %21 : vector<8x1xf32> to vector<8x1024xf32>
    %27 = arith.subf %14, %26 : vector<8x1024xf32>
    %cst_14 = arith.constant 9.99999974E-6 : f32
    %28 = vector.broadcast %cst_14 : f32 to vector<8x1xf32>
    %29 = arith.addf %25, %28 : vector<8x1xf32>
    %30 = math.rsqrt %29 : vector<8x1xf32>
    %31 = vector.broadcast %30 : vector<8x1xf32> to vector<8x1024xf32>
    %32 = arith.mulf %27, %31 : vector<8x1024xf32>
    %33 = vector.broadcast %11 : vector<1x1024xf32> to vector<8x1024xf32>
    %34 = arith.mulf %32, %33 : vector<8x1024xf32>
    %35 = vector.broadcast %12 : vector<1x1024xf32> to vector<8x1024xf32>
    %36 = arith.addf %34, %35 : vector<8x1024xf32>
    %cst_15 = arith.constant 0.000000e+00 : f32
    %37 = vector.broadcast %cst_15 : f32 to vector<8x1024xf32>
    %38 = arith.maximumf %36, %37 : vector<8x1024xf32>
    %39 = arith.truncf %38 : vector<8x1024xf32> to vector<8x1024xbf16>
    %c0_16 = arith.constant 0 : index
    %c0_17 = arith.constant 0 : index
    %40 = vector.load %arg6[%c0_16, %c0_17] : memref<1024x512xbf16, #tpu.memory_space<vmem>>, vector<1024x512xbf16>
    %cst_18 = arith.constant dense<0.000000e+00> : vector<8x512xf32>
    %41 = tpu.matmul %39, %40, %cst_18 {dimension_numbers = #tpu.dot_dimension_numbers<[1], [0], [0], [1], [0, 0, 1, 1], [], []>} : vector<8x1024xbf16>, vector<1024x512xbf16>, vector<8x512xf32> -> vector<8x512xf32>
    %c0_19 = arith.constant 0 : index
    %c0_20 = arith.constant 0 : index
    %42 = vector.load %arg7[%c0_19, %c0_20] : memref<3x512xf32, #tpu.memory_space<vmem>>, vector<3x512xf32>
    %43 = vector.extract_strided_slice %42 {offsets = [0, 0], sizes = [1, 512], strides = [1, 1]} : vector<3x512xf32> to vector<1x512xf32>
    %44 = vector.extract_strided_slice %42 {offsets = [1, 0], sizes = [1, 512], strides = [1, 1]} : vector<3x512xf32> to vector<1x512xf32>
    %45 = vector.extract_strided_slice %42 {offsets = [2, 0], sizes = [1, 512], strides = [1, 1]} : vector<3x512xf32> to vector<1x512xf32>
    %46 = vector.broadcast %43 : vector<1x512xf32> to vector<8x512xf32>
    %47 = arith.addf %41, %46 : vector<8x512xf32>
    %cst_21 = arith.constant dense<0.000000e+00> : vector<8xf32>
    %48 = vector.multi_reduction <add>, %47, %cst_21 [1] : vector<8x512xf32> to vector<8xf32>
    %49 = vector.shape_cast %48 : vector<8xf32> to vector<8x1xf32>
    %50 = arith.mulf %47, %47 : vector<8x512xf32>
    %cst_22 = arith.constant dense<0.000000e+00> : vector<8xf32>
    %51 = vector.multi_reduction <add>, %50, %cst_22 [1] : vector<8x512xf32> to vector<8xf32>
    %52 = vector.shape_cast %51 : vector<8xf32> to vector<8x1xf32>
    %cst_23 = arith.constant 0.001953125 : f32
    %53 = vector.broadcast %cst_23 : f32 to vector<8x1xf32>
    %54 = arith.mulf %49, %53 : vector<8x1xf32>
    %cst_24 = arith.constant 0.001953125 : f32
    %55 = vector.broadcast %cst_24 : f32 to vector<8x1xf32>
    %56 = arith.mulf %52, %55 : vector<8x1xf32>
    %57 = arith.mulf %54, %54 : vector<8x1xf32>
    %58 = arith.subf %56, %57 : vector<8x1xf32>
    %59 = vector.broadcast %54 : vector<8x1xf32> to vector<8x512xf32>
    %60 = arith.subf %47, %59 : vector<8x512xf32>
    %cst_25 = arith.constant 9.99999974E-6 : f32
    %61 = vector.broadcast %cst_25 : f32 to vector<8x1xf32>
    %62 = arith.addf %58, %61 : vector<8x1xf32>
    %63 = math.rsqrt %62 : vector<8x1xf32>
    %64 = vector.broadcast %63 : vector<8x1xf32> to vector<8x512xf32>
    %65 = arith.mulf %60, %64 : vector<8x512xf32>
    %66 = vector.broadcast %44 : vector<1x512xf32> to vector<8x512xf32>
    %67 = arith.mulf %65, %66 : vector<8x512xf32>
    %68 = vector.broadcast %45 : vector<1x512xf32> to vector<8x512xf32>
    %69 = arith.addf %67, %68 : vector<8x512xf32>
    %cst_26 = arith.constant 0.000000e+00 : f32
    %70 = vector.broadcast %cst_26 : f32 to vector<8x512xf32>
    %71 = arith.maximumf %69, %70 : vector<8x512xf32>
    %72 = arith.truncf %71 : vector<8x512xf32> to vector<8x512xbf16>
    %c0_27 = arith.constant 0 : index
    %c0_28 = arith.constant 0 : index
    %73 = vector.load %arg8[%c0_27, %c0_28] : memref<512x256xbf16, #tpu.memory_space<vmem>>, vector<512x256xbf16>
    %cst_29 = arith.constant dense<0.000000e+00> : vector<8x256xf32>
    %74 = tpu.matmul %72, %73, %cst_29 {dimension_numbers = #tpu.dot_dimension_numbers<[1], [0], [0], [1], [0, 0, 1, 1], [], []>} : vector<8x512xbf16>, vector<512x256xbf16>, vector<8x256xf32> -> vector<8x256xf32>
    %c0_30 = arith.constant 0 : index
    %c0_31 = arith.constant 0 : index
    %75 = vector.load %arg9[%c0_30, %c0_31] : memref<3x256xf32, #tpu.memory_space<vmem>>, vector<3x256xf32>
    %76 = vector.extract_strided_slice %75 {offsets = [0, 0], sizes = [1, 256], strides = [1, 1]} : vector<3x256xf32> to vector<1x256xf32>
    %77 = vector.extract_strided_slice %75 {offsets = [1, 0], sizes = [1, 256], strides = [1, 1]} : vector<3x256xf32> to vector<1x256xf32>
    %78 = vector.extract_strided_slice %75 {offsets = [2, 0], sizes = [1, 256], strides = [1, 1]} : vector<3x256xf32> to vector<1x256xf32>
    %79 = vector.broadcast %76 : vector<1x256xf32> to vector<8x256xf32>
    %80 = arith.addf %74, %79 : vector<8x256xf32>
    %cst_32 = arith.constant dense<0.000000e+00> : vector<8xf32>
    %81 = vector.multi_reduction <add>, %80, %cst_32 [1] : vector<8x256xf32> to vector<8xf32>
    %82 = vector.shape_cast %81 : vector<8xf32> to vector<8x1xf32>
    %83 = arith.mulf %80, %80 : vector<8x256xf32>
    %cst_33 = arith.constant dense<0.000000e+00> : vector<8xf32>
    %84 = vector.multi_reduction <add>, %83, %cst_33 [1] : vector<8x256xf32> to vector<8xf32>
    %85 = vector.shape_cast %84 : vector<8xf32> to vector<8x1xf32>
    %cst_34 = arith.constant 3.906250e-03 : f32
    %86 = vector.broadcast %cst_34 : f32 to vector<8x1xf32>
    %87 = arith.mulf %82, %86 : vector<8x1xf32>
    %cst_35 = arith.constant 3.906250e-03 : f32
    %88 = vector.broadcast %cst_35 : f32 to vector<8x1xf32>
    %89 = arith.mulf %85, %88 : vector<8x1xf32>
    %90 = arith.mulf %87, %87 : vector<8x1xf32>
    %91 = arith.subf %89, %90 : vector<8x1xf32>
    %92 = vector.broadcast %87 : vector<8x1xf32> to vector<8x256xf32>
    %93 = arith.subf %80, %92 : vector<8x256xf32>
    %cst_36 = arith.constant 9.99999974E-6 : f32
    %94 = vector.broadcast %cst_36 : f32 to vector<8x1xf32>
    %95 = arith.addf %91, %94 : vector<8x1xf32>
    %96 = math.rsqrt %95 : vector<8x1xf32>
    %97 = vector.broadcast %96 : vector<8x1xf32> to vector<8x256xf32>
    %98 = arith.mulf %93, %97 : vector<8x256xf32>
    %99 = vector.broadcast %77 : vector<1x256xf32> to vector<8x256xf32>
    %100 = arith.mulf %98, %99 : vector<8x256xf32>
    %101 = vector.broadcast %78 : vector<1x256xf32> to vector<8x256xf32>
    %102 = arith.addf %100, %101 : vector<8x256xf32>
    %cst_37 = arith.constant 0.000000e+00 : f32
    %103 = vector.broadcast %cst_37 : f32 to vector<8x256xf32>
    %104 = arith.maximumf %102, %103 : vector<8x256xf32>
    %105 = arith.truncf %104 : vector<8x256xf32> to vector<8x256xbf16>
    %c0_38 = arith.constant 0 : index
    %c0_39 = arith.constant 0 : index
    %106 = vector.load %arg10[%c0_38, %c0_39] : memref<256x256xbf16, #tpu.memory_space<vmem>>, vector<256x256xbf16>
    %cst_40 = arith.constant dense<0.000000e+00> : vector<8x256xf32>
    %107 = tpu.matmul %105, %106, %cst_40 {dimension_numbers = #tpu.dot_dimension_numbers<[1], [0], [0], [1], [0, 0, 1, 1], [], []>} : vector<8x256xbf16>, vector<256x256xbf16>, vector<8x256xf32> -> vector<8x256xf32>
    %c0_41 = arith.constant 0 : index
    %c0_42 = arith.constant 0 : index
    %108 = vector.load %arg11[%c0_41, %c0_42] : memref<3x256xf32, #tpu.memory_space<vmem>>, vector<3x256xf32>
    %109 = vector.extract_strided_slice %108 {offsets = [0, 0], sizes = [1, 256], strides = [1, 1]} : vector<3x256xf32> to vector<1x256xf32>
    %110 = vector.extract_strided_slice %108 {offsets = [1, 0], sizes = [1, 256], strides = [1, 1]} : vector<3x256xf32> to vector<1x256xf32>
    %111 = vector.extract_strided_slice %108 {offsets = [2, 0], sizes = [1, 256], strides = [1, 1]} : vector<3x256xf32> to vector<1x256xf32>
    %112 = vector.broadcast %109 : vector<1x256xf32> to vector<8x256xf32>
    %113 = arith.addf %107, %112 : vector<8x256xf32>
    %cst_43 = arith.constant dense<0.000000e+00> : vector<8xf32>
    %114 = vector.multi_reduction <add>, %113, %cst_43 [1] : vector<8x256xf32> to vector<8xf32>
    %115 = vector.shape_cast %114 : vector<8xf32> to vector<8x1xf32>
    %116 = arith.mulf %113, %113 : vector<8x256xf32>
    %cst_44 = arith.constant dense<0.000000e+00> : vector<8xf32>
    %117 = vector.multi_reduction <add>, %116, %cst_44 [1] : vector<8x256xf32> to vector<8xf32>
    %118 = vector.shape_cast %117 : vector<8xf32> to vector<8x1xf32>
    %cst_45 = arith.constant 3.906250e-03 : f32
    %119 = vector.broadcast %cst_45 : f32 to vector<8x1xf32>
    %120 = arith.mulf %115, %119 : vector<8x1xf32>
    %cst_46 = arith.constant 3.906250e-03 : f32
    %121 = vector.broadcast %cst_46 : f32 to vector<8x1xf32>
    %122 = arith.mulf %118, %121 : vector<8x1xf32>
    %123 = arith.mulf %120, %120 : vector<8x1xf32>
    %124 = arith.subf %122, %123 : vector<8x1xf32>
    %125 = vector.broadcast %120 : vector<8x1xf32> to vector<8x256xf32>
    %126 = arith.subf %113, %125 : vector<8x256xf32>
    %cst_47 = arith.constant 9.99999974E-6 : f32
    %127 = vector.broadcast %cst_47 : f32 to vector<8x1xf32>
    %128 = arith.addf %124, %127 : vector<8x1xf32>
    %129 = math.rsqrt %128 : vector<8x1xf32>
    %130 = vector.broadcast %129 : vector<8x1xf32> to vector<8x256xf32>
    %131 = arith.mulf %126, %130 : vector<8x256xf32>
    %132 = vector.broadcast %110 : vector<1x256xf32> to vector<8x256xf32>
    %133 = arith.mulf %131, %132 : vector<8x256xf32>
    %134 = vector.broadcast %111 : vector<1x256xf32> to vector<8x256xf32>
    %135 = arith.addf %133, %134 : vector<8x256xf32>
    %cst_48 = arith.constant 0.000000e+00 : f32
    %136 = vector.broadcast %cst_48 : f32 to vector<8x256xf32>
    %137 = arith.maximumf %135, %136 : vector<8x256xf32>
    %138 = arith.addf %137, %104 : vector<8x256xf32>
    %139 = arith.truncf %138 : vector<8x256xf32> to vector<8x256xbf16>
    %c0_49 = arith.constant 0 : index
    %c0_50 = arith.constant 0 : index
    %140 = vector.load %arg12[%c0_49, %c0_50] : memref<256x256xbf16, #tpu.memory_space<vmem>>, vector<256x256xbf16>
    %cst_51 = arith.constant dense<0.000000e+00> : vector<8x256xf32>
    %141 = tpu.matmul %139, %140, %cst_51 {dimension_numbers = #tpu.dot_dimension_numbers<[1], [0], [0], [1], [0, 0, 1, 1], [], []>} : vector<8x256xbf16>, vector<256x256xbf16>, vector<8x256xf32> -> vector<8x256xf32>
    %c0_52 = arith.constant 0 : index
    %c0_53 = arith.constant 0 : index
    %142 = vector.load %arg13[%c0_52, %c0_53] : memref<3x256xf32, #tpu.memory_space<vmem>>, vector<3x256xf32>
    %143 = vector.extract_strided_slice %142 {offsets = [0, 0], sizes = [1, 256], strides = [1, 1]} : vector<3x256xf32> to vector<1x256xf32>
    %144 = vector.extract_strided_slice %142 {offsets = [1, 0], sizes = [1, 256], strides = [1, 1]} : vector<3x256xf32> to vector<1x256xf32>
    %145 = vector.extract_strided_slice %142 {offsets = [2, 0], sizes = [1, 256], strides = [1, 1]} : vector<3x256xf32> to vector<1x256xf32>
    %146 = vector.broadcast %143 : vector<1x256xf32> to vector<8x256xf32>
    %147 = arith.addf %141, %146 : vector<8x256xf32>
    %cst_54 = arith.constant dense<0.000000e+00> : vector<8xf32>
    %148 = vector.multi_reduction <add>, %147, %cst_54 [1] : vector<8x256xf32> to vector<8xf32>
    %149 = vector.shape_cast %148 : vector<8xf32> to vector<8x1xf32>
    %150 = arith.mulf %147, %147 : vector<8x256xf32>
    %cst_55 = arith.constant dense<0.000000e+00> : vector<8xf32>
    %151 = vector.multi_reduction <add>, %150, %cst_55 [1] : vector<8x256xf32> to vector<8xf32>
    %152 = vector.shape_cast %151 : vector<8xf32> to vector<8x1xf32>
    %cst_56 = arith.constant 3.906250e-03 : f32
    %153 = vector.broadcast %cst_56 : f32 to vector<8x1xf32>
    %154 = arith.mulf %149, %153 : vector<8x1xf32>
    %cst_57 = arith.constant 3.906250e-03 : f32
    %155 = vector.broadcast %cst_57 : f32 to vector<8x1xf32>
    %156 = arith.mulf %152, %155 : vector<8x1xf32>
    %157 = arith.mulf %154, %154 : vector<8x1xf32>
    %158 = arith.subf %156, %157 : vector<8x1xf32>
    %159 = vector.broadcast %154 : vector<8x1xf32> to vector<8x256xf32>
    %160 = arith.subf %147, %159 : vector<8x256xf32>
    %cst_58 = arith.constant 9.99999974E-6 : f32
    %161 = vector.broadcast %cst_58 : f32 to vector<8x1xf32>
    %162 = arith.addf %158, %161 : vector<8x1xf32>
    %163 = math.rsqrt %162 : vector<8x1xf32>
    %164 = vector.broadcast %163 : vector<8x1xf32> to vector<8x256xf32>
    %165 = arith.mulf %160, %164 : vector<8x256xf32>
    %166 = vector.broadcast %144 : vector<1x256xf32> to vector<8x256xf32>
    %167 = arith.mulf %165, %166 : vector<8x256xf32>
    %168 = vector.broadcast %145 : vector<1x256xf32> to vector<8x256xf32>
    %169 = arith.addf %167, %168 : vector<8x256xf32>
    %cst_59 = arith.constant 0.000000e+00 : f32
    %170 = vector.broadcast %cst_59 : f32 to vector<8x256xf32>
    %171 = arith.maximumf %169, %170 : vector<8x256xf32>
    %172 = arith.addf %171, %138 : vector<8x256xf32>
    %c0_60 = arith.constant 0 : index
    %c0_61 = arith.constant 0 : index
    %173 = vector.load %arg15[%c0_60, %c0_61] : memref<3x32xf32, #tpu.memory_space<vmem>>, vector<3x32xf32>
    %174 = vector.extract_strided_slice %173 {offsets = [0, 0], sizes = [1, 32], strides = [1, 1]} : vector<3x32xf32> to vector<1x32xf32>
    %175 = vector.extract_strided_slice %173 {offsets = [1, 0], sizes = [1, 32], strides = [1, 1]} : vector<3x32xf32> to vector<1x32xf32>
    %176 = vector.extract_strided_slice %173 {offsets = [2, 0], sizes = [1, 32], strides = [1, 1]} : vector<3x32xf32> to vector<1x32xf32>
    %177 = arith.truncf %172 : vector<8x256xf32> to vector<8x256xbf16>
    %c0_62 = arith.constant 0 : index
    %c0_63 = arith.constant 0 : index
    %178 = vector.load %arg14[%c0_62, %c0_63] : memref<256x32xbf16, #tpu.memory_space<vmem>>, vector<256x32xbf16>
    %cst_64 = arith.constant dense<0.000000e+00> : vector<8x32xf32>
    %179 = tpu.matmul %177, %178, %cst_64 {dimension_numbers = #tpu.dot_dimension_numbers<[1], [0], [0], [1], [0, 0, 1, 1], [], []>} : vector<8x256xbf16>, vector<256x32xbf16>, vector<8x32xf32> -> vector<8x32xf32>
    %180 = vector.broadcast %174 : vector<1x32xf32> to vector<8x32xf32>
    %181 = arith.addf %179, %180 : vector<8x32xf32>
    %182 = math.tanh %181 : vector<8x32xf32>
    %183 = vector.broadcast %175 : vector<1x32xf32> to vector<8x32xf32>
    %184 = arith.mulf %183, %182 : vector<8x32xf32>
    %185 = arith.addf %184, %0 : vector<8x32xf32>
    %cst_65 = arith.constant 0.000000e+00 : f32
    %186 = vector.broadcast %cst_65 : f32 to vector<1x32xf32>
    %187 = arith.subf %186, %176 : vector<1x32xf32>
    %188 = vector.broadcast %187 : vector<1x32xf32> to vector<8x32xf32>
    %189 = arith.maximumf %188, %185 : vector<8x32xf32>
    %190 = vector.broadcast %176 : vector<1x32xf32> to vector<8x32xf32>
    %191 = arith.minimumf %190, %189 : vector<8x32xf32>
    %c0_66 = arith.constant 0 : index
    %c0_67 = arith.constant 0 : index
    %192 = vector.load %arg16[%c0_66, %c0_67] : memref<8x32xf32, #tpu.memory_space<vmem>>, vector<8x32xf32>
    tpu.vector_store %arg16[%c0_66, %c0_67], %191 {strides = array<i32>} : memref<8x32xf32, #tpu.memory_space<vmem>>, vector<8x32xf32>,
    return
  }
  func.func @transform_0(%arg0: i32) -> (i32, i32) {
    %c0_i32 = arith.constant 0 : i32
    %c0_i32_0 = arith.constant 0 : i32
    return %arg0, %c0_i32 : i32, i32
  }
  func.func @transform_1(%arg0: i32) -> (i32, i32) {
    %c0_i32 = arith.constant 0 : i32
    %c0_i32_0 = arith.constant 0 : i32
    return %arg0, %c0_i32 : i32, i32
  }
  func.func @transform_2(%arg0: i32) -> (i32, i32) {
    %c0_i32 = arith.constant 0 : i32
    %c0_i32_0 = arith.constant 0 : i32
    %c0_i32_1 = arith.constant 0 : i32
    return %c0_i32, %c0_i32_0 : i32, i32
  }
  func.func @transform_3(%arg0: i32) -> (i32, i32) {
    %c0_i32 = arith.constant 0 : i32
    %c0_i32_0 = arith.constant 0 : i32
    %c0_i32_1 = arith.constant 0 : i32
    return %c0_i32, %c0_i32_0 : i32, i32
  }
  func.func @transform_4(%arg0: i32) -> (i32, i32) {
    %c0_i32 = arith.constant 0 : i32
    %c0_i32_0 = arith.constant 0 : i32
    %c0_i32_1 = arith.constant 0 : i32
    return %c0_i32, %c0_i32_0 : i32, i32
  }
  func.func @transform_5(%arg0: i32) -> (i32, i32) {
    %c0_i32 = arith.constant 0 : i32
    %c0_i32_0 = arith.constant 0 : i32
    %c0_i32_1 = arith.constant 0 : i32
    return %c0_i32, %c0_i32_0 : i32, i32
  }
  func.func @transform_6(%arg0: i32) -> (i32, i32) {
    %c0_i32 = arith.constant 0 : i32
    %c0_i32_0 = arith.constant 0 : i32
    %c0_i32_1 = arith.constant 0 : i32
    return %c0_i32, %c0_i32_0 : i32, i32
  }
  func.func @transform_7(%arg0: i32) -> (i32, i32) {
    %c0_i32 = arith.constant 0 : i32
    %c0_i32_0 = arith.constant 0 : i32
    %c0_i32_1 = arith.constant 0 : i32
    return %c0_i32, %c0_i32_0 : i32, i32
  }
  func.func @transform_8(%arg0: i32) -> (i32, i32) {
    %c0_i32 = arith.constant 0 : i32
    %c0_i32_0 = arith.constant 0 : i32
    %c0_i32_1 = arith.constant 0 : i32
    return %c0_i32, %c0_i32_0 : i32, i32
  }
  func.func @transform_9(%arg0: i32) -> (i32, i32) {
    %c0_i32 = arith.constant 0 : i32
    %c0_i32_0 = arith.constant 0 : i32
    %c0_i32_1 = arith.constant 0 : i32
    return %c0_i32, %c0_i32_0 : i32, i32
  }
  func.func @transform_10(%arg0: i32) -> (i32, i32) {
    %c0_i32 = arith.constant 0 : i32
    %c0_i32_0 = arith.constant 0 : i32
    %c0_i32_1 = arith.constant 0 : i32
    return %c0_i32, %c0_i32_0 : i32, i32
  }
  func.func @transform_11(%arg0: i32) -> (i32, i32) {
    %c0_i32 = arith.constant 0 : i32
    %c0_i32_0 = arith.constant 0 : i32
    %c0_i32_1 = arith.constant 0 : i32
    return %c0_i32, %c0_i32_0 : i32, i32
  }
  func.func @transform_12(%arg0: i32) -> (i32, i32) {
    %c0_i32 = arith.constant 0 : i32
    %c0_i32_0 = arith.constant 0 : i32
    %c0_i32_1 = arith.constant 0 : i32
    return %c0_i32, %c0_i32_0 : i32, i32
  }
  func.func @transform_13(%arg0: i32) -> (i32, i32) {
    %c0_i32 = arith.constant 0 : i32
    %c0_i32_0 = arith.constant 0 : i32
    %c0_i32_1 = arith.constant 0 : i32
    return %c0_i32, %c0_i32_0 : i32, i32
  }
  func.func @transform_14(%arg0: i32) -> (i32, i32) {
    %c0_i32 = arith.constant 0 : i32
    %c0_i32_0 = arith.constant 0 : i32
    %c0_i32_1 = arith.constant 0 : i32
    return %c0_i32, %c0_i32_0 : i32, i32
  }
  func.func @transform_15(%arg0: i32) -> (i32, i32) {
    %c0_i32 = arith.constant 0 : i32
    %c0_i32_0 = arith.constant 0 : i32
    return %arg0, %c0_i32 : i32, i32
  }
}

</mosaic_0001>

<bundles_post_ra>
// kernel: tpu_custom_call.1
= control target key start
LH: loop header
LB: loop body
LE: loop exit
PB: predicated region body
PF: predicated region fallthrough
CT: control target
= control target key end

     0   :  { %20 = vsyncpa [#allocation3], 0  ;;  %s6547_s0 = inlined_call_operand.hbm [shape: f32[8,24], index: 0, kind: input, shape index: {}]   ;;  %s6548_s1 = inlined_call_operand.hbm [shape: f32[8,32], index: 1, kind: input, shape index: {}]   ;;  %s6549_s2 = inlined_call_operand.hbm [shape: bf16[24,1024], index: 2, kind: input, shape index: {}]   ;;  %s6550_s3 = inlined_call_operand.vmem [shape: bf16[32,1024], index: 3, kind: input, shape index: {}]   ;;  %s6551_s4 = inlined_call_operand.vmem [shape: f32[3,1024], index: 4, kind: input, shape index: {}]   ;;  %s6552_s5 = inlined_call_operand.hbm [shape: bf16[1024,512], index: 5, kind: input, shape index: {}]   ;;  %s6553_s6 = inlined_call_operand.vmem [shape: f32[3,512], index: 6, kind: input, shape index: {}]   ;;  %s6554_s7 = inlined_call_operand.hbm [shape: bf16[512,256], index: 7, kind: input, shape index: {}]   ;;  %s6555_s8 = inlined_call_operand.hbm [shape: f32[3,256], index: 8, kind: input, shape index: {}]   ;;  %s6556_s9 = inlined_call_operand.hbm [shape: bf16[256,256], index: 9, kind: input, shape index: {}]   ;;  %s6557_s10 = inlined_call_operand.hbm [shape: f32[3,256], index: 10, kind: input, shape index: {}]   ;;  %s6558_s11 = inlined_call_operand.hbm [shape: bf16[256,256], index: 11, kind: input, shape index: {}]   ;;  %s6559_s12 = inlined_call_operand.hbm [shape: f32[3,256], index: 12, kind: input, shape index: {}]   ;;  %s6560_s13 = inlined_call_operand.vmem [shape: bf16[256,32], index: 13, kind: input, shape index: {}]   ;;  %s6561_s14 = inlined_call_operand.vmem [shape: f32[3,32], index: 14, kind: input, shape index: {}]   ;;  %s6562_s15 = inlined_call_operand.hbm [shape: f32[8,32], index: 15, kind: output, shape index: {}]  }
   0x1   :  { %21 = vsyncpa [#allocation6], 0 }
   0x2   :  { %22 = vsyncpa [#allocation9], 0 }
   0x3   :  { %23 = vsyncpa [#allocation12], 0 }
   0x4   :  { %24 = vsyncpa [#allocation15], 0 }
   0x5   :  { %25 = vsyncpa [#allocation18], 0 }
   0x6   :  { %26 = vsyncpa [#allocation4], 0  ;;  %s5825_s18 = smov [#allocation5]   ;;  %s5826_s20 = smov [#allocation8]  }
   0x7   :  { %s43_s19 = sshll.u32 %s5825_s18, 4  ;;  %s68_s21 = sshll.u32 %s5826_s20, 4  ;;  %s44_s19 = int_to_ptr.vmem [resolvable:$true] %s43_s19  ;;  %s5923_s21 = int_to_ptr.vmem [resolvable:$true] %s68_s21 }
   0x8   :  { %s5569_s24 = scalar_lea.hbm %s6548_s1, 128 }
   0x9   :  { %p5570_p0 = scmp.ne.s32.totalorder %s6548_s1, %s5569_s24  ;;  %p5573_p1 = scmp.lt.u32.totalorder %s5569_s24, %s6548_s1 }
   0xb   :  { %p5575_p2 = pnand %p5573_p1, %p5570_p0 }
   0xd   :  { %5578 = shalt.err (!%p5575_p2)
}
   0xe   :  { %s5579_s29 = scalar_lea.vmem %s44_s19, 128  ;;  %p5584_p4 = scmp.lt.s32.totalorder %s44_s19, %s44_s19 }
   0xf   :  { %p5580_p3 = scmp.ne.s32.totalorder %s44_s19, %s5579_s29  ;;  %p5585_p5 = scmp.lt.s32.totalorder %s5579_s29, %s5579_s29 }
  0x11   :  { %p5586_p6 = por %p5585_p5, %p5584_p4 }
  0x13   :  { %p5587_p7 = pnand %p5586_p6, %p5580_p3 }
  0x15   :  { %5590 = shalt.err (!%p5587_p7)
}
  0x16   :  { %46 = dma.hbm_to_vmem [thread:$0]  %s6548_s1, 128, %s44_s19, [#allocation6]  }
  0x17   :  { %s5591_s20 = scalar_lea.hbm %s6552_s5, 32768 }
  0x18   :  { %p5592_p8 = scmp.ne.s32.totalorder %s6552_s5, %s5591_s20  ;;  %p5595_p9 = scmp.lt.u32.totalorder %s5591_s20, %s6552_s5 }
  0x1a   :  { %p5597_p10 = pnand %p5595_p9, %p5592_p8 }
  0x1c   :  { %5600 = shalt.err (!%p5597_p10)
}
  0x1d   :  { %s5601_s26 = scalar_lea.vmem %s5923_s21, 32768  ;;  %p5606_p12 = scmp.lt.s32.totalorder %s5923_s21, %s5923_s21 }
  0x1e   :  { %p5602_p11 = scmp.ne.s32.totalorder %s5923_s21, %s5601_s26  ;;  %p5607_p13 = scmp.lt.s32.totalorder %s5601_s26, %s5601_s26 }
  0x20   :  { %p5608_p0 = por %p5607_p13, %p5606_p12 }
  0x22   :  { %p5609_p1 = pnand %p5608_p0, %p5602_p11 }
  0x24   :  { %5612 = shalt.err (!%p5609_p1)
}
  0x25   :  { %s5827_s1 = smov 256   ;;  %s5828_s19 = smov 16  }
  0x26   :  { %74 = dma.hbm_to_vmem [thread:$0]  %s6552_s5, 32768, %s5923_s21, [#allocation9], %s5827_s1, %s5827_s1, %s5828_s19  }
  0x27   :  { %s5829_s29 = smov [#allocation11]   ;;  %s5830_s16 = smov [#allocation14]  }
  0x28   :  { %s95_s30 = sshll.u32 %s5829_s29, 4  ;;  %s117_s17 = sshll.u32 %s5830_s16, 4  ;;  %s96_s30 = int_to_ptr.vmem [resolvable:$true] %s95_s30  ;;  %s118_s17 = int_to_ptr.vmem [resolvable:$true] %s117_s17 }
  0x29   :  { %s5613_s22 = scalar_lea.hbm %s6555_s8, 128 }
  0x2a   :  { %p5614_p2 = scmp.ne.s32.totalorder %s6555_s8, %s5613_s22  ;;  %p5617_p3 = scmp.lt.u32.totalorder %s5613_s22, %s6555_s8 }
  0x2c   :  { %p5619_p4 = pnand %p5617_p3, %p5614_p2 }
  0x2e   :  { %5622 = shalt.err (!%p5619_p4)
}
  0x2f   :  { %s5623_s5 = scalar_lea.vmem %s96_s30, 128  ;;  %p5628_p6 = scmp.lt.s32.totalorder %s96_s30, %s96_s30 }
  0x30   :  { %p5624_p5 = scmp.ne.s32.totalorder %s96_s30, %s5623_s5  ;;  %p5629_p7 = scmp.lt.s32.totalorder %s5623_s5, %s5623_s5 }
  0x32   :  { %p5630_p8 = por %p5629_p7, %p5628_p6 }
  0x34   :  { %p5631_p9 = pnand %p5630_p8, %p5624_p5 }
  0x36   :  { %5634 = shalt.err (!%p5631_p9)
}
  0x37   :  { %98 = dma.hbm_to_vmem [thread:$0]  %s6555_s8, 128, %s96_s30, [#allocation12]  }
  0x38   :  { %s5635_s28 = scalar_lea.hbm %s6557_s10, 128 }
  0x39   :  { %p5636_p10 = scmp.ne.s32.totalorder %s6557_s10, %s5635_s28  ;;  %p5639_p11 = scmp.lt.u32.totalorder %s5635_s28, %s6557_s10 }
  0x3b   :  { %p5641_p12 = pnand %p5639_p11, %p5636_p10 }
  0x3d   :  { %5644 = shalt.err (!%p5641_p12)
}
  0x3e   :  { %s5645_s22 = scalar_lea.vmem %s118_s17, 128  ;;  %p5650_p0 = scmp.lt.s32.totalorder %s118_s17, %s118_s17 }
  0x3f   :  { %p5646_p13 = scmp.ne.s32.totalorder %s118_s17, %s5645_s22  ;;  %p5651_p1 = scmp.lt.s32.totalorder %s5645_s22, %s5645_s22 }
  0x41   :  { %p5652_p2 = por %p5651_p1, %p5650_p0 }
  0x43   :  { %p5653_p3 = pnand %p5652_p2, %p5646_p13 }
  0x45   :  { %5656 = shalt.err (!%p5653_p3)
}
  0x46   :  { %120 = dma.hbm_to_vmem [thread:$0]  %s6557_s10, 128, %s118_s17, [#allocation15]  }
  0x47   :  { %s5831_s23 = smov [#allocation2]   ;;  %s5832_s25 = smov [#allocation7]  }
  0x48   :  { %s33_s24 = sshll.u32 %s5831_s23, 4  ;;  %s52_s26 = sshll.u32 %s5832_s25, 4  ;;  %s34_s24 = int_to_ptr.vmem [resolvable:$true] %s33_s24  ;;  %s5978_s26 = int_to_ptr.vmem [resolvable:$true] %s52_s26 }
  0x49   :  { %s5657_s1 = scalar_lea.hbm %s6547_s0, 128 }
  0x4a   :  { %p5658_p4 = scmp.ne.s32.totalorder %s6547_s0, %s5657_s1  ;;  %p5661_p5 = scmp.lt.u32.totalorder %s5657_s1, %s6547_s0 }
  0x4c   :  { %p5663_p6 = pnand %p5661_p5, %p5658_p4 }
  0x4e   :  { %5666 = shalt.err (!%p5663_p6)
}
  0x4f   :  { %s5667_s10 = scalar_lea.vmem %s34_s24, 128  ;;  %p5672_p8 = scmp.lt.s32.totalorder %s34_s24, %s34_s24 }
  0x50   :  { %p5668_p7 = scmp.ne.s32.totalorder %s34_s24, %s5667_s10  ;;  %p5673_p9 = scmp.lt.s32.totalorder %s5667_s10, %s5667_s10 }
  0x52   :  { %p5674_p10 = por %p5673_p9, %p5672_p8 }
  0x54   :  { %p5675_p11 = pnand %p5674_p10, %p5668_p7 }
  0x56   :  { %5678 = shalt.err (!%p5675_p11)
}
  0x57   :  { %36 = dma.hbm_to_vmem [thread:$0]  %s6547_s0, 128, %s34_s24, [#allocation3]  }
  0x58   :  { %s5679_s22 = scalar_lea.hbm %s6549_s2, 1536 }
  0x59   :  { %p5680_p12 = scmp.ne.s32.totalorder %s6549_s2, %s5679_s22  ;;  %p5683_p13 = scmp.lt.u32.totalorder %s5679_s22, %s6549_s2 }
  0x5b   :  { %p5685_p0 = pnand %p5683_p13, %p5680_p12 }
  0x5d   :  { %5688 = shalt.err (!%p5685_p0)
}
  0x5e   :  { %s5689_s5 = scalar_lea.vmem %s5978_s26, 1536  ;;  %p5694_p2 = scmp.lt.s32.totalorder %s5978_s26, %s5978_s26 }
  0x5f   :  { %p5690_p1 = scmp.ne.s32.totalorder %s5978_s26, %s5689_s5  ;;  %p5695_p3 = scmp.lt.s32.totalorder %s5689_s5, %s5689_s5 }
  0x61   :  { %p5696_p4 = por %p5695_p3, %p5694_p2 }
  0x63   :  { %p5697_p5 = pnand %p5696_p4, %p5690_p1 }
  0x65   :  { %5700 = shalt.err (!%p5697_p5)
}
  0x66   :  { %s5833_s0 = smov 512   ;;  %s5834_s24 = smov 32  }
  0x67   :  { %58 = dma.hbm_to_vmem [thread:$0]  %s6549_s2, 1536, %s5978_s26, [#allocation6], %s5833_s0, %s5833_s0, %s5834_s24  }
  0x68   :  { %s5835_s19 = smov [#allocation10]   ;;  %s5701_s10 = scalar_lea.hbm %s6554_s7, 8192 }
  0x69   :  { %s82_s27 = sshll.u32 %s5835_s19, 4  ;;  %p5702_p6 = scmp.ne.s32.totalorder %s6554_s7, %s5701_s10  ;;  %s83_s27 = int_to_ptr.vmem [resolvable:$true] %s82_s27 }
  0x6a   :  { %p5705_p7 = scmp.lt.u32.totalorder %s5701_s10, %s6554_s7 }
  0x6c   :  { %p5707_p8 = pnand %p5705_p7, %p5702_p6 }
  0x6e   :  { %5710 = shalt.err (!%p5707_p8)
}
  0x6f   :  { %s5711_s22 = scalar_lea.vmem %s83_s27, 8192  ;;  %p5716_p10 = scmp.lt.s32.totalorder %s83_s27, %s83_s27 }
  0x70   :  { %p5712_p9 = scmp.ne.s32.totalorder %s83_s27, %s5711_s22  ;;  %p5717_p11 = scmp.lt.s32.totalorder %s5711_s22, %s5711_s22 }
  0x72   :  { %p5718_p12 = por %p5717_p11, %p5716_p10 }
  0x74   :  { %p5719_p13 = pnand %p5718_p12, %p5712_p9 }
  0x76   :  { %5722 = shalt.err (!%p5719_p13)
}
  0x77   :  { %s5836_s2 = smov 128   ;;  %s5837_s26 = smov 8  }
  0x78   :  { %88 = dma.hbm_to_vmem [thread:$0]  %s6554_s7, 8192, %s83_s27, [#allocation9], %s5836_s2, %s5836_s2, %s5837_s26  }
  0x79   :  { %s5838_s23 = smov [#allocation13]   ;;  %s5839_s5 = smov [#allocation16]  }
  0x7a   :  { %s104_s25 = sshll.u32 %s5838_s23, 4  ;;  %s126_s0 = sshll.u32 %s5839_s5, 4  ;;  %s105_s25 = int_to_ptr.vmem [resolvable:$true] %s104_s25  ;;  %s127_s0 = int_to_ptr.vmem [resolvable:$true] %s126_s0 }
  0x7b   :  { %s5723_s1 = scalar_lea.hbm %s6556_s9, 4096 }
  0x7c   :  { %p5724_p0 = scmp.ne.s32.totalorder %s6556_s9, %s5723_s1  ;;  %p5727_p1 = scmp.lt.u32.totalorder %s5723_s1, %s6556_s9 }
  0x7e   :  { %p5729_p2 = pnand %p5727_p1, %p5724_p0 }
  0x80   :  { %5732 = shalt.err (!%p5729_p2)
}
  0x81   :  { %s5733_s7 = scalar_lea.vmem %s105_s25, 4096  ;;  %p5738_p4 = scmp.lt.s32.totalorder %s105_s25, %s105_s25 }
  0x82   :  { %p5734_p3 = scmp.ne.s32.totalorder %s105_s25, %s5733_s7  ;;  %p5739_p5 = scmp.lt.s32.totalorder %s5733_s7, %s5733_s7 }
  0x84   :  { %p5740_p6 = por %p5739_p5, %p5738_p4 }
  0x86   :  { %p5741_p7 = pnand %p5740_p6, %p5734_p3 }
  0x88   :  { %5744 = shalt.err (!%p5741_p7)
}
  0x89   :  { %110 = dma.hbm_to_vmem [thread:$0]  %s6556_s9, 4096, %s105_s25, [#allocation12], %s5836_s2, %s5836_s2, %s5837_s26  }
  0x8a   :  { %s5745_s20 = scalar_lea.hbm %s6558_s11, 4096 }
  0x8b   :  { %p5746_p8 = scmp.ne.s32.totalorder %s6558_s11, %s5745_s20  ;;  %p5749_p9 = scmp.lt.u32.totalorder %s5745_s20, %s6558_s11 }
  0x8d   :  { %p5751_p10 = pnand %p5749_p9, %p5746_p8 }
  0x8f   :  { %5754 = shalt.err (!%p5751_p10)
}
  0x90   :  { %s5755_s5 = scalar_lea.vmem %s127_s0, 4096  ;;  %p5760_p12 = scmp.lt.s32.totalorder %s127_s0, %s127_s0 }
  0x91   :  { %p5756_p11 = scmp.ne.s32.totalorder %s127_s0, %s5755_s5  ;;  %p5761_p13 = scmp.lt.s32.totalorder %s5755_s5, %s5755_s5 }
  0x93   :  { %p5762_p0 = por %p5761_p13, %p5760_p12 }
  0x95   :  { %p5763_p1 = pnand %p5762_p0, %p5756_p11 }
  0x97   :  { %5766 = shalt.err (!%p5763_p1)
}
  0x98   :  { %132 = dma.hbm_to_vmem [thread:$0]  %s6558_s11, 4096, %s127_s0, [#allocation15], %s5836_s2, %s5836_s2, %s5837_s26  }
  0x99   :  { %s5840_s24 = smov [#allocation17]   ;;  %s5767_s28 = scalar_lea.hbm %s6559_s12, 128 }
  0x9a   :  { %s139_s21 = sshll.u32 %s5840_s24, 4  ;;  %p5768_p2 = scmp.ne.s32.totalorder %s6559_s12, %s5767_s28  ;;  %s140_s21 = int_to_ptr.vmem [resolvable:$true] %s139_s21 }
  0x9b   :  { %p5771_p3 = scmp.lt.u32.totalorder %s5767_s28, %s6559_s12 }
  0x9d   :  { %p5773_p4 = pnand %p5771_p3, %p5768_p2 }
  0x9f   :  { %5776 = shalt.err (!%p5773_p4)
}
  0xa0   :  { %s5777_s17 = scalar_lea.vmem %s140_s21, 128  ;;  %p5782_p6 = scmp.lt.s32.totalorder %s140_s21, %s140_s21 }
  0xa1   :  { %p5778_p5 = scmp.ne.s32.totalorder %s140_s21, %s5777_s17  ;;  %p5783_p7 = scmp.lt.s32.totalorder %s5777_s17, %s5777_s17 }
  0xa3   :  { %p5784_p8 = por %p5783_p7, %p5782_p6 }
  0xa5   :  { %p5785_p9 = pnand %p5784_p8, %p5778_p5 }
  0xa7   :  { %5788 = shalt.err (!%p5785_p9)
}
  0xa8   :  { %142 = dma.hbm_to_vmem [thread:$0]  %s6559_s12, 128, %s140_s21, [#allocation18]  }
  0xa9   :  { %5811 = dma.done.wait [#allocation3], 128  }
  0xaa   :  { %5812 = vsyncadd [#allocation3], 4294967168 }
  0xab   :  { %5813 = dma.done.wait [#allocation6], 1664  }
  0xac   :  { %5814 = vsyncadd [#allocation6], 4294965632 }
  0xad   :  { %5815 = dma.done.wait [#allocation9], 40960  }
  0xae   :  { %5816 = vsyncadd [#allocation9], 4294926336 }
  0xaf   :  { %5817 = dma.done.wait [#allocation12], 4224  }
  0xb0   :  { %5818 = vsyncadd [#allocation12], 4294963072 }
  0xb1   :  { %5819 = dma.done.wait [#allocation15], 4224  }
  0xb2   :  { %5820 = vsyncadd [#allocation15], 4294963072 }
  0xb3   :  { %5821 = dma.done.wait [#allocation18], 128  }
  0xb4   :  { %5822 = vsyncadd [#allocation18], 4294967168  ;;  %v5841_v0 = vmov 0   ;;  %v194_v1 = vld [vmem:[%s6550_s3] sm:$0xff]  ;;  %v181_v3 = vld [vmem:[#allocation7] sm:$0xff]  ;;  %vm522_vm0 = vcmask 1043456  }
  0xb5   :  { %326 = vmatprep.mubr.bf16.mxu1 %v5841_v0  ;;  %579 = vmatprep.mubr.bf16.mxu0 %v5841_v0  ;;  %v198_v2 = vld [vmem:[%s6550_s3 + $0x20] sm:$0xff]  ;;  %v185_v5 = vld [vmem:[#allocation7 + $0x20] sm:$0xff]  ;;  %v195_v13 = vld [vmem:[%s6550_s3 + $0x8] sm:$0xff]  ;;  %vm290_vm1 = vcmask 261120   ;;  %vm518_vm2 = vcmask 195584  }
  0xb6   :  { %v4438_v4 = vcombine.high %v194_v1, %v198_v2  ;;  %v4437_v6 = vcombine.low %v194_v1, %v198_v2  ;;  %v202_v7 = vld [vmem:[%s6550_s3 + $0x40] sm:$0xff]  ;;  %v4458_v9 = vcombine.high %v181_v3, %v185_v5  ;;  %v4457_v10 = vcombine.low %v181_v3, %v185_v5  ;;  %v189_v12 = vld [vmem:[#allocation7 + $0x40] sm:$0xff]  ;;  %v199_v16 = vld [vmem:[%s6550_s3 + $0x28] sm:$0xff] }
  0xb7   :  { %v206_v8 = vld [vmem:[%s6550_s3 + $0x60] sm:$0xff]  ;;  %v4466_v14 = vcombine.high %v189_v12, %v189_v12  ;;  %v4465_v15 = vcombine.low %v189_v12, %v189_v12  ;;  %v178_v18 = vld [vmem:[#allocation5] sm:$0xff]  ;;  %v4440_v19 = vcombine.high %v195_v13, %v199_v16  ;;  %v4439_v28 = vcombine.low %v195_v13, %v199_v16  ;;  %v196_v32 = vld [vmem:[%s6550_s3 + $0x10] sm:$0xff] }
  0xb8   :  { %v4446_v11 = vcombine.high %v202_v7, %v206_v8  ;;  %294 = vmatprep.subr.bf16.mxu1 %v4438_v4  ;;  %547 = vmatprep.subr.bf16.mxu0 %v4458_v9  ;;  %v4445_v17 = vcombine.low %v202_v7, %v206_v8  ;;  %v179_v20 = vld [vmem:[#allocation2] sm:$0xff]  ;;  %v203_v24 = vld [vmem:[%s6550_s3 + $0x48] sm:$0xff]  ;;  %v6094_v27 = vpack.c.bf16 %v178_v18, %v178_v18  ;;  %v200_v33 = vld [vmem:[%s6550_s3 + $0x30] sm:$0xff] }
  0xb9   :  { %295 = vmatpush1.bf16.msra.mxu1 %v4437_v6  ;;  %548 = vmatpush1.bf16.msra.mxu0 %v4457_v10  ;;  %v183_v21 = vld [vmem:[#allocation7 + $0x10] sm:$0xff]  ;;  %v524_v23 = vsel %vm522_vm0, %v4465_v15, 0  ;;  %v207_v25 = vld [vmem:[%s6550_s3 + $0x68] sm:$0xff]  ;;  %v6096_v29 = vpack.c.bf16 %v179_v20, %v179_v20  ;;  %v204_v38 = vld [vmem:[%s6550_s3 + $0x50] sm:$0xff]  ;;  %v4442_v40 = vcombine.high %v196_v32, %v200_v33  ;;  %v4441_v42 = vcombine.low %v196_v32, %v200_v33 }
  0xba   :  { %296 = vmatprep.subr.bf16.mxu1 %v4446_v11  ;;  %v187_v22 = vld [vmem:[#allocation7 + $0x30] sm:$0xff]  ;;  %4473 = vmatprep.subr.msk.bf16.mxu0 %vm522_vm0, %v4466_v14  ;;  %v4448_v31 = vcombine.high %v203_v24, %v207_v25  ;;  %v4447_v37 = vcombine.low %v203_v24, %v207_v25  ;;  %v208_v39 = vld [vmem:[%s6550_s3 + $0x70] sm:$0xff]  ;;  %v197_v43 = vld [vmem:[%s6550_s3 + $0x18] sm:$0xff] }
  0xbb   :  { %v4462_v26 = vcombine.high %v183_v21, %v187_v22  ;;  %v191_v30 = vld [vmem:[#allocation7 + $0x50] sm:$0xff]  ;;  %v4461_v34 = vcombine.low %v183_v21, %v187_v22  ;;  %v201_v44 = vld [vmem:[%s6550_s3 + $0x38] sm:$0xff]  ;;  %v4450_v45 = vcombine.high %v204_v38, %v208_v39  ;;  %v4449_v46 = vcombine.low %v204_v38, %v208_v39  ;;  %v184_v58 = vld [vmem:[#allocation7 + $0x18] sm:$0xff] }
  0xbc   :  { %v4470_v35 = vcombine.high %v191_v30, %v191_v30  ;;  %v4469_v36 = vcombine.low %v191_v30, %v191_v30  ;;  %v205_v47 = vld [vmem:[%s6550_s3 + $0x58] sm:$0xff]  ;;  %v4444_v49 = vcombine.high %v197_v43, %v201_v44  ;;  %v4443_v50 = vcombine.low %v197_v43, %v201_v44  ;;  %v188_v59 = vld [vmem:[#allocation7 + $0x38] sm:$0xff]  ;;  %v4963_v6 = vld [vmem:[#allocation8] ss:$16 sps:$4 sm:$0xff]  }
  0xbd   :  { %297 = vmatpush1.bf16.msra.mxu1 %v4445_v17  ;;  %550 = vmatpush1.bf16.msra.mxu0 %v524_v23  ;;  %v209_v48 = vld [vmem:[%s6550_s3 + $0x78] sm:$0xff]  ;;  %v192_v62 = vld [vmem:[#allocation7 + $0x58] sm:$0xff]  ;;  %v4464_v1 = vcombine.high %v184_v58, %v188_v59  ;;  %v4463_v2 = vcombine.low %v184_v58, %v188_v59  ;;  %v4965_v7 = vld [vmem:[#allocation8 + $0x4] ss:$16 sps:$4 sm:$0xff]  }
  0xbe   :  { %335 = vmatprep.subr.bf16.mxu1 %v4440_v19  ;;  %629 = vmatprep.subr.bf16.mxu0 %v4462_v26  ;;  %v536_v41 = vsel %vm522_vm0, %v4469_v36, 0  ;;  %v182_v51 = vld [vmem:[#allocation7 + $0x8] sm:$0xff]  ;;  %v4452_v53 = vcombine.high %v205_v47, %v209_v48  ;;  %v4451_v54 = vcombine.low %v205_v47, %v209_v48  ;;  %v4472_v3 = vcombine.high %v192_v62, %v192_v62  ;;  %v4971_v10 = vld [vmem:[#allocation8 + $0x24] ss:$16 sps:$4 sm:$0xff]   ;;  %v4969_v12 = vld [vmem:[#allocation8 + $0x20] ss:$16 sps:$4 sm:$0xff]  }
  0xbf   :  { %v186_v52 = vld [vmem:[#allocation7 + $0x28] sm:$0xff]  ;;  %v4471_v4 = vcombine.low %v192_v62, %v192_v62  ;;  %v4977_v13 = vld [vmem:[#allocation8 + $0x44] ss:$16 sps:$4 sm:$0xff]   ;;  %v4975_v15 = vld [vmem:[#allocation8 + $0x40] ss:$16 sps:$4 sm:$0xff]  }
  0xc0   :  { %4453 = vmatmul.mubr.msk.bf16.vlgmr.msra.gmra.mrb[0].mxu1 %vm290_vm1, %v6094_v27  ;;  %4474 = vmatmul.mubr.msk.bf16.vlgmr.msra.gmra.mrb[0].mxu0 %vm518_vm2, %v6096_v29  ;;  %v190_v55 = vld [vmem:[#allocation7 + $0x48] sm:$0xff]  ;;  %v4460_v56 = vcombine.high %v182_v51, %v186_v52  ;;  %v4459_v57 = vcombine.low %v182_v51, %v186_v52  ;;  %v4983_v17 = vld [vmem:[#allocation8 + $0x64] ss:$16 sps:$4 sm:$0xff]   ;;  %v4981_v19 = vld [vmem:[#allocation8 + $0x60] ss:$16 sps:$4 sm:$0xff]   ;;  %v719_v52 = vlaneseq }
  0xc1   :  { %336 = vmatpush1.bf16.msra.mxu1 %v4439_v28  ;;  %367 = vmatprep.mubr.bf16.mxu1 %v5841_v0  ;;  %v4468_v60 = vcombine.high %v190_v55, %v190_v55  ;;  %v4467_v61 = vcombine.low %v190_v55, %v190_v55  ;;  %v542_v5 = vsel %vm522_vm0, %v4471_v4, 0  ;;  %v4966_v8 = vld [vmem:[#allocation8 + $0x8] ss:$16 sps:$4 sm:$0xff]   ;;  %v4968_v9 = vld [vmem:[#allocation8 + $0xc] ss:$16 sps:$4 sm:$0xff]  }
  0xc2   :  { %337 = vmatprep.subr.bf16.mxu1 %v4448_v31  ;;  %630 = vmatpush1.bf16.msra.mxu0 %v4461_v34  ;;  %v4974_v11 = vld [vmem:[#allocation8 + $0x2c] ss:$16 sps:$4 sm:$0xff]   ;;  %v4978_v16 = vld [vmem:[#allocation8 + $0x48] ss:$16 sps:$4 sm:$0xff]   ;;  %v4989_v21 = vld [vmem:[#allocation8 + $0x84] ss:$16 sps:$4 sm:$0xff]  }
  0xc3   :  { %661 = vmatprep.mubr.bf16.mxu0 %v5841_v0  ;;  %4477 = vmatprep.subr.msk.bf16.mxu0 %vm522_vm0, %v4470_v35  ;;  %v530_v63 = vsel %vm522_vm0, %v4467_v61, 0  ;;  %v4980_v14 = vld [vmem:[#allocation8 + $0x4c] ss:$16 sps:$4 sm:$0xff]   ;;  %v4984_v20 = vld [vmem:[#allocation8 + $0x68] ss:$16 sps:$4 sm:$0xff]   ;;  %v6150_v59 = vshrl.u32 %v719_v52, 7 }
  0xc4   :  { %v4986_v18 = vld [vmem:[#allocation8 + $0x6c] ss:$16 sps:$4 sm:$0xff]   ;;  %v4987_v23 = vld [vmem:[#allocation8 + $0x80] ss:$16 sps:$4 sm:$0xff]   ;;  %v4990_v24 = vld [vmem:[#allocation8 + $0x88] ss:$16 sps:$4 sm:$0xff]  }
  0xc5   :  { %338 = vmatpush1.bf16.msra.mxu1 %v4447_v37  ;;  %v4992_v22 = vld [vmem:[#allocation8 + $0x8c] ss:$16 sps:$4 sm:$0xff]   ;;  %v4995_v25 = vld [vmem:[#allocation8 + $0xa4] ss:$16 sps:$4 sm:$0xff]   ;;  %v4996_v28 = vld [vmem:[#allocation8 + $0xa8] ss:$16 sps:$4 sm:$0xff]  }
  0xc6   :  { %376 = vmatprep.subr.bf16.mxu1 %v4442_v40  ;;  %632 = vmatpush1.bf16.msra.mxu0 %v536_v41  ;;  %v4998_v26 = vld [vmem:[#allocation8 + $0xac] ss:$16 sps:$4 sm:$0xff]   ;;  %v4999_v31 = vld [vmem:[#allocation8 + $0xc0] ss:$16 sps:$4 sm:$0xff]   ;;  %v5002_v32 = vld [vmem:[#allocation8 + $0xc8] ss:$16 sps:$4 sm:$0xff]  }
  0xc7   :  { %2599 = vmatprep.subr.bf16.mxu0 %v4965_v7  ;;  %v5004_v30 = vld [vmem:[#allocation8 + $0xcc] ss:$16 sps:$4 sm:$0xff]   ;;  %v5007_v33 = vld [vmem:[#allocation8 + $0xe4] ss:$16 sps:$4 sm:$0xff]   ;;  %v5005_v35 = vld [vmem:[#allocation8 + $0xe0] ss:$16 sps:$4 sm:$0xff]  }
  0xc8   :  { %4454 = vmatmul.mubr.msk.bf16.vlgmr.msra.gmra.mrb[4].mxu1 %vm290_vm1, %v6094_v27  ;;  %v5010_v34 = vld [vmem:[#allocation8 + $0xec] ss:$16 sps:$4 sm:$0xff]   ;;  %v5008_v36 = vld [vmem:[#allocation8 + $0xe8] ss:$16 sps:$4 sm:$0xff]   ;;  %v5013_v37 = vld [vmem:[#allocation8 + $0x104] ss:$16 sps:$4 sm:$0xff]  }
  0xc9   :  { %377 = vmatpush1.bf16.msra.mxu1 %v4441_v42  ;;  %408 = vmatprep.mubr.bf16.mxu1 %v5841_v0  ;;  %v5016_v38 = vld [vmem:[#allocation8 + $0x10c] ss:$16 sps:$4 sm:$0xff]   ;;  %v5011_v39 = vld [vmem:[#allocation8 + $0x100] ss:$16 sps:$4 sm:$0xff]   ;;  %v5014_v40 = vld [vmem:[#allocation8 + $0x108] ss:$16 sps:$4 sm:$0xff]  }
  0xca   :  { %378 = vmatprep.subr.bf16.mxu1 %v4450_v45  ;;  %4478 = vmatmul.mubr.msk.bf16.vlgmr.msra.gmra.mrb[4].mxu0 %vm518_vm2, %v6096_v29  ;;  %v6153_v62 = vsub.s32 0, %v6150_v59 }
  0xcb   :  { %2600 = vmatpush1.bf16.msra.mxu0 %v4963_v6 }
  0xcc   :  { %2601 = vmatprep.subr.bf16.mxu0 %v4971_v10  ;;  %v6170_v10 = vld [vmem:[%s6551_s4 + $0x8] sm:$0x77] }
  0xcd   :  { %379 = vmatpush1.bf16.msra.mxu1 %v4449_v46 }
  0xce   :  { %417 = vmatprep.subr.bf16.mxu1 %v4444_v49 }
  0xcf   :  { %2602 = vmatpush1.bf16.msra.mxu0 %v4969_v12 }
  0xd0   :  { %4455 = vmatmul.mubr.msk.bf16.vlgmr.msra.gmra.mrb[8].mxu1 %vm290_vm1, %v6094_v27  ;;  %2603 = vmatprep.subr.bf16.mxu0 %v4977_v13  ;;  %v6177_v13 = vld [vmem:[%s6551_s4 + $0x10] sm:$0x77] }
  0xd1   :  { %418 = vmatpush1.bf16.msra.mxu1 %v4443_v50  ;;  %449 = vmatprep.mubr.bf16.mxu1 %v5841_v0 }
  0xd2   :  { %419 = vmatprep.subr.bf16.mxu1 %v4452_v53 }
  0xd3   :  { %2604 = vmatpush1.bf16.msra.mxu0 %v4975_v15 }
  0xd4   :  { %2605 = vmatprep.subr.bf16.mxu0 %v4983_v17 }
  0xd5   :  { %420 = vmatpush1.bf16.msra.mxu1 %v4451_v54 }
  0xd6   :  { %588 = vmatprep.subr.bf16.mxu1 %v4460_v56 }
  0xd7   :  { %2606 = vmatpush1.bf16.msra.mxu0 %v4981_v19 }
  0xd8   :  { %4456 = vmatmul.mubr.msk.bf16.vlgmr.msra.gmra.mrb[12].mxu1 %vm290_vm1, %v6094_v27  ;;  %2607 = vmatprep.subr.bf16.mxu0 %v4989_v21  ;;  %v4993_v27 = vld [vmem:[#allocation8 + $0xa0] ss:$16 sps:$4 sm:$0xff]  }
  0xd9   :  { %589 = vmatpush1.bf16.msra.mxu1 %v4459_v57  ;;  %620 = vmatprep.mubr.bf16.mxu1 %v5841_v0 }
  0xda   :  { %4475 = vmatprep.subr.msk.bf16.mxu1 %vm522_vm0, %v4468_v60 }
  0xdb   :  { %2608 = vmatpush1.bf16.msra.mxu0 %v4987_v23 }
  0xdc   :  { %2609 = vmatprep.subr.bf16.mxu0 %v4995_v25  ;;  %v6196_v25 = vld [vmem:[%s6551_s4 + $0x18] sm:$0x77] }
  0xdd   :  { %591 = vmatpush1.bf16.msra.mxu1 %v530_v63  ;;  %v6156_v63 = vsub.s32 4, %v6150_v59 }
  0xde   :  { %670 = vmatprep.subr.bf16.mxu1 %v4464_v1 }
  0xdf   :  { %2610 = vmatpush1.bf16.msra.mxu0 %v4993_v27  ;;  %v734_v17 = vrot.slane %v6170_v10, %v6156_v63  ;;  %v742_v21 = vrot.slane %v6177_v13, %v6156_v63 }
  0xe0   :  { %4476 = vmatmul.mubr.msk.bf16.vlgmr.msra.gmra.mrb[16].mxu1 %vm518_vm2, %v6096_v29 }
  0xe1   :  { %671 = vmatpush1.bf16.msra.mxu1 %v4463_v2  ;;  %702 = vmatprep.mubr.bf16.mxu1 %v5841_v0  ;;  %v4972_v0 = vld [vmem:[#allocation8 + $0x28] ss:$16 sps:$4 sm:$0xff]  }
  0xe2   :  { %4479 = vmatprep.subr.msk.bf16.mxu1 %vm522_vm0, %v4472_v3  ;;  %v6161_v3 = vld [vmem:[%s6551_s4] sm:$0x77] }
  0xe3   :  { %v722_v7 = vrot.slane %v6161_v3, %v6153_v62 }
  0xe5   :  { %673 = vmatpush1.bf16.msra.mxu1 %v542_v5 }
  0xe6   :  { %2763 = vmatprep.subr.bf16.mxu1 %v4968_v9 }
  0xe8   :  { %4480 = vmatmul.mubr.msk.bf16.vlgmr.msra.gmra.mrb[20].mxu1 %vm518_vm2, %v6096_v29  ;;  %v5001_v29 = vld [vmem:[#allocation8 + $0xc4] ss:$16 sps:$4 sm:$0xff]  }
  0xe9   :  { %2764 = vmatpush1.bf16.msra.mxu1 %v4966_v8  ;;  %2611 = vmatprep.subr.bf16.mxu0 %v5001_v29  ;;  %v726_v8 = vrot.slane %v6161_v3, %v6156_v63 }
  0xea   :  { %2765 = vmatprep.subr.bf16.mxu1 %v4974_v11  ;;  %2612 = vmatpush1.bf16.msra.mxu0 %v4999_v31  ;;  %v762_v11 = vrot.slane %v722_v7, %v6153_v62 }
  0xeb   :  { %2613 = vmatprep.subr.bf16.mxu0 %v5007_v33  ;;  %v766_v12 = vrot.slane %v726_v8, %v6153_v62 }
  0xed   :  { %2766 = vmatpush1.bf16.msra.mxu1 %v4972_v0 }
  0xee   :  { %2767 = vmatprep.subr.bf16.mxu1 %v4980_v14  ;;  %2614 = vmatpush1.bf16.msra.mxu0 %v5005_v35 }
  0xef   :  { %2615 = vmatprep.subr.bf16.mxu0 %v5013_v37  ;;  %v746_v37 = vrot.slane %v6196_v25, %v6153_v62 }
  0xf1   :  { %2768 = vmatpush1.bf16.msra.mxu1 %v4978_v16  ;;  %v730_v16 = vrot.slane %v6170_v10, %v6153_v62 }
  0xf2   :  { %2769 = vmatprep.subr.bf16.mxu1 %v4986_v18  ;;  %2616 = vmatpush1.bf16.msra.mxu0 %v5011_v39  ;;  %v750_v39 = vrot.slane %v6196_v25, %v6156_v63 }
  0xf5   :  { %2770 = vmatpush1.bf16.msra.mxu1 %v4984_v20  ;;  %v738_v20 = vrot.slane %v6177_v13, %v6153_v62 }
  0xf6   :  { %2771 = vmatprep.subr.bf16.mxu1 %v4992_v22  ;;  %v770_v22 = vrot.slane %v730_v16, %v6153_v62  ;;  %v5022_v16 = vld [vmem:[#allocation8 + $0x12c] ss:$16 sps:$4 sm:$0xff]  }
  0xf9   :  { %2772 = vmatpush1.bf16.msra.mxu1 %v4990_v24  ;;  %v774_v24 = vrot.slane %v734_v17, %v6153_v62  ;;  %v5025_v17 = vld [vmem:[#allocation8 + $0x144] ss:$16 sps:$4 sm:$0xff]  }
  0xfa   :  { %2773 = vmatprep.subr.bf16.mxu1 %v4998_v26 }
  0xfd   :  { %2774 = vmatpush1.bf16.msra.mxu1 %v4996_v28  ;;  %v778_v28 = vrot.slane %v738_v20, %v6153_v62  ;;  %v5028_v20 = vld [vmem:[#allocation8 + $0x14c] ss:$16 sps:$4 sm:$0xff]  }
  0xfe   :  { %2775 = vmatprep.subr.bf16.mxu1 %v5004_v30 }
 0x101   :  { %2776 = vmatpush1.bf16.msra.mxu1 %v5002_v32 }
 0x102   :  { %2777 = vmatprep.subr.bf16.mxu1 %v5010_v34  ;;  %v782_v34 = vrot.slane %v742_v21, %v6153_v62  ;;  %v5023_v21 = vld [vmem:[#allocation8 + $0x140] ss:$16 sps:$4 sm:$0xff]  }
 0x105   :  { %2778 = vmatpush1.bf16.msra.mxu1 %v5008_v36 }
 0x106   :  { %2779 = vmatprep.subr.bf16.mxu1 %v5016_v38 }
 0x109   :  { %2780 = vmatpush1.bf16.msra.mxu1 %v5014_v40 }
 0x10a   :  { %2781 = vmatprep.subr.bf16.mxu1 %v5022_v16 }
 0x193   :  { %v328_v41 = vpop.f32.mrb[0].mxu1  ;;  %v581_v42 = vpop.f32.mrb[0].mxu0 }
 0x194   :  { %v330_v43 = vpop.f32.mrb[1].mxu1  ;;  %v582_v44 = vadd.f32 %v581_v42, %v328_v41  ;;  %v583_v45 = vpop.f32.mrb[1].mxu0 }
 0x195   :  { %v332_v46 = vpop.f32.mrb[2].mxu1  ;;  %v584_v47 = vadd.f32 %v583_v45, %v330_v43  ;;  %v585_v49 = vpop.f32.mrb[2].mxu0 }
 0x196   :  { %v333_v48 = vpop.f32.mrb[3].mxu1  ;;  %v586_v50 = vpop.f32.mrb[3].mxu0  ;;  %v6183_v18 = vadd.f32 %v762_v11, %v582_v44 }
 0x197   :  { %v6185_v19 = vadd.f32 %v766_v12, %v584_v47  ;;  %v786_v48 = vrot.slane %v746_v37, %v6153_v62  ;;  %v790_v50 = vrot.slane %v750_v39, %v6153_v62  ;;  %v5049_v37 = vld [vmem:[#allocation8 + $0x1c4] ss:$16 sps:$4 sm:$0xff]   ;;  %v5052_v39 = vld [vmem:[#allocation8 + $0x1cc] ss:$16 sps:$4 sm:$0xff]  }
 0x198   :  { %v808_v26 = vmul.f32 %v6183_v18, %v6183_v18 }
 0x199   :  { %v809_v27 = vmul.f32 %v6185_v19, %v6185_v19  ;;  %v799_v33 = vadd.f32 %v6185_v19, %v6183_v18 }
 0x19b   :  { %v369_v51 = vpop.f32.mrb[4].mxu1  ;;  %v816_v40 = vadd.f32 %v809_v27, %v808_v26  ;;  %v5032_v26 = vld [vmem:[#allocation8 + $0x168] ss:$16 sps:$4 sm:$0xff]   ;;  %v5034_v27 = vld [vmem:[#allocation8 + $0x16c] ss:$16 sps:$4 sm:$0xff]  }
 0x19c   :  { %v371_v53 = vpop.f32.mrb[5].mxu1 }
 0x19d   :  { %v373_v54 = vpop.f32.mrb[6].mxu1  ;;  %v663_v55 = vpop.f32.mrb[4].mxu0 }
 0x19e   :  { %v374_v56 = vpop.f32.mrb[7].mxu1  ;;  %v665_v57 = vpop.f32.mrb[5].mxu0 }
 0x19f   :  { %v667_v58 = vpop.f32.mrb[6].mxu0 }
 0x1a0   :  { %v668_v60 = vpop.f32.mrb[7].mxu0 }
 0x1a3   :  { %v410_v61 = vpop.f32.mrb[8].mxu1 }
 0x1a4   :  { %v664_v1 = vadd.f32 %v663_v55, %v410_v61  ;;  %v412_v2 = vpop.f32.mrb[9].mxu1 }
 0x1a5   :  { %v666_v4 = vadd.f32 %v665_v57, %v412_v2  ;;  %v414_v5 = vpop.f32.mrb[10].mxu1 }
 0x1a6   :  { %v415_v6 = vpop.f32.mrb[11].mxu1  ;;  %v6214_v41 = vadd.f32 %v778_v28, %v664_v1  ;;  %v5037_v28 = vld [vmem:[#allocation8 + $0x184] ss:$16 sps:$4 sm:$0xff]  }
 0x1a7   :  { %v6221_v45 = vadd.f32 %v782_v34, %v666_v4  ;;  %v5041_v34 = vld [vmem:[#allocation8 + $0x1a0] ss:$16 sps:$4 sm:$0xff]  }
 0x1a9   :  { %v813_v58 = vmul.f32 %v6221_v45, %v6221_v45 }
 0x1ab   :  { %v451_v9 = vpop.f32.mrb[12].mxu1 }
 0x1ac   :  { %v453_v0 = vpop.f32.mrb[13].mxu1 }
 0x1ad   :  { %v455_v14 = vpop.f32.mrb[14].mxu1 }
 0x1ae   :  { %v456_v15 = vpop.f32.mrb[15].mxu1  ;;  %v5019_v14 = vld [vmem:[#allocation8 + $0x124] ss:$16 sps:$4 sm:$0xff]  }
 0x1af   :  { %v5020_v15 = vld [vmem:[#allocation8 + $0x128] ss:$16 sps:$4 sm:$0xff]   ;;  %2617 = vmatprep.subr.bf16.mxu0 %v5019_v14 }
 0x1b0   :  { %2782 = vmatpush1.bf16.msra.mxu1 %v5020_v15 }
 0x1b1   :  { %2783 = vmatprep.subr.bf16.mxu1 %v5028_v20 }
 0x1b3   :  { %v622_v23 = vpop.f32.mrb[16].mxu1 }
 0x1b4   :  { %v623_v29 = vadd.f32 %v622_v23, %v369_v51  ;;  %v624_v30 = vpop.f32.mrb[17].mxu1  ;;  %v812_v51 = vmul.f32 %v6214_v41, %v6214_v41  ;;  %v5029_v23 = vld [vmem:[#allocation8 + $0x160] ss:$16 sps:$4 sm:$0xff]  }
 0x1b5   :  { %v625_v31 = vadd.f32 %v624_v30, %v371_v53  ;;  %v626_v32 = vpop.f32.mrb[18].mxu1  ;;  %v5035_v30 = vld [vmem:[#allocation8 + $0x180] ss:$16 sps:$4 sm:$0xff]  }
 0x1b6   :  { %v6206_v35 = vadd.f32 %v770_v22, %v623_v29  ;;  %v627_v36 = vpop.f32.mrb[19].mxu1  ;;  %v5026_v22 = vld [vmem:[#allocation8 + $0x148] ss:$16 sps:$4 sm:$0xff]   ;;  %v5040_v29 = vld [vmem:[#allocation8 + $0x18c] ss:$16 sps:$4 sm:$0xff]  }
 0x1b7   :  { %v6210_v38 = vadd.f32 %v774_v24, %v625_v31  ;;  %2784 = vmatpush1.bf16.msra.mxu1 %v5026_v22  ;;  %v5031_v24 = vld [vmem:[#allocation8 + $0x164] ss:$16 sps:$4 sm:$0xff]   ;;  %v5038_v31 = vld [vmem:[#allocation8 + $0x188] ss:$16 sps:$4 sm:$0xff]  }
 0x1b8   :  { %v800_v42 = vadd.f32 %v799_v33, %v6206_v35  ;;  %v810_v43 = vmul.f32 %v6206_v35, %v6206_v35  ;;  %2785 = vmatprep.subr.bf16.mxu1 %v5034_v27  ;;  %v5043_v32 = vld [vmem:[#allocation8 + $0x1a4] ss:$16 sps:$4 sm:$0xff]   ;;  %v5046_v33 = vld [vmem:[#allocation8 + $0x1ac] ss:$16 sps:$4 sm:$0xff]   ;;  %v5044_v36 = vld [vmem:[#allocation8 + $0x1a8] ss:$16 sps:$4 sm:$0xff]  }
 0x1b9   :  { %v811_v44 = vmul.f32 %v6210_v38, %v6210_v38 }
 0x1ba   :  { %v817_v46 = vadd.f32 %v816_v40, %v810_v43  ;;  %v801_v47 = vadd.f32 %v800_v42, %v6210_v38  ;;  %v5047_v40 = vld [vmem:[#allocation8 + $0x1c0] ss:$16 sps:$4 sm:$0xff]   ;;  %v5050_v42 = vld [vmem:[#allocation8 + $0x1c8] ss:$16 sps:$4 sm:$0xff]   ;;  %v5055_v43 = vld [vmem:[#allocation8 + $0x1e4] ss:$16 sps:$4 sm:$0xff]  }
 0x1bb   :  { %v704_v49 = vpop.f32.mrb[20].mxu1  ;;  %2786 = vmatpush1.bf16.msra.mxu1 %v5032_v26 }
 0x1bc   :  { %v818_v52 = vadd.f32 %v817_v46, %v811_v44  ;;  %v705_v53 = vadd.f32 %v704_v49, %v451_v9  ;;  %v706_v54 = vpop.f32.mrb[21].mxu1  ;;  %v802_v55 = vadd.f32 %v801_v47, %v6214_v41  ;;  %2787 = vmatprep.subr.bf16.mxu1 %v5040_v29  ;;  %v5058_v44 = vld [vmem:[#allocation8 + $0x1ec] ss:$16 sps:$4 sm:$0xff]   ;;  %v5053_v46 = vld [vmem:[#allocation8 + $0x1e0] ss:$16 sps:$4 sm:$0xff]  }
 0x1bd   :  { %v707_v56 = vadd.f32 %v706_v54, %v453_v0  ;;  %v708_v57 = vpop.f32.mrb[22].mxu1  ;;  %v5017_v0 = vld [vmem:[#allocation8 + $0x120] ss:$16 sps:$4 sm:$0xff]   ;;  %v5056_v47 = vld [vmem:[#allocation8 + $0x1e8] ss:$16 sps:$4 sm:$0xff]  }
 0x1be   :  { %v6231_v60 = vadd.f32 %v786_v48, %v705_v53  ;;  %v709_v61 = vpop.f32.mrb[23].mxu1  ;;  %v803_v1 = vadd.f32 %v802_v55, %v6221_v45  ;;  %v819_v2 = vadd.f32 %v818_v52, %v812_v51  ;;  %2618 = vmatpush1.bf16.msra.mxu0 %v5017_v0  ;;  %v5061_v48 = vld [vmem:[#allocation8 + $0x204] ss:$16 sps:$4 sm:$0xff]   ;;  %v5064_v49 = vld [vmem:[#allocation8 + $0x20c] ss:$16 sps:$4 sm:$0xff]   ;;  %v6243_v57 = vsub.s32 1, %v6150_v59 }
 0x1bf   :  { %v6234_v4 = vadd.f32 %v790_v50, %v707_v56  ;;  %2619 = vmatprep.subr.bf16.mxu0 %v5025_v17  ;;  %2788 = vmatpush1.bf16.msra.mxu1 %v5038_v31  ;;  %v6249_v61 = vsub.s32 2, %v6150_v59 }
 0x1c0   :  { %v804_v5 = vadd.f32 %v803_v1, %v6231_v60  ;;  %v814_v6 = vmul.f32 %v6231_v60, %v6231_v60  ;;  %v820_v7 = vadd.f32 %v819_v2, %v813_v58  ;;  %2789 = vmatprep.subr.bf16.mxu1 %v5046_v33  ;;  %v6246_v58 = vsub.s32 5, %v6150_v59 }
 0x1c1   :  { %v815_v9 = vmul.f32 %v6234_v4, %v6234_v4  ;;  %v6252_v1 = vsub.s32 6, %v6150_v59 }
 0x1c2   :  { %v805_v8 = vadd.f32 %v804_v5, %v6234_v4  ;;  %v821_v11 = vadd.f32 %v820_v7, %v814_v6  ;;  %2620 = vmatpush1.bf16.msra.mxu0 %v5023_v21  ;;  %v854_v2 = vrot.slane %v6161_v3, %v6246_v58  ;;  %v850_v5 = vrot.slane %v6161_v3, %v6243_v57 }
 0x1c3   :  { %2621 = vmatprep.subr.bf16.mxu0 %v5031_v24  ;;  %2790 = vmatpush1.bf16.msra.mxu1 %v5044_v36  ;;  %v934_v6 = vrot.slane %v6161_v3, %v6252_v1  ;;  %v930_v7 = vrot.slane %v6161_v3, %v6249_v61 }
 0x1c4   :  { %806 = vadd.xlane.f32.xlu0 %v805_v8  ;;  %v822_v12 = vadd.f32 %v821_v11, %v815_v9  ;;  %2791 = vmatprep.subr.bf16.mxu1 %v5052_v39  ;;  %v862_v8 = vrot.slane %v6170_v10, %v6246_v58  ;;  %v942_v9 = vrot.slane %v6170_v10, %v6252_v1  ;;  %v5059_v39 = vld [vmem:[#allocation8 + $0x200] ss:$16 sps:$4 sm:$0xff]  }
 0x1c5   :  { %v894_v59 = vrot.slane %v854_v2, %v6243_v57  ;;  %v890_v11 = vrot.slane %v850_v5, %v6243_v57  ;;  %v970_v0 = vrot.slane %v930_v7, %v6249_v61  ;;  %v5085_v2 = vld [vmem:[#allocation8 + $0x284] ss:$16 sps:$4 sm:$0xff]   ;;  %v5088_v5 = vld [vmem:[#allocation8 + $0x28c] ss:$16 sps:$4 sm:$0xff]   ;;  %v5086_v7 = vld [vmem:[#allocation8 + $0x288] ss:$16 sps:$4 sm:$0xff]  }
 0x1c6   :  { %2622 = vmatpush1.bf16.msra.mxu0 %v5029_v23  ;;  %v902_v14 = vrot.slane %v862_v8, %v6243_v57  ;;  %v982_v15 = vrot.slane %v942_v9, %v6249_v61  ;;  %v5091_v8 = vld [vmem:[#allocation8 + $0x2a4] ss:$16 sps:$4 sm:$0xff]   ;;  %v5094_v9 = vld [vmem:[#allocation8 + $0x2ac] ss:$16 sps:$4 sm:$0xff]  }
 0x1c7   :  { %2623 = vmatprep.subr.bf16.mxu0 %v5037_v28  ;;  %2792 = vmatpush1.bf16.msra.mxu1 %v5050_v42 }
 0x1c8   :  { %823 = vadd.xlane.f32.xlu0 %v822_v12  ;;  %2793 = vmatprep.subr.bf16.mxu1 %v5058_v44  ;;  %v974_v12 = vrot.slane %v934_v6, %v6249_v61  ;;  %v5070_v44 = vld [vmem:[#allocation8 + $0x22c] ss:$16 sps:$4 sm:$0xff]   ;;  %v5083_v6 = vld [vmem:[#allocation8 + $0x280] ss:$16 sps:$4 sm:$0xff]  }
 0x1ca   :  { %2624 = vmatpush1.bf16.msra.mxu0 %v5035_v30 }
 0x1cb   :  { %2625 = vmatprep.subr.bf16.mxu0 %v5043_v32  ;;  %2794 = vmatpush1.bf16.msra.mxu1 %v5056_v47  ;;  %v5065_v47 = vld [vmem:[#allocation8 + $0x220] ss:$16 sps:$4 sm:$0xff]  }
 0x1cc   :  { %2804 = vmatprep.subr.bf16.mxu1 %v5064_v49  ;;  %v5073_v49 = vld [vmem:[#allocation8 + $0x244] ss:$16 sps:$4 sm:$0xff]  }
 0x1ce   :  { %2626 = vmatpush1.bf16.msra.mxu0 %v5041_v34 }
 0x1cf   :  { %2627 = vmatprep.subr.bf16.mxu0 %v5049_v37 }
 0x1d2   :  { %2628 = vmatpush1.bf16.msra.mxu0 %v5047_v40  ;;  %v5062_v40 = vld [vmem:[#allocation8 + $0x208] ss:$16 sps:$4 sm:$0xff]  }
 0x1d3   :  { %2629 = vmatprep.subr.bf16.mxu0 %v5055_v43  ;;  %v5067_v43 = vld [vmem:[#allocation8 + $0x224] ss:$16 sps:$4 sm:$0xff]  }
 0x1d6   :  { %2630 = vmatpush1.bf16.msra.mxu0 %v5053_v46 }
 0x1d7   :  { %2640 = vmatprep.subr.bf16.mxu0 %v5061_v48  ;;  %v5068_v48 = vld [vmem:[#allocation8 + $0x228] ss:$16 sps:$4 sm:$0xff]  }
 0x251   :  { %v807_v50 = vpop.xlane.xlu0 %806 }
 0x252   :  { %v825_v51 = vmul.f32 0.0009765625, %v807_v50  ;;  %v5076_v50 = vld [vmem:[#allocation8 + $0x24c] ss:$16 sps:$4 sm:$0xff]  }
 0x254   :  { %v827_v53 = vmul.f32 %v825_v51, %v825_v51  ;;  %v830_v3 = vsub.f32 %v6185_v19, %v825_v51  ;;  %v829_v16 = vsub.f32 %v6183_v18, %v825_v51  ;;  %v832_v17 = vsub.f32 %v6210_v38, %v825_v51 }
 0x255   :  { %v824_v52 = vpop.xlane.xlu0 %823  ;;  %v831_v20 = vsub.f32 %v6206_v35, %v825_v51  ;;  %v834_v22 = vsub.f32 %v6221_v45, %v825_v51  ;;  %v833_v23 = vsub.f32 %v6214_v41, %v825_v51  ;;  %v836_v24 = vsub.f32 %v6234_v4, %v825_v51 }
 0x256   :  { %v826_v54 = vmul.f32 0.0009765625, %v824_v52  ;;  %v835_v26 = vsub.f32 %v6231_v60, %v825_v51  ;;  %v5071_v51 = vld [vmem:[#allocation8 + $0x240] ss:$16 sps:$4 sm:$0xff]   ;;  %v5074_v52 = vld [vmem:[#allocation8 + $0x248] ss:$16 sps:$4 sm:$0xff]  }
 0x258   :  { %v828_v55 = vsub.f32 %v826_v54, %v827_v53  ;;  %v5079_v53 = vld [vmem:[#allocation8 + $0x264] ss:$16 sps:$4 sm:$0xff]   ;;  %v5082_v54 = vld [vmem:[#allocation8 + $0x26c] ss:$16 sps:$4 sm:$0xff]  }
 0x25a   :  { %v837_v56 = vadd.f32 1e-05, %v828_v55  ;;  %v5077_v55 = vld [vmem:[#allocation8 + $0x260] ss:$16 sps:$4 sm:$0xff]  }
 0x25c   :  { %5555 = vrsqrt.f32 %v837_v56  ;;  %v5080_v56 = vld [vmem:[#allocation8 + $0x268] ss:$16 sps:$4 sm:$0xff]  }
 0x266   :  { %v5556_v21 = vpop.eup %5555 }
 0x267   :  { %v840_v27 = vmul.f32 %v5556_v21, %v830_v3  ;;  %v839_v28 = vmul.f32 %v5556_v21, %v829_v16  ;;  %v842_v29 = vmul.f32 %v5556_v21, %v832_v17  ;;  %v6280_v30 = vmul.f32 %v5556_v21, %v831_v20  ;;  %v5103_v3 = vld [vmem:[#allocation8 + $0x2e4] ss:$16 sps:$4 sm:$0xff]   ;;  %v5106_v16 = vld [vmem:[#allocation8 + $0x2ec] ss:$16 sps:$4 sm:$0xff]   ;;  %v5101_v17 = vld [vmem:[#allocation8 + $0x2e0] ss:$16 sps:$4 sm:$0xff]  }
 0x268   :  { %v6282_v19 = vmul.f32 %v5556_v21, %v834_v22  ;;  %v6284_v18 = vmul.f32 %v5556_v21, %v833_v23  ;;  %v6286_v38 = vmul.f32 %v5556_v21, %v836_v24  ;;  %v6288_v35 = vmul.f32 %v5556_v21, %v835_v26  ;;  %v5104_v20 = vld [vmem:[#allocation8 + $0x2e8] ss:$16 sps:$4 sm:$0xff]   ;;  %v5109_v21 = vld [vmem:[#allocation8 + $0x304] ss:$16 sps:$4 sm:$0xff]   ;;  %v5112_v22 = vld [vmem:[#allocation8 + $0x30c] ss:$16 sps:$4 sm:$0xff]  }
 0x269   :  { %v920_v45 = vmul.f32 %v894_v59, %v840_v27  ;;  %v919_v31 = vmul.f32 %v890_v11, %v839_v28  ;;  %v922_v41 = vmul.f32 %v902_v14, %v842_v29  ;;  %v5089_v59 = vld [vmem:[#allocation8 + $0x2a0] ss:$16 sps:$4 sm:$0xff]   ;;  %v5092_v11 = vld [vmem:[#allocation8 + $0x2a8] ss:$16 sps:$4 sm:$0xff]   ;;  %v5115_v26 = vld [vmem:[#allocation8 + $0x324] ss:$16 sps:$4 sm:$0xff]  }
 0x26a   :  { %v5095_v14 = vld [vmem:[#allocation8 + $0x2c0] ss:$16 sps:$4 sm:$0xff]   ;;  %v5110_v24 = vld [vmem:[#allocation8 + $0x308] ss:$16 sps:$4 sm:$0xff]   ;;  %v5118_v27 = vld [vmem:[#allocation8 + $0x32c] ss:$16 sps:$4 sm:$0xff]  }
 0x26b   :  { %v1000_v32 = vadd.f32 %v974_v12, %v920_v45  ;;  %v999_v4 = vadd.f32 %v970_v0, %v919_v31  ;;  %v1002_v33 = vadd.f32 %v982_v15, %v922_v41  ;;  %v5097_v12 = vld [vmem:[#allocation8 + $0x2c4] ss:$16 sps:$4 sm:$0xff]   ;;  %v5100_v0 = vld [vmem:[#allocation8 + $0x2cc] ss:$16 sps:$4 sm:$0xff]   ;;  %v5098_v15 = vld [vmem:[#allocation8 + $0x2c8] ss:$16 sps:$4 sm:$0xff]  }
 0x26c   :  { %v5107_v23 = vld [vmem:[#allocation8 + $0x300] ss:$16 sps:$4 sm:$0xff]   ;;  %v5116_v29 = vld [vmem:[#allocation8 + $0x328] ss:$16 sps:$4 sm:$0xff]   ;;  %v5121_v45 = vld [vmem:[#allocation8 + $0x344] ss:$16 sps:$4 sm:$0xff]  }
 0x26d   :  { %v1008_v60 = vmax.f32 %v1000_v32, 0.0  ;;  %v1007_v34 = vmax.f32 %v999_v4, 0.0  ;;  %v1010_v36 = vmax.f32 %v1002_v33, 0.0  ;;  %v5113_v28 = vld [vmem:[#allocation8 + $0x320] ss:$16 sps:$4 sm:$0xff]  }
 0x26e   :  { %v5124_v31 = vld [vmem:[#allocation8 + $0x34c] ss:$16 sps:$4 sm:$0xff]   ;;  %v5119_v41 = vld [vmem:[#allocation8 + $0x340] ss:$16 sps:$4 sm:$0xff]   ;;  %v5122_v32 = vld [vmem:[#allocation8 + $0x348] ss:$16 sps:$4 sm:$0xff]  }
 0x26f   :  { %v1016_v37 = vpack.c.bf16 %v1008_v60, %v1008_v60  ;;  %v1015_v42 = vpack.c.bf16 %v1007_v34, %v1007_v34  ;;  %v1018_v46 = vpack.c.bf16 %v1010_v36, %v1010_v36  ;;  %v5127_v4 = vld [vmem:[#allocation8 + $0x364] ss:$16 sps:$4 sm:$0xff]   ;;  %v5130_v33 = vld [vmem:[#allocation8 + $0x36c] ss:$16 sps:$4 sm:$0xff]   ;;  %v5125_v60 = vld [vmem:[#allocation8 + $0x360] ss:$16 sps:$4 sm:$0xff]  }
 0x270   :  { %v5128_v34 = vld [vmem:[#allocation8 + $0x368] ss:$16 sps:$4 sm:$0xff]   ;;  %v5133_v36 = vld [vmem:[#allocation8 + $0x384] ss:$16 sps:$4 sm:$0xff]  }
 0x271   :  { %2631 = vmatprep.mubr.bf16.mxu0 %v1016_v37  ;;  %2795 = vmatprep.mubr.bf16.mxu1 %v1016_v37  ;;  %v5136_v37 = vld [vmem:[#allocation8 + $0x38c] ss:$16 sps:$4 sm:$0xff]  }
 0x272   :  { %2632 = vmatmul.mubr.bf16.vlgmr.msra.gmra.mrb[8].mxu0 %v1015_v42  ;;  %2796 = vmatmul.mubr.bf16.vlgmr.msra.gmra.mrb[24].mxu1 %v1015_v42  ;;  %v5131_v42 = vld [vmem:[#allocation8 + $0x380] ss:$16 sps:$4 sm:$0xff]  }
 0x273   :  { %2641 = vmatpush1.bf16.msra.mxu0 %v5059_v39  ;;  %2805 = vmatpush1.bf16.msra.mxu1 %v5062_v40  ;;  %v858_v39 = vrot.slane %v6170_v10, %v6243_v57  ;;  %v870_v40 = vrot.slane %v6177_v13, %v6246_v58 }
 0x274   :  { %2672 = vmatprep.mubr.bf16.mxu0 %v1018_v46  ;;  %2836 = vmatprep.mubr.bf16.mxu1 %v1018_v46  ;;  %v5142_v46 = vld [vmem:[#allocation8 + $0x3ac] ss:$16 sps:$4 sm:$0xff]  }
 0x275   :  { %2642 = vmatprep.subr.bf16.mxu0 %v5067_v43  ;;  %2806 = vmatprep.subr.bf16.mxu1 %v5070_v44  ;;  %v5134_v43 = vld [vmem:[#allocation8 + $0x388] ss:$16 sps:$4 sm:$0xff]   ;;  %v5139_v44 = vld [vmem:[#allocation8 + $0x3a4] ss:$16 sps:$4 sm:$0xff]  }
 0x277   :  { %2643 = vmatpush1.bf16.msra.mxu0 %v5065_v47  ;;  %2807 = vmatpush1.bf16.msra.mxu1 %v5068_v48  ;;  %v898_v47 = vrot.slane %v858_v39, %v6243_v57  ;;  %v938_v48 = vrot.slane %v6170_v10, %v6249_v61  ;;  %v5188_v39 = vld [vmem:[#allocation8 + $0x4a8] ss:$16 sps:$4 sm:$0xff]  }
 0x278   :  { %2644 = vmatprep.subr.bf16.mxu0 %v5073_v49  ;;  %2808 = vmatprep.subr.bf16.mxu1 %v5076_v50  ;;  %v910_v49 = vrot.slane %v870_v40, %v6243_v57  ;;  %v950_v50 = vrot.slane %v6177_v13, %v6252_v1  ;;  %v5193_v40 = vld [vmem:[#allocation8 + $0x4c4] ss:$16 sps:$4 sm:$0xff]  }
 0x27a   :  { %v990_v10 = vrot.slane %v950_v50, %v6249_v61  ;;  %v5205_v50 = vld [vmem:[#allocation8 + $0x504] ss:$16 sps:$4 sm:$0xff]  }
 0x27b   :  { %2645 = vmatpush1.bf16.msra.mxu0 %v5071_v51  ;;  %2809 = vmatpush1.bf16.msra.mxu1 %v5074_v52  ;;  %v5137_v51 = vld [vmem:[#allocation8 + $0x3a0] ss:$16 sps:$4 sm:$0xff]   ;;  %v5140_v52 = vld [vmem:[#allocation8 + $0x3a8] ss:$16 sps:$4 sm:$0xff]  }
 0x27c   :  { %2646 = vmatprep.subr.bf16.mxu0 %v5079_v53  ;;  %2810 = vmatprep.subr.bf16.mxu1 %v5082_v54  ;;  %v5145_v53 = vld [vmem:[#allocation8 + $0x3c4] ss:$16 sps:$4 sm:$0xff]   ;;  %v5148_v54 = vld [vmem:[#allocation8 + $0x3cc] ss:$16 sps:$4 sm:$0xff]  }
 0x27f   :  { %2647 = vmatpush1.bf16.msra.mxu0 %v5077_v55  ;;  %2811 = vmatpush1.bf16.msra.mxu1 %v5080_v56  ;;  %v921_v55 = vmul.f32 %v898_v47, %v6280_v30  ;;  %v978_v56 = vrot.slane %v938_v48, %v6249_v61  ;;  %v5152_v30 = vld [vmem:[#allocation8 + $0x3e8] ss:$16 sps:$4 sm:$0xff]   ;;  %v5202_v47 = vld [vmem:[#allocation8 + $0x4ec] ss:$16 sps:$4 sm:$0xff]   ;;  %v5197_v48 = vld [vmem:[#allocation8 + $0x4e0] ss:$16 sps:$4 sm:$0xff]  }
 0x280   :  { %2648 = vmatprep.subr.bf16.mxu0 %v5085_v2  ;;  %2812 = vmatprep.subr.bf16.mxu1 %v5088_v5  ;;  %v924_v2 = vmul.f32 %v910_v49, %v6282_v19  ;;  %v5143_v5 = vld [vmem:[#allocation8 + $0x3c0] ss:$16 sps:$4 sm:$0xff]   ;;  %v5157_v19 = vld [vmem:[#allocation8 + $0x404] ss:$16 sps:$4 sm:$0xff]   ;;  %v5200_v49 = vld [vmem:[#allocation8 + $0x4e8] ss:$16 sps:$4 sm:$0xff]  }
 0x283   :  { %2649 = vmatpush1.bf16.msra.mxu0 %v5083_v6  ;;  %2813 = vmatpush1.bf16.msra.mxu1 %v5086_v7  ;;  %v5146_v6 = vld [vmem:[#allocation8 + $0x3c8] ss:$16 sps:$4 sm:$0xff]   ;;  %v5151_v7 = vld [vmem:[#allocation8 + $0x3e4] ss:$16 sps:$4 sm:$0xff]  }
 0x284   :  { %2650 = vmatprep.subr.bf16.mxu0 %v5091_v8  ;;  %2814 = vmatprep.subr.bf16.mxu1 %v5094_v9  ;;  %v5154_v8 = vld [vmem:[#allocation8 + $0x3ec] ss:$16 sps:$4 sm:$0xff]   ;;  %v1001_v9 = vadd.f32 %v978_v56, %v921_v55  ;;  %v5209_v56 = vld [vmem:[#allocation8 + $0x520] ss:$16 sps:$4 sm:$0xff]  }
 0x285   :  { %v5214_v55 = vld [vmem:[#allocation8 + $0x52c] ss:$16 sps:$4 sm:$0xff]  }
 0x287   :  { %2651 = vmatpush1.bf16.msra.mxu0 %v5089_v59  ;;  %2815 = vmatpush1.bf16.msra.mxu1 %v5092_v11  ;;  %v1004_v59 = vadd.f32 %v990_v10, %v924_v2  ;;  %v5149_v11 = vld [vmem:[#allocation8 + $0x3e0] ss:$16 sps:$4 sm:$0xff]   ;;  %v5212_v2 = vld [vmem:[#allocation8 + $0x528] ss:$16 sps:$4 sm:$0xff]   ;;  %v5217_v10 = vld [vmem:[#allocation8 + $0x544] ss:$16 sps:$4 sm:$0xff]  }
 0x288   :  { %2652 = vmatprep.subr.bf16.mxu0 %v5097_v12  ;;  %2816 = vmatprep.subr.bf16.mxu1 %v5100_v0  ;;  %v1009_v12 = vmax.f32 %v1001_v9, 0.0  ;;  %v5160_v0 = vld [vmem:[#allocation8 + $0x40c] ss:$16 sps:$4 sm:$0xff]  }
 0x289   :  { %v5226_v9 = vld [vmem:[#allocation8 + $0x56c] ss:$16 sps:$4 sm:$0xff]  }
 0x28b   :  { %2653 = vmatpush1.bf16.msra.mxu0 %v5095_v14  ;;  %2817 = vmatpush1.bf16.msra.mxu1 %v5098_v15  ;;  %v1012_v14 = vmax.f32 %v1004_v59, 0.0  ;;  %v5155_v15 = vld [vmem:[#allocation8 + $0x400] ss:$16 sps:$4 sm:$0xff]  }
 0x28c   :  { %2654 = vmatprep.subr.bf16.mxu0 %v5103_v3  ;;  %2818 = vmatprep.subr.bf16.mxu1 %v5106_v16  ;;  %v1017_v3 = vpack.c.bf16 %v1009_v12, %v1009_v12  ;;  %v5158_v16 = vld [vmem:[#allocation8 + $0x408] ss:$16 sps:$4 sm:$0xff]   ;;  %v5221_v59 = vld [vmem:[#allocation8 + $0x560] ss:$16 sps:$4 sm:$0xff]   ;;  %v866_v12 = vrot.slane %v6177_v13, %v6243_v57 }
 0x28f   :  { %2655 = vmatpush1.bf16.msra.mxu0 %v5101_v17  ;;  %2819 = vmatpush1.bf16.msra.mxu1 %v5104_v20  ;;  %v1020_v17 = vpack.c.bf16 %v1012_v14, %v1012_v14  ;;  %v5163_v20 = vld [vmem:[#allocation8 + $0x424] ss:$16 sps:$4 sm:$0xff]   ;;  %v5227_v14 = vld [vmem:[#allocation8 + $0x580] ss:$16 sps:$4 sm:$0xff]  }
 0x290   :  { %2656 = vmatprep.subr.bf16.mxu0 %v5109_v21  ;;  %2820 = vmatprep.subr.bf16.mxu1 %v5112_v22  ;;  %v5166_v21 = vld [vmem:[#allocation8 + $0x42c] ss:$16 sps:$4 sm:$0xff]   ;;  %v5161_v22 = vld [vmem:[#allocation8 + $0x420] ss:$16 sps:$4 sm:$0xff]  }
 0x293   :  { %2657 = vmatpush1.bf16.msra.mxu0 %v5107_v23  ;;  %2821 = vmatpush1.bf16.msra.mxu1 %v5110_v24  ;;  %v5164_v23 = vld [vmem:[#allocation8 + $0x428] ss:$16 sps:$4 sm:$0xff]   ;;  %v5169_v24 = vld [vmem:[#allocation8 + $0x444] ss:$16 sps:$4 sm:$0xff]  }
 0x294   :  { %2658 = vmatprep.subr.bf16.mxu0 %v5115_v26  ;;  %2822 = vmatprep.subr.bf16.mxu1 %v5118_v27  ;;  %v5172_v26 = vld [vmem:[#allocation8 + $0x44c] ss:$16 sps:$4 sm:$0xff]   ;;  %v5167_v27 = vld [vmem:[#allocation8 + $0x440] ss:$16 sps:$4 sm:$0xff]  }
 0x297   :  { %2659 = vmatpush1.bf16.msra.mxu0 %v5113_v28  ;;  %2823 = vmatpush1.bf16.msra.mxu1 %v5116_v29  ;;  %v5170_v28 = vld [vmem:[#allocation8 + $0x448] ss:$16 sps:$4 sm:$0xff]   ;;  %v5175_v29 = vld [vmem:[#allocation8 + $0x464] ss:$16 sps:$4 sm:$0xff]  }
 0x298   :  { %2660 = vmatprep.subr.bf16.mxu0 %v5121_v45  ;;  %2824 = vmatprep.subr.bf16.mxu1 %v5124_v31  ;;  %v5178_v45 = vld [vmem:[#allocation8 + $0x46c] ss:$16 sps:$4 sm:$0xff]   ;;  %v5173_v31 = vld [vmem:[#allocation8 + $0x460] ss:$16 sps:$4 sm:$0xff]  }
 0x29b   :  { %2661 = vmatpush1.bf16.msra.mxu0 %v5119_v41  ;;  %2825 = vmatpush1.bf16.msra.mxu1 %v5122_v32  ;;  %v5176_v41 = vld [vmem:[#allocation8 + $0x468] ss:$16 sps:$4 sm:$0xff]   ;;  %v5181_v32 = vld [vmem:[#allocation8 + $0x484] ss:$16 sps:$4 sm:$0xff]  }
 0x29c   :  { %2662 = vmatprep.subr.bf16.mxu0 %v5127_v4  ;;  %2826 = vmatprep.subr.bf16.mxu1 %v5130_v33  ;;  %v5184_v4 = vld [vmem:[#allocation8 + $0x48c] ss:$16 sps:$4 sm:$0xff]   ;;  %v5179_v33 = vld [vmem:[#allocation8 + $0x480] ss:$16 sps:$4 sm:$0xff]  }
 0x29f   :  { %2663 = vmatpush1.bf16.msra.mxu0 %v5125_v60  ;;  %2827 = vmatpush1.bf16.msra.mxu1 %v5128_v34  ;;  %v5182_v60 = vld [vmem:[#allocation8 + $0x488] ss:$16 sps:$4 sm:$0xff]   ;;  %v5187_v34 = vld [vmem:[#allocation8 + $0x4a4] ss:$16 sps:$4 sm:$0xff]  }
 0x2a0   :  { %2664 = vmatprep.subr.bf16.mxu0 %v5133_v36  ;;  %2828 = vmatprep.subr.bf16.mxu1 %v5136_v37  ;;  %v5190_v36 = vld [vmem:[#allocation8 + $0x4ac] ss:$16 sps:$4 sm:$0xff]   ;;  %v5185_v37 = vld [vmem:[#allocation8 + $0x4a0] ss:$16 sps:$4 sm:$0xff]  }
 0x2a3   :  { %2665 = vmatpush1.bf16.msra.mxu0 %v5131_v42  ;;  %2829 = vmatpush1.bf16.msra.mxu1 %v5134_v43  ;;  %v5196_v42 = vld [vmem:[#allocation8 + $0x4cc] ss:$16 sps:$4 sm:$0xff]   ;;  %v5191_v43 = vld [vmem:[#allocation8 + $0x4c0] ss:$16 sps:$4 sm:$0xff]  }
 0x2a4   :  { %2666 = vmatprep.subr.bf16.mxu0 %v5139_v44  ;;  %2830 = vmatprep.subr.bf16.mxu1 %v5142_v46  ;;  %v5194_v44 = vld [vmem:[#allocation8 + $0x4c8] ss:$16 sps:$4 sm:$0xff]   ;;  %v5199_v46 = vld [vmem:[#allocation8 + $0x4e4] ss:$16 sps:$4 sm:$0xff]  }
 0x2a7   :  { %2667 = vmatpush1.bf16.msra.mxu0 %v5137_v51  ;;  %2831 = vmatpush1.bf16.msra.mxu1 %v5140_v52  ;;  %v5208_v51 = vld [vmem:[#allocation8 + $0x50c] ss:$16 sps:$4 sm:$0xff]   ;;  %v5203_v52 = vld [vmem:[#allocation8 + $0x500] ss:$16 sps:$4 sm:$0xff]  }
 0x2a8   :  { %2668 = vmatprep.subr.bf16.mxu0 %v5145_v53  ;;  %2832 = vmatprep.subr.bf16.mxu1 %v5148_v54  ;;  %v5206_v53 = vld [vmem:[#allocation8 + $0x508] ss:$16 sps:$4 sm:$0xff]   ;;  %v5211_v54 = vld [vmem:[#allocation8 + $0x524] ss:$16 sps:$4 sm:$0xff]  }
 0x2ab   :  { %2669 = vmatpush1.bf16.msra.mxu0 %v5143_v5  ;;  %2833 = vmatpush1.bf16.msra.mxu1 %v5146_v6  ;;  %v5220_v5 = vld [vmem:[#allocation8 + $0x54c] ss:$16 sps:$4 sm:$0xff]   ;;  %v5215_v6 = vld [vmem:[#allocation8 + $0x540] ss:$16 sps:$4 sm:$0xff]  }
 0x2ac   :  { %2670 = vmatprep.subr.bf16.mxu0 %v5151_v7  ;;  %2834 = vmatprep.subr.bf16.mxu1 %v5154_v8  ;;  %v5218_v7 = vld [vmem:[#allocation8 + $0x548] ss:$16 sps:$4 sm:$0xff]   ;;  %v5223_v8 = vld [vmem:[#allocation8 + $0x564] ss:$16 sps:$4 sm:$0xff]  }
 0x2af   :  { %2671 = vmatpush1.bf16.msra.mxu0 %v5149_v11  ;;  %2835 = vmatpush1.bf16.msra.mxu1 %v5152_v30  ;;  %v5224_v11 = vld [vmem:[#allocation8 + $0x568] ss:$16 sps:$4 sm:$0xff]   ;;  %v5229_v30 = vld [vmem:[#allocation8 + $0x584] ss:$16 sps:$4 sm:$0xff]  }
 0x2b0   :  { %2681 = vmatprep.subr.bf16.mxu0 %v5157_v19  ;;  %2845 = vmatprep.subr.bf16.mxu1 %v5160_v0  ;;  %v5232_v19 = vld [vmem:[#allocation8 + $0x58c] ss:$16 sps:$4 sm:$0xff]   ;;  %v878_v0 = vrot.slane %v6196_v25, %v6246_v58 }
 0x2b2   :  { %2673 = vmatmul.mubr.bf16.vlgmr.msra.gmra.mrb[8].mxu0 %v1017_v3  ;;  %2837 = vmatmul.mubr.bf16.vlgmr.msra.gmra.mrb[24].mxu1 %v1017_v3  ;;  %v5235_v3 = vld [vmem:[#allocation8 + $0x5a4] ss:$16 sps:$4 sm:$0xff]  }
 0x2b3   :  { %2682 = vmatpush1.bf16.msra.mxu0 %v5155_v15  ;;  %2713 = vmatprep.mubr.bf16.mxu0 %v1020_v17  ;;  %v5230_v15 = vld [vmem:[#allocation8 + $0x588] ss:$16 sps:$4 sm:$0xff]  }
 0x2b4   :  { %2846 = vmatpush1.bf16.msra.mxu1 %v5158_v16  ;;  %2877 = vmatprep.mubr.bf16.mxu1 %v1020_v17  ;;  %v906_v16 = vrot.slane %v866_v12, %v6243_v57  ;;  %v946_v17 = vrot.slane %v6177_v13, %v6249_v61  ;;  %v5287_v12 = vld [vmem:[#allocation8 + $0x6c0] ss:$16 sps:$4 sm:$0xff]  }
 0x2b5   :  { %2683 = vmatprep.subr.bf16.mxu0 %v5163_v20  ;;  %2847 = vmatprep.subr.bf16.mxu1 %v5166_v21  ;;  %v5238_v20 = vld [vmem:[#allocation8 + $0x5ac] ss:$16 sps:$4 sm:$0xff]   ;;  %v918_v21 = vrot.slane %v878_v0, %v6243_v57  ;;  %v5295_v0 = vld [vmem:[#allocation8 + $0x6e4] ss:$16 sps:$4 sm:$0xff]  }
 0x2b7   :  { %2684 = vmatpush1.bf16.msra.mxu0 %v5161_v22  ;;  %v958_v22 = vrot.slane %v6196_v25, %v6252_v1  ;;  %v926_v13 = vmul.f32 %v918_v21, %v6286_v38  ;;  %v5242_v25 = vld [vmem:[#allocation8 + $0x5c8] ss:$16 sps:$4 sm:$0xff]   ;;  %v5256_v38 = vld [vmem:[#allocation8 + $0x60c] ss:$16 sps:$4 sm:$0xff]  }
 0x2b8   :  { %2848 = vmatpush1.bf16.msra.mxu1 %v5164_v23  ;;  %2685 = vmatprep.subr.bf16.mxu0 %v5169_v24  ;;  %v5233_v23 = vld [vmem:[#allocation8 + $0x5a0] ss:$16 sps:$4 sm:$0xff]   ;;  %v5236_v24 = vld [vmem:[#allocation8 + $0x5a8] ss:$16 sps:$4 sm:$0xff]  }
 0x2b9   :  { %2849 = vmatprep.subr.bf16.mxu1 %v5172_v26  ;;  %v5241_v26 = vld [vmem:[#allocation8 + $0x5c4] ss:$16 sps:$4 sm:$0xff]   ;;  %v5302_v21 = vld [vmem:[#allocation8 + $0x708] ss:$16 sps:$4 sm:$0xff]  }
 0x2bb   :  { %2686 = vmatpush1.bf16.msra.mxu0 %v5167_v27  ;;  %v923_v27 = vmul.f32 %v906_v16, %v6284_v18  ;;  %v5245_v18 = vld [vmem:[#allocation8 + $0x5e0] ss:$16 sps:$4 sm:$0xff]   ;;  %v5301_v16 = vld [vmem:[#allocation8 + $0x704] ss:$16 sps:$4 sm:$0xff]  }
 0x2bc   :  { %2850 = vmatpush1.bf16.msra.mxu1 %v5170_v28  ;;  %2687 = vmatprep.subr.bf16.mxu0 %v5175_v29  ;;  %v986_v28 = vrot.slane %v946_v17, %v6249_v61  ;;  %v5244_v29 = vld [vmem:[#allocation8 + $0x5cc] ss:$16 sps:$4 sm:$0xff]  }
 0x2bd   :  { %2851 = vmatprep.subr.bf16.mxu1 %v5178_v45  ;;  %v998_v45 = vrot.slane %v958_v22, %v6249_v61  ;;  %v5304_v17 = vld [vmem:[#allocation8 + $0x70c] ss:$16 sps:$4 sm:$0xff]   ;;  %v5307_v22 = vld [vmem:[#allocation8 + $0x724] ss:$16 sps:$4 sm:$0xff]  }
 0x2bf   :  { %2688 = vmatpush1.bf16.msra.mxu0 %v5173_v31  ;;  %v5239_v31 = vld [vmem:[#allocation8 + $0x5c0] ss:$16 sps:$4 sm:$0xff]  }
 0x2c0   :  { %2852 = vmatpush1.bf16.msra.mxu1 %v5176_v41  ;;  %2689 = vmatprep.subr.bf16.mxu0 %v5181_v32  ;;  %v5247_v41 = vld [vmem:[#allocation8 + $0x5e4] ss:$16 sps:$4 sm:$0xff]   ;;  %v1003_v32 = vadd.f32 %v986_v28, %v923_v27  ;;  %v5316_v28 = vld [vmem:[#allocation8 + $0x74c] ss:$16 sps:$4 sm:$0xff]  }
 0x2c1   :  { %2853 = vmatprep.subr.bf16.mxu1 %v5184_v4  ;;  %v5250_v4 = vld [vmem:[#allocation8 + $0x5ec] ss:$16 sps:$4 sm:$0xff]   ;;  %v5313_v27 = vld [vmem:[#allocation8 + $0x744] ss:$16 sps:$4 sm:$0xff]  }
 0x2c3   :  { %2690 = vmatpush1.bf16.msra.mxu0 %v5179_v33  ;;  %v1006_v33 = vadd.f32 %v998_v45, %v926_v13  ;;  %v5314_v13 = vld [vmem:[#allocation8 + $0x748] ss:$16 sps:$4 sm:$0xff]   ;;  %v5319_v45 = vld [vmem:[#allocation8 + $0x764] ss:$16 sps:$4 sm:$0xff]  }
 0x2c4   :  { %2854 = vmatpush1.bf16.msra.mxu1 %v5182_v60  ;;  %2691 = vmatprep.subr.bf16.mxu0 %v5187_v34  ;;  %v5248_v60 = vld [vmem:[#allocation8 + $0x5e8] ss:$16 sps:$4 sm:$0xff]   ;;  %v1011_v34 = vmax.f32 %v1003_v32, 0.0  ;;  %v5325_v32 = vld [vmem:[#allocation8 + $0x784] ss:$16 sps:$4 sm:$0xff]  }
 0x2c5   :  { %2855 = vmatprep.subr.bf16.mxu1 %v5190_v36  ;;  %v5253_v36 = vld [vmem:[#allocation8 + $0x604] ss:$16 sps:$4 sm:$0xff]  }
 0x2c7   :  { %2692 = vmatpush1.bf16.msra.mxu0 %v5185_v37  ;;  %v1014_v37 = vmax.f32 %v1006_v33, 0.0 }
 0x2c8   :  { %2856 = vmatpush1.bf16.msra.mxu1 %v5188_v39  ;;  %2693 = vmatprep.subr.bf16.mxu0 %v5193_v40  ;;  %v5251_v39 = vld [vmem:[#allocation8 + $0x600] ss:$16 sps:$4 sm:$0xff]   ;;  %v1019_v40 = vpack.c.bf16 %v1011_v34, %v1011_v34  ;;  %v5326_v34 = vld [vmem:[#allocation8 + $0x788] ss:$16 sps:$4 sm:$0xff]  }
 0x2c9   :  { %2857 = vmatprep.subr.bf16.mxu1 %v5196_v42  ;;  %v5254_v42 = vld [vmem:[#allocation8 + $0x608] ss:$16 sps:$4 sm:$0xff]  }
 0x2cb   :  { %2694 = vmatpush1.bf16.msra.mxu0 %v5191_v43  ;;  %v5259_v43 = vld [vmem:[#allocation8 + $0x624] ss:$16 sps:$4 sm:$0xff]  }
 0x2cc   :  { %2858 = vmatpush1.bf16.msra.mxu1 %v5194_v44  ;;  %2695 = vmatprep.subr.bf16.mxu0 %v5199_v46  ;;  %v1022_v44 = vpack.c.bf16 %v1014_v37, %v1014_v37  ;;  %v5262_v46 = vld [vmem:[#allocation8 + $0x62c] ss:$16 sps:$4 sm:$0xff]  }
 0x2cd   :  { %2859 = vmatprep.subr.bf16.mxu1 %v5202_v47  ;;  %v5257_v47 = vld [vmem:[#allocation8 + $0x620] ss:$16 sps:$4 sm:$0xff]  }
 0x2cf   :  { %2696 = vmatpush1.bf16.msra.mxu0 %v5197_v48  ;;  %v5260_v48 = vld [vmem:[#allocation8 + $0x628] ss:$16 sps:$4 sm:$0xff]  }
 0x2d0   :  { %2860 = vmatpush1.bf16.msra.mxu1 %v5200_v49  ;;  %2697 = vmatprep.subr.bf16.mxu0 %v5205_v50  ;;  %v5265_v49 = vld [vmem:[#allocation8 + $0x644] ss:$16 sps:$4 sm:$0xff]   ;;  %v5268_v50 = vld [vmem:[#allocation8 + $0x64c] ss:$16 sps:$4 sm:$0xff]  }
 0x2d1   :  { %2861 = vmatprep.subr.bf16.mxu1 %v5208_v51  ;;  %v5263_v51 = vld [vmem:[#allocation8 + $0x640] ss:$16 sps:$4 sm:$0xff]  }
 0x2d3   :  { %2698 = vmatpush1.bf16.msra.mxu0 %v5203_v52  ;;  %v5266_v52 = vld [vmem:[#allocation8 + $0x648] ss:$16 sps:$4 sm:$0xff]  }
 0x2d4   :  { %2862 = vmatpush1.bf16.msra.mxu1 %v5206_v53  ;;  %2699 = vmatprep.subr.bf16.mxu0 %v5211_v54  ;;  %v5271_v53 = vld [vmem:[#allocation8 + $0x664] ss:$16 sps:$4 sm:$0xff]   ;;  %v5274_v54 = vld [vmem:[#allocation8 + $0x66c] ss:$16 sps:$4 sm:$0xff]  }
 0x2d5   :  { %2863 = vmatprep.subr.bf16.mxu1 %v5214_v55  ;;  %v5269_v55 = vld [vmem:[#allocation8 + $0x660] ss:$16 sps:$4 sm:$0xff]  }
 0x2d7   :  { %2700 = vmatpush1.bf16.msra.mxu0 %v5209_v56  ;;  %v5272_v56 = vld [vmem:[#allocation8 + $0x668] ss:$16 sps:$4 sm:$0xff]  }
 0x2d8   :  { %2864 = vmatpush1.bf16.msra.mxu1 %v5212_v2  ;;  %2701 = vmatprep.subr.bf16.mxu0 %v5217_v10  ;;  %v5277_v2 = vld [vmem:[#allocation8 + $0x684] ss:$16 sps:$4 sm:$0xff]   ;;  %v5280_v10 = vld [vmem:[#allocation8 + $0x68c] ss:$16 sps:$4 sm:$0xff]  }
 0x2d9   :  { %2865 = vmatprep.subr.bf16.mxu1 %v5220_v5  ;;  %v5275_v5 = vld [vmem:[#allocation8 + $0x680] ss:$16 sps:$4 sm:$0xff]  }
 0x2db   :  { %2702 = vmatpush1.bf16.msra.mxu0 %v5215_v6  ;;  %v5278_v6 = vld [vmem:[#allocation8 + $0x688] ss:$16 sps:$4 sm:$0xff]  }
 0x2dc   :  { %2866 = vmatpush1.bf16.msra.mxu1 %v5218_v7  ;;  %2703 = vmatprep.subr.bf16.mxu0 %v5223_v8  ;;  %v5283_v7 = vld [vmem:[#allocation8 + $0x6a4] ss:$16 sps:$4 sm:$0xff]   ;;  %v5286_v8 = vld [vmem:[#allocation8 + $0x6ac] ss:$16 sps:$4 sm:$0xff]  }
 0x2dd   :  { %2867 = vmatprep.subr.bf16.mxu1 %v5226_v9  ;;  %v5281_v9 = vld [vmem:[#allocation8 + $0x6a0] ss:$16 sps:$4 sm:$0xff]  }
 0x2df   :  { %2704 = vmatpush1.bf16.msra.mxu0 %v5221_v59  ;;  %v5284_v59 = vld [vmem:[#allocation8 + $0x6a8] ss:$16 sps:$4 sm:$0xff]  }
 0x2e0   :  { %2868 = vmatpush1.bf16.msra.mxu1 %v5224_v11  ;;  %2705 = vmatprep.subr.bf16.mxu0 %v5229_v30  ;;  %v5289_v11 = vld [vmem:[#allocation8 + $0x6c4] ss:$16 sps:$4 sm:$0xff]   ;;  %v5292_v30 = vld [vmem:[#allocation8 + $0x6cc] ss:$16 sps:$4 sm:$0xff]  }
 0x2e1   :  { %2869 = vmatprep.subr.bf16.mxu1 %v5232_v19  ;;  %v5290_v19 = vld [vmem:[#allocation8 + $0x6c8] ss:$16 sps:$4 sm:$0xff]  }
 0x2e3   :  { %2706 = vmatpush1.bf16.msra.mxu0 %v5227_v14  ;;  %v5298_v14 = vld [vmem:[#allocation8 + $0x6ec] ss:$16 sps:$4 sm:$0xff]  }
 0x2e4   :  { %2870 = vmatpush1.bf16.msra.mxu1 %v5230_v15  ;;  %2707 = vmatprep.subr.bf16.mxu0 %v5235_v3  ;;  %v5293_v15 = vld [vmem:[#allocation8 + $0x6e0] ss:$16 sps:$4 sm:$0xff]   ;;  %v5296_v3 = vld [vmem:[#allocation8 + $0x6e8] ss:$16 sps:$4 sm:$0xff]  }
 0x2e5   :  { %2871 = vmatprep.subr.bf16.mxu1 %v5238_v20  ;;  %v5299_v20 = vld [vmem:[#allocation8 + $0x700] ss:$16 sps:$4 sm:$0xff]  }
 0x2e7   :  { %2708 = vmatpush1.bf16.msra.mxu0 %v5233_v23  ;;  %v5310_v23 = vld [vmem:[#allocation8 + $0x72c] ss:$16 sps:$4 sm:$0xff]  }
 0x2e8   :  { %2872 = vmatpush1.bf16.msra.mxu1 %v5236_v24  ;;  %2709 = vmatprep.subr.bf16.mxu0 %v5241_v26  ;;  %v5305_v24 = vld [vmem:[#allocation8 + $0x720] ss:$16 sps:$4 sm:$0xff]   ;;  %v5308_v26 = vld [vmem:[#allocation8 + $0x728] ss:$16 sps:$4 sm:$0xff]  }
 0x2e9   :  { %2873 = vmatprep.subr.bf16.mxu1 %v5244_v29  ;;  %v5311_v29 = vld [vmem:[#allocation8 + $0x740] ss:$16 sps:$4 sm:$0xff]  }
 0x2eb   :  { %2710 = vmatpush1.bf16.msra.mxu0 %v5239_v31  ;;  %v5322_v31 = vld [vmem:[#allocation8 + $0x76c] ss:$16 sps:$4 sm:$0xff]  }
 0x2ec   :  { %2874 = vmatpush1.bf16.msra.mxu1 %v5242_v25  ;;  %2711 = vmatprep.subr.bf16.mxu0 %v5247_v41  ;;  %v5317_v25 = vld [vmem:[#allocation8 + $0x760] ss:$16 sps:$4 sm:$0xff]   ;;  %v5320_v41 = vld [vmem:[#allocation8 + $0x768] ss:$16 sps:$4 sm:$0xff]  }
 0x2ed   :  { %2875 = vmatprep.subr.bf16.mxu1 %v5250_v4  ;;  %v5567_v4 = vld [vmem:[%s6551_s4 + $0x18] sm:$0x77] }
 0x2ee   :  { %v874_v33 = vrot.slane %v5567_v4, %v6243_v57  ;;  %v954_v37 = vrot.slane %v5567_v4, %v6249_v61 }
 0x2ef   :  { %2712 = vmatpush1.bf16.msra.mxu0 %v5245_v18  ;;  %v5328_v18 = vld [vmem:[#allocation8 + $0x78c] ss:$16 sps:$4 sm:$0xff]  }
 0x2f0   :  { %2876 = vmatpush1.bf16.msra.mxu1 %v5248_v60  ;;  %2722 = vmatprep.subr.bf16.mxu0 %v5253_v36  ;;  %v5323_v60 = vld [vmem:[#allocation8 + $0x780] ss:$16 sps:$4 sm:$0xff]   ;;  %v5331_v36 = vld [vmem:[#allocation8 + $0x7a4] ss:$16 sps:$4 sm:$0xff]  }
 0x2f1   :  { %2886 = vmatprep.subr.bf16.mxu1 %v5256_v38  ;;  %v914_v38 = vrot.slane %v874_v33, %v6243_v57 }
 0x2f2   :  { %2714 = vmatmul.mubr.bf16.vlgmr.msra.gmra.mrb[8].mxu0 %v1019_v40 }
 0x2f3   :  { %2878 = vmatmul.mubr.bf16.vlgmr.msra.gmra.mrb[24].mxu1 %v1019_v40  ;;  %2723 = vmatpush1.bf16.msra.mxu0 %v5251_v39  ;;  %v5334_v39 = vld [vmem:[#allocation8 + $0x7ac] ss:$16 sps:$4 sm:$0xff]   ;;  %v5329_v40 = vld [vmem:[#allocation8 + $0x7a0] ss:$16 sps:$4 sm:$0xff]  }
 0x2f4   :  { %2754 = vmatprep.mubr.bf16.mxu0 %v1022_v44  ;;  %2887 = vmatpush1.bf16.msra.mxu1 %v5254_v42  ;;  %v5332_v42 = vld [vmem:[#allocation8 + $0x7a8] ss:$16 sps:$4 sm:$0xff]  }
 0x2f5   :  { %2918 = vmatprep.mubr.bf16.mxu1 %v1022_v44  ;;  %2724 = vmatprep.subr.bf16.mxu0 %v5259_v43  ;;  %v5337_v43 = vld [vmem:[#allocation8 + $0x7c4] ss:$16 sps:$4 sm:$0xff]   ;;  %v925_v44 = vmul.f32 %v914_v38, %v6288_v35 }
 0x2f6   :  { %2888 = vmatprep.subr.bf16.mxu1 %v5262_v46  ;;  %v994_v46 = vrot.slane %v954_v37, %v6249_v61 }
 0x2f7   :  { %2725 = vmatpush1.bf16.msra.mxu0 %v5257_v47  ;;  %v5340_v47 = vld [vmem:[#allocation8 + $0x7cc] ss:$16 sps:$4 sm:$0xff]  }
 0x2f8   :  { %2889 = vmatpush1.bf16.msra.mxu1 %v5260_v48  ;;  %2726 = vmatprep.subr.bf16.mxu0 %v5265_v49  ;;  %v5335_v48 = vld [vmem:[#allocation8 + $0x7c0] ss:$16 sps:$4 sm:$0xff]   ;;  %v5338_v49 = vld [vmem:[#allocation8 + $0x7c8] ss:$16 sps:$4 sm:$0xff]  }
 0x2f9   :  { %2890 = vmatprep.subr.bf16.mxu1 %v5268_v50  ;;  %v5343_v50 = vld [vmem:[#allocation8 + $0x7e4] ss:$16 sps:$4 sm:$0xff]  }
 0x2fb   :  { %2727 = vmatpush1.bf16.msra.mxu0 %v5263_v51  ;;  %v1005_v51 = vadd.f32 %v994_v46, %v925_v44 }
 0x2fc   :  { %2891 = vmatpush1.bf16.msra.mxu1 %v5266_v52  ;;  %2728 = vmatprep.subr.bf16.mxu0 %v5271_v53  ;;  %v5346_v52 = vld [vmem:[#allocation8 + $0x7ec] ss:$16 sps:$4 sm:$0xff]   ;;  %v5341_v53 = vld [vmem:[#allocation8 + $0x7e0] ss:$16 sps:$4 sm:$0xff]  }
 0x2fd   :  { %2892 = vmatprep.subr.bf16.mxu1 %v5274_v54  ;;  %v5344_v54 = vld [vmem:[#allocation8 + $0x7e8] ss:$16 sps:$4 sm:$0xff]  }
 0x2ff   :  { %2729 = vmatpush1.bf16.msra.mxu0 %v5269_v55  ;;  %v1013_v55 = vmax.f32 %v1005_v51, 0.0  ;;  %v5379_v51 = vld [vmem:[#allocation10 + $0xa4] ss:$8 sps:$4 sm:$0xff]  }
 0x300   :  { %2893 = vmatpush1.bf16.msra.mxu1 %v5272_v56  ;;  %2730 = vmatprep.subr.bf16.mxu0 %v5277_v2  ;;  %v5347_v56 = vld [vmem:[#allocation10] ss:$8 sps:$4 sm:$0xff]   ;;  %v5349_v2 = vld [vmem:[#allocation10 + $0x4] ss:$8 sps:$4 sm:$0xff]  }
 0x301   :  { %2894 = vmatprep.subr.bf16.mxu1 %v5280_v10  ;;  %v1021_v35 = vpack.c.bf16 %v1013_v55, %v1013_v55  ;;  %v5352_v10 = vld [vmem:[#allocation10 + $0x14] ss:$8 sps:$4 sm:$0xff]   ;;  %v5385_v55 = vld [vmem:[#allocation10 + $0xc4] ss:$8 sps:$4 sm:$0xff]  }
 0x303   :  { %2731 = vmatpush1.bf16.msra.mxu0 %v5275_v5  ;;  %v5350_v5 = vld [vmem:[#allocation10 + $0x10] ss:$8 sps:$4 sm:$0xff]  }
 0x304   :  { %2895 = vmatpush1.bf16.msra.mxu1 %v5278_v6  ;;  %2732 = vmatprep.subr.bf16.mxu0 %v5283_v7  ;;  %v5355_v6 = vld [vmem:[#allocation10 + $0x24] ss:$8 sps:$4 sm:$0xff]   ;;  %v5353_v7 = vld [vmem:[#allocation10 + $0x20] ss:$8 sps:$4 sm:$0xff]  }
 0x305   :  { %2896 = vmatprep.subr.bf16.mxu1 %v5286_v8  ;;  %v5358_v8 = vld [vmem:[#allocation10 + $0x34] ss:$8 sps:$4 sm:$0xff]  }
 0x307   :  { %2733 = vmatpush1.bf16.msra.mxu0 %v5281_v9  ;;  %v5356_v9 = vld [vmem:[#allocation10 + $0x30] ss:$8 sps:$4 sm:$0xff]  }
 0x308   :  { %2897 = vmatpush1.bf16.msra.mxu1 %v5284_v59  ;;  %2734 = vmatprep.subr.bf16.mxu0 %v5289_v11  ;;  %v5361_v59 = vld [vmem:[#allocation10 + $0x44] ss:$8 sps:$4 sm:$0xff]   ;;  %v5359_v11 = vld [vmem:[#allocation10 + $0x40] ss:$8 sps:$4 sm:$0xff]  }
 0x309   :  { %2898 = vmatprep.subr.bf16.mxu1 %v5292_v30  ;;  %v5364_v30 = vld [vmem:[#allocation10 + $0x54] ss:$8 sps:$4 sm:$0xff]  }
 0x30b   :  { %2735 = vmatpush1.bf16.msra.mxu0 %v5287_v12  ;;  %v5362_v12 = vld [vmem:[#allocation10 + $0x50] ss:$8 sps:$4 sm:$0xff]  }
 0x30c   :  { %2899 = vmatpush1.bf16.msra.mxu1 %v5290_v19  ;;  %2736 = vmatprep.subr.bf16.mxu0 %v5295_v0  ;;  %v5367_v19 = vld [vmem:[#allocation10 + $0x64] ss:$8 sps:$4 sm:$0xff]   ;;  %v5365_v0 = vld [vmem:[#allocation10 + $0x60] ss:$8 sps:$4 sm:$0xff]  }
 0x30d   :  { %2900 = vmatprep.subr.bf16.mxu1 %v5298_v14  ;;  %v5370_v14 = vld [vmem:[#allocation10 + $0x74] ss:$8 sps:$4 sm:$0xff]  }
 0x30f   :  { %2737 = vmatpush1.bf16.msra.mxu0 %v5293_v15  ;;  %v5368_v15 = vld [vmem:[#allocation10 + $0x70] ss:$8 sps:$4 sm:$0xff]  }
 0x310   :  { %2901 = vmatpush1.bf16.msra.mxu1 %v5296_v3  ;;  %2738 = vmatprep.subr.bf16.mxu0 %v5301_v16  ;;  %v5373_v3 = vld [vmem:[#allocation10 + $0x84] ss:$8 sps:$4 sm:$0xff]   ;;  %v5371_v16 = vld [vmem:[#allocation10 + $0x80] ss:$8 sps:$4 sm:$0xff]  }
 0x311   :  { %2902 = vmatprep.subr.bf16.mxu1 %v5304_v17  ;;  %v6329_v17 = vld [vmem:[%s6553_s6] sm:$0x77] }
 0x313   :  { %2739 = vmatpush1.bf16.msra.mxu0 %v5299_v20  ;;  %v6334_v20 = vld [vmem:[%s6553_s6 + $0x8] sm:$0x77] }
 0x314   :  { %2903 = vmatpush1.bf16.msra.mxu1 %v5302_v21  ;;  %2740 = vmatprep.subr.bf16.mxu0 %v5307_v22  ;;  %v1286_v21 = vrot.slane %v6329_v17, %v6153_v62  ;;  %v1294_v22 = vrot.slane %v6334_v20, %v6153_v62 }
 0x315   :  { %2904 = vmatprep.subr.bf16.mxu1 %v5310_v23  ;;  %v1290_v23 = vrot.slane %v6329_v17, %v6156_v63 }
 0x317   :  { %2741 = vmatpush1.bf16.msra.mxu0 %v5305_v24  ;;  %v1306_v24 = vrot.slane %v1286_v21, %v6153_v62  ;;  %v2998_v21 = vrot.slane %v6329_v17, %v6249_v61 }
 0x318   :  { %2905 = vmatpush1.bf16.msra.mxu1 %v5308_v26  ;;  %2742 = vmatprep.subr.bf16.mxu0 %v5313_v27  ;;  %v1314_v26 = vrot.slane %v1294_v22, %v6153_v62  ;;  %v1310_v27 = vrot.slane %v1290_v23, %v6153_v62  ;;  %v3010_v22 = vrot.slane %v6334_v20, %v6252_v1 }
 0x319   :  { %2906 = vmatprep.subr.bf16.mxu1 %v5316_v28  ;;  %v1298_v28 = vrot.slane %v6334_v20, %v6156_v63 }
 0x31b   :  { %2743 = vmatpush1.bf16.msra.mxu0 %v5311_v29 }
 0x31c   :  { %2907 = vmatpush1.bf16.msra.mxu1 %v5314_v13  ;;  %2744 = vmatprep.subr.bf16.mxu0 %v5319_v45 }
 0x31d   :  { %2908 = vmatprep.subr.bf16.mxu1 %v5322_v31 }
 0x31f   :  { %2745 = vmatpush1.bf16.msra.mxu0 %v5317_v25 }
 0x320   :  { %2909 = vmatpush1.bf16.msra.mxu1 %v5320_v41  ;;  %2746 = vmatprep.subr.bf16.mxu0 %v5325_v32  ;;  %v1318_v32 = vrot.slane %v1298_v28, %v6153_v62 }
 0x321   :  { %2910 = vmatprep.subr.bf16.mxu1 %v5328_v18 }
 0x323   :  { %2747 = vmatpush1.bf16.msra.mxu0 %v5323_v60 }
 0x324   :  { %2911 = vmatpush1.bf16.msra.mxu1 %v5326_v34  ;;  %2748 = vmatprep.subr.bf16.mxu0 %v5331_v36 }
 0x325   :  { %2912 = vmatprep.subr.bf16.mxu1 %v5334_v39 }
 0x327   :  { %2749 = vmatpush1.bf16.msra.mxu0 %v5329_v40 }
 0x328   :  { %2913 = vmatpush1.bf16.msra.mxu1 %v5332_v42  ;;  %2750 = vmatprep.subr.bf16.mxu0 %v5337_v43 }
 0x329   :  { %2914 = vmatprep.subr.bf16.mxu1 %v5340_v47 }
 0x32b   :  { %2751 = vmatpush1.bf16.msra.mxu0 %v5335_v48 }
 0x32c   :  { %2915 = vmatpush1.bf16.msra.mxu1 %v5338_v49  ;;  %2752 = vmatprep.subr.bf16.mxu0 %v5343_v50  ;;  %v5374_v49 = vld [vmem:[#allocation10 + $0x90] ss:$8 sps:$4 sm:$0xff]   ;;  %v5376_v50 = vld [vmem:[#allocation10 + $0x94] ss:$8 sps:$4 sm:$0xff]  }
 0x32d   :  { %2916 = vmatprep.subr.bf16.mxu1 %v5346_v52  ;;  %v5377_v52 = vld [vmem:[#allocation10 + $0xa0] ss:$8 sps:$4 sm:$0xff]  }
 0x32f   :  { %2753 = vmatpush1.bf16.msra.mxu0 %v5341_v53  ;;  %v5380_v53 = vld [vmem:[#allocation10 + $0xb0] ss:$8 sps:$4 sm:$0xff]  }
 0x330   :  { %2917 = vmatpush1.bf16.msra.mxu1 %v5344_v54  ;;  %3447 = vmatprep.subr.bf16.mxu0 %v5349_v2  ;;  %v5382_v54 = vld [vmem:[#allocation10 + $0xb4] ss:$8 sps:$4 sm:$0xff]   ;;  %v5386_v2 = vld [vmem:[#allocation10 + $0xd0] ss:$8 sps:$4 sm:$0xff]  }
 0x332   :  { %2755 = vmatmul.mubr.bf16.vlgmr.msra.gmra.mrb[8].mxu0 %v1021_v35 }
 0x333   :  { %2919 = vmatmul.mubr.bf16.vlgmr.msra.gmra.mrb[24].mxu1 %v1021_v35  ;;  %3448 = vmatpush1.bf16.msra.mxu0 %v5347_v56  ;;  %v5383_v35 = vld [vmem:[#allocation10 + $0xc0] ss:$8 sps:$4 sm:$0xff]   ;;  %v5388_v56 = vld [vmem:[#allocation10 + $0xd4] ss:$8 sps:$4 sm:$0xff]  }
 0x334   :  { %3449 = vmatprep.subr.bf16.mxu0 %v5352_v10  ;;  %v5391_v10 = vld [vmem:[#allocation10 + $0xe4] ss:$8 sps:$4 sm:$0xff]  }
 0x337   :  { %3450 = vmatpush1.bf16.msra.mxu0 %v5350_v5  ;;  %v5389_v5 = vld [vmem:[#allocation10 + $0xe0] ss:$8 sps:$4 sm:$0xff]  }
 0x338   :  { %3451 = vmatprep.subr.bf16.mxu0 %v5355_v6  ;;  %v5394_v6 = vld [vmem:[#allocation10 + $0xf4] ss:$8 sps:$4 sm:$0xff]  }
 0x33b   :  { %3452 = vmatpush1.bf16.msra.mxu0 %v5353_v7  ;;  %v5392_v7 = vld [vmem:[#allocation10 + $0xf0] ss:$8 sps:$4 sm:$0xff]  }
 0x33c   :  { %3453 = vmatprep.subr.bf16.mxu0 %v5358_v8  ;;  %v5397_v8 = vld [vmem:[#allocation10 + $0x104] ss:$8 sps:$4 sm:$0xff]  }
 0x33f   :  { %3454 = vmatpush1.bf16.msra.mxu0 %v5356_v9 }
 0x340   :  { %3455 = vmatprep.subr.bf16.mxu0 %v5361_v59 }
 0x343   :  { %3456 = vmatpush1.bf16.msra.mxu0 %v5359_v11 }
 0x344   :  { %3457 = vmatprep.subr.bf16.mxu0 %v5364_v30 }
 0x347   :  { %3458 = vmatpush1.bf16.msra.mxu0 %v5362_v12 }
 0x348   :  { %3459 = vmatprep.subr.bf16.mxu0 %v5367_v19 }
 0x34b   :  { %3460 = vmatpush1.bf16.msra.mxu0 %v5365_v0 }
 0x34c   :  { %3461 = vmatprep.subr.bf16.mxu0 %v5370_v14  ;;  %v2962_v14 = vrot.slane %v6329_v17, %v6246_v58 }
 0x34e   :  { %v2982_v23 = vrot.slane %v2962_v14, %v6243_v57  ;;  %v2966_v14 = vrot.slane %v6334_v20, %v6243_v57 }
 0x34f   :  { %3462 = vmatpush1.bf16.msra.mxu0 %v5368_v15  ;;  %v2958_v15 = vrot.slane %v6329_v17, %v6243_v57 }
 0x350   :  { %3463 = vmatprep.subr.bf16.mxu0 %v5373_v3  ;;  %v2970_v3 = vrot.slane %v6334_v20, %v6246_v58 }
 0x353   :  { %3464 = vmatpush1.bf16.msra.mxu0 %v5371_v16  ;;  %v3002_v16 = vrot.slane %v6329_v17, %v6252_v1 }
 0x354   :  { %3465 = vmatprep.subr.bf16.mxu0 %v5376_v50  ;;  %v5403_v50 = vld [vmem:[#allocation10 + $0x124] ss:$8 sps:$4 sm:$0xff]  }
 0x355   :  { %v3022_v17 = vrot.slane %v3002_v16, %v6249_v61  ;;  %v2986_v16 = vrot.slane %v2966_v14, %v6243_v57  ;;  %v5487_v14 = vld [vmem:[#allocation13 + $0xe4] ss:$8 sps:$4 sm:$0xff]  }
 0x357   :  { %3466 = vmatpush1.bf16.msra.mxu0 %v5374_v49  ;;  %v5398_v49 = vld [vmem:[#allocation10 + $0x110] ss:$8 sps:$4 sm:$0xff]  }
 0x358   :  { %3467 = vmatprep.subr.bf16.mxu0 %v5379_v51  ;;  %v5401_v51 = vld [vmem:[#allocation10 + $0x120] ss:$8 sps:$4 sm:$0xff]  }
 0x35b   :  { %3468 = vmatpush1.bf16.msra.mxu0 %v5377_v52  ;;  %v5406_v52 = vld [vmem:[#allocation10 + $0x134] ss:$8 sps:$4 sm:$0xff]  }
 0x35c   :  { %3469 = vmatprep.subr.bf16.mxu0 %v5382_v54  ;;  %v5409_v54 = vld [vmem:[#allocation10 + $0x144] ss:$8 sps:$4 sm:$0xff]  }
 0x35f   :  { %3470 = vmatpush1.bf16.msra.mxu0 %v5380_v53  ;;  %v5404_v53 = vld [vmem:[#allocation10 + $0x130] ss:$8 sps:$4 sm:$0xff]  }
 0x360   :  { %3471 = vmatprep.subr.bf16.mxu0 %v5385_v55  ;;  %v5407_v55 = vld [vmem:[#allocation10 + $0x140] ss:$8 sps:$4 sm:$0xff]  }
 0x363   :  { %3472 = vmatpush1.bf16.msra.mxu0 %v5383_v35  ;;  %v5412_v35 = vld [vmem:[#allocation10 + $0x154] ss:$8 sps:$4 sm:$0xff]  }
 0x364   :  { %3473 = vmatprep.subr.bf16.mxu0 %v5388_v56  ;;  %v5410_v56 = vld [vmem:[#allocation10 + $0x150] ss:$8 sps:$4 sm:$0xff]  }
 0x367   :  { %3474 = vmatpush1.bf16.msra.mxu0 %v5386_v2  ;;  %v5415_v2 = vld [vmem:[#allocation10 + $0x164] ss:$8 sps:$4 sm:$0xff]  }
 0x368   :  { %3475 = vmatprep.subr.bf16.mxu0 %v5391_v10  ;;  %v5413_v10 = vld [vmem:[#allocation10 + $0x160] ss:$8 sps:$4 sm:$0xff]  }
 0x36b   :  { %3476 = vmatpush1.bf16.msra.mxu0 %v5389_v5  ;;  %v5418_v5 = vld [vmem:[#allocation10 + $0x174] ss:$8 sps:$4 sm:$0xff]  }
 0x36c   :  { %3477 = vmatprep.subr.bf16.mxu0 %v5394_v6  ;;  %v5416_v6 = vld [vmem:[#allocation10 + $0x170] ss:$8 sps:$4 sm:$0xff]  }
 0x36f   :  { %3478 = vmatpush1.bf16.msra.mxu0 %v5392_v7  ;;  %v5421_v7 = vld [vmem:[#allocation10 + $0x184] ss:$8 sps:$4 sm:$0xff]  }
 0x370   :  { %3488 = vmatprep.subr.bf16.mxu0 %v5397_v8  ;;  %v5419_v8 = vld [vmem:[#allocation10 + $0x180] ss:$8 sps:$4 sm:$0xff]  }
 0x405   :  { %v2756_v29 = vpop.f32.mrb[8].mxu0 }
 0x406   :  { %v6347_v13 = vadd.f32 %v2756_v29, %v1306_v24  ;;  %v2920_v45 = vpop.f32.mrb[24].mxu1  ;;  %v2758_v31 = vpop.f32.mrb[9].mxu0  ;;  %v2978_v24 = vrot.slane %v2958_v15, %v6243_v57  ;;  %v5431_v15 = vld [vmem:[#allocation10 + $0x1c0] ss:$8 sps:$4 sm:$0xff]  }
 0x407   :  { %v6349_v25 = vadd.f32 %v2920_v45, %v1314_v26  ;;  %v6351_v41 = vadd.f32 %v2758_v31, %v1310_v27  ;;  %v2922_v4 = vpop.f32.mrb[25].mxu1  ;;  %v2760_v33 = vpop.f32.mrb[10].mxu0  ;;  %v2990_v26 = vrot.slane %v2970_v3, %v6243_v57  ;;  %v5436_v3 = vld [vmem:[#allocation10 + $0x1d4] ss:$8 sps:$4 sm:$0xff]  }
 0x408   :  { %v2932_v18 = vmul.f32 %v6347_v13, %v6347_v13  ;;  %v2924_v60 = vpop.f32.mrb[26].mxu1  ;;  %v2761_v34 = vpop.f32.mrb[11].mxu0  ;;  %v6362_v40 = vadd.f32 %v2922_v4, %v1318_v32  ;;  %v3018_v32 = vrot.slane %v2998_v21, %v6249_v61  ;;  %v3030_v4 = vrot.slane %v3010_v22, %v6249_v61  ;;  %v5434_v22 = vld [vmem:[#allocation10 + $0x1d0] ss:$8 sps:$4 sm:$0xff]  }
 0x409   :  { %v2933_v36 = vmul.f32 %v6351_v41, %v6351_v41  ;;  %v2925_v38 = vpop.f32.mrb[27].mxu1  ;;  %v2927_v37 = vadd.f32 %v6351_v41, %v6347_v13  ;;  %v2934_v39 = vmul.f32 %v6349_v25, %v6349_v25  ;;  %v3006_v21 = vrot.slane %v6334_v20, %v6249_v61  ;;  %v5443_v20 = vld [vmem:[#allocation13] ss:$8 sps:$4 sm:$0xff]  }
 0x40a   :  { %v2935_v47 = vmul.f32 %v6362_v40, %v6362_v40 }
 0x40b   :  { %v2928_v42 = vadd.f32 %v6349_v25, %v2927_v37  ;;  %v2936_v43 = vadd.f32 %v2933_v36, %v2932_v18 }
 0x40d   :  { %v2929_v44 = vadd.f32 %v6362_v40, %v2928_v42  ;;  %v2937_v46 = vadd.f32 %v2936_v43, %v2934_v39 }
 0x40f   :  { %2930 = vadd.xlane.f32.xlu1 %v2929_v44  ;;  %v2938_v48 = vadd.f32 %v2937_v46, %v2935_v47  ;;  %v5395_v44 = vld [vmem:[#allocation10 + $0x100] ss:$8 sps:$4 sm:$0xff]   ;;  %v5400_v47 = vld [vmem:[#allocation10 + $0x114] ss:$8 sps:$4 sm:$0xff]  }
 0x413   :  { %2939 = vadd.xlane.f32.xlu1 %v2938_v48 }
 0x49c   :  { %v2931_v9 = vpop.xlane.xlu1 %2930 }
 0x49d   :  { %v2941_v59 = vmul.f32 0.001953125, %v2931_v9  ;;  %v5424_v9 = vld [vmem:[#allocation10 + $0x194] ss:$8 sps:$4 sm:$0xff]  }
 0x49f   :  { %v2943_v30 = vmul.f32 %v2941_v59, %v2941_v59  ;;  %v2945_v27 = vsub.f32 %v6347_v13, %v2941_v59  ;;  %v2947_v28 = vsub.f32 %v6349_v25, %v2941_v59  ;;  %v2946_v29 = vsub.f32 %v6351_v41, %v2941_v59 }
 0x4a0   :  { %v2940_v11 = vpop.xlane.xlu1 %2939  ;;  %v2948_v45 = vsub.f32 %v6362_v40, %v2941_v59  ;;  %v5422_v59 = vld [vmem:[#allocation10 + $0x190] ss:$8 sps:$4 sm:$0xff]  }
 0x4a1   :  { %v2942_v12 = vmul.f32 0.001953125, %v2940_v11  ;;  %v5427_v11 = vld [vmem:[#allocation10 + $0x1a4] ss:$8 sps:$4 sm:$0xff]  }
 0x4a3   :  { %v2944_v19 = vsub.f32 %v2942_v12, %v2943_v30  ;;  %v5425_v30 = vld [vmem:[#allocation10 + $0x1a0] ss:$8 sps:$4 sm:$0xff]   ;;  %v5430_v12 = vld [vmem:[#allocation10 + $0x1b4] ss:$8 sps:$4 sm:$0xff]  }
 0x4a5   :  { %v2949_v0 = vadd.f32 1e-05, %v2944_v19  ;;  %v5428_v19 = vld [vmem:[#allocation10 + $0x1b0] ss:$8 sps:$4 sm:$0xff]  }
 0x4a7   :  { %5557 = vrsqrt.f32 %v2949_v0  ;;  %v5433_v0 = vld [vmem:[#allocation10 + $0x1c4] ss:$8 sps:$4 sm:$0xff]  }
 0x4b1   :  { %v5558_v31 = vpop.eup %5557 }
 0x4b2   :  { %v2952_v33 = vmul.f32 %v5558_v31, %v2946_v29  ;;  %v2951_v18 = vmul.f32 %v5558_v31, %v2945_v27  ;;  %v2954_v60 = vmul.f32 %v5558_v31, %v2948_v45  ;;  %v6390_v34 = vmul.f32 %v5558_v31, %v2947_v28  ;;  %v5437_v27 = vld [vmem:[#allocation10 + $0x1e0] ss:$8 sps:$4 sm:$0xff]   ;;  %v5442_v28 = vld [vmem:[#allocation10 + $0x1f4] ss:$8 sps:$4 sm:$0xff]   ;;  %v5440_v45 = vld [vmem:[#allocation10 + $0x1f0] ss:$8 sps:$4 sm:$0xff]  }
 0x4b4   :  { %v2992_v36 = vmul.f32 %v2982_v23, %v2952_v33  ;;  %v2991_v13 = vmul.f32 %v2978_v24, %v2951_v18  ;;  %v2994_v38 = vmul.f32 %v2990_v26, %v2954_v60  ;;  %v5439_v23 = vld [vmem:[#allocation10 + $0x1e4] ss:$8 sps:$4 sm:$0xff]   ;;  %v2993_v24 = vmul.f32 %v2986_v16, %v6390_v34  ;;  %v5446_v33 = vld [vmem:[#allocation13 + $0x10] ss:$8 sps:$4 sm:$0xff]   ;;  %v5449_v60 = vld [vmem:[#allocation13 + $0x20] ss:$8 sps:$4 sm:$0xff]  }
 0x4b5   :  { %v3026_v26 = vrot.slane %v3006_v21, %v6249_v61  ;;  %v5451_v18 = vld [vmem:[#allocation13 + $0x24] ss:$8 sps:$4 sm:$0xff]   ;;  %v5454_v34 = vld [vmem:[#allocation13 + $0x34] ss:$8 sps:$4 sm:$0xff]   ;;  %v5488_v16 = vld [vmem:[#allocation13 + $0xf0] ss:$8 sps:$4 sm:$0xff]  }
 0x4b6   :  { %v3032_v25 = vadd.f32 %v3022_v17, %v2992_v36  ;;  %v3031_v37 = vadd.f32 %v3018_v32, %v2991_v13  ;;  %v3034_v41 = vadd.f32 %v3030_v4, %v2994_v38  ;;  %v5445_v32 = vld [vmem:[#allocation13 + $0x4] ss:$8 sps:$4 sm:$0xff]   ;;  %v5448_v4 = vld [vmem:[#allocation13 + $0x14] ss:$8 sps:$4 sm:$0xff]   ;;  %v5452_v36 = vld [vmem:[#allocation13 + $0x30] ss:$8 sps:$4 sm:$0xff]  }
 0x4b7   :  { %v3033_v29 = vadd.f32 %v3026_v26, %v2993_v24  ;;  %3803 = vmatprep.subr.bf16.mxu1 %v5445_v32  ;;  %v5457_v13 = vld [vmem:[#allocation13 + $0x44] ss:$8 sps:$4 sm:$0xff]   ;;  %v5455_v38 = vld [vmem:[#allocation13 + $0x40] ss:$8 sps:$4 sm:$0xff]  }
 0x4b8   :  { %v3036_v39 = vmax.f32 %v3032_v25, 0.0  ;;  %v3035_v40 = vmax.f32 %v3031_v37, 0.0  ;;  %v3038_v42 = vmax.f32 %v3034_v41, 0.0  ;;  %3804 = vmatpush1.bf16.msra.mxu1 %v5443_v20  ;;  %v5460_v25 = vld [vmem:[#allocation13 + $0x54] ss:$8 sps:$4 sm:$0xff]  }
 0x4b9   :  { %v3037_v31 = vmax.f32 %v3033_v29, 0.0  ;;  %3805 = vmatprep.subr.bf16.mxu1 %v5448_v4  ;;  %v5458_v37 = vld [vmem:[#allocation13 + $0x50] ss:$8 sps:$4 sm:$0xff]   ;;  %v5463_v41 = vld [vmem:[#allocation13 + $0x64] ss:$8 sps:$4 sm:$0xff]  }
 0x4ba   :  { %v3040_v43 = vpack.c.bf16 %v3036_v39, %v3036_v39  ;;  %v3039_v46 = vpack.c.bf16 %v3035_v40, %v3035_v40  ;;  %v3042_v48 = vpack.c.bf16 %v3038_v42, %v3038_v42  ;;  %v5461_v39 = vld [vmem:[#allocation13 + $0x60] ss:$8 sps:$4 sm:$0xff]   ;;  %v5466_v40 = vld [vmem:[#allocation13 + $0x74] ss:$8 sps:$4 sm:$0xff]   ;;  %v5464_v42 = vld [vmem:[#allocation13 + $0x70] ss:$8 sps:$4 sm:$0xff]  }
 0x4bb   :  { %v3041_v17 = vpack.c.bf16 %v3037_v31, %v3037_v31 }
 0x4bc   :  { %3479 = vmatprep.mubr.bf16.mxu0 %v3040_v43  ;;  %3806 = vmatpush1.bf16.msra.mxu1 %v5446_v33  ;;  %v5469_v43 = vld [vmem:[#allocation13 + $0x84] ss:$8 sps:$4 sm:$0xff]  }
 0x4bd   :  { %3480 = vmatmul.mubr.bf16.vlgmr.msra.gmra.mrb[12].mxu0 %v3039_v46  ;;  %3807 = vmatprep.subr.bf16.mxu1 %v5451_v18  ;;  %v6399_v46 = vld [vmem:[#allocation11] sm:$0x77] }
 0x4be   :  { %3489 = vmatpush1.bf16.msra.mxu0 %v5395_v44  ;;  %3520 = vmatprep.mubr.bf16.mxu0 %v3042_v48  ;;  %v5467_v44 = vld [vmem:[#allocation13 + $0x80] ss:$8 sps:$4 sm:$0xff]   ;;  %v3116_v48 = vrot.slane %v6399_v46, %v6156_v63  ;;  %v3554_v29 = vrot.slane %v6399_v46, %v6246_v58  ;;  %v3574_v31 = vrot.slane %v6399_v46, %v6252_v1 }
 0x4bf   :  { %3490 = vmatprep.subr.bf16.mxu0 %v5400_v47  ;;  %v3112_v47 = vrot.slane %v6399_v46, %v6153_v62 }
 0x4c0   :  { %3808 = vmatpush1.bf16.msra.mxu1 %v5449_v60  ;;  %v3564_v4 = vrot.slane %v3554_v29, %v6243_v57  ;;  %v5526_v29 = vld [vmem:[#allocation16 + $0xb4] ss:$8 sps:$4 sm:$0xff]  }
 0x4c1   :  { %3809 = vmatprep.subr.bf16.mxu1 %v5454_v34  ;;  %v3584_v34 = vrot.slane %v3574_v31, %v6249_v61  ;;  %v5529_v31 = vld [vmem:[#allocation16 + $0xc4] ss:$8 sps:$4 sm:$0xff]  }
 0x4c2   :  { %3491 = vmatpush1.bf16.msra.mxu0 %v5398_v49  ;;  %v3122_v49 = vrot.slane %v3112_v47, %v6153_v62  ;;  %v5496_v47 = vld [vmem:[#allocation16 + $0x14] ss:$8 sps:$4 sm:$0xff]  }
 0x4c3   :  { %3492 = vmatprep.subr.bf16.mxu0 %v5403_v50  ;;  %v3126_v50 = vrot.slane %v3116_v48, %v6153_v62  ;;  %v5494_v48 = vld [vmem:[#allocation16 + $0x10] ss:$8 sps:$4 sm:$0xff]  }
 0x4c4   :  { %3810 = vmatpush1.bf16.msra.mxu1 %v5452_v36 }
 0x4c5   :  { %3811 = vmatprep.subr.bf16.mxu1 %v5457_v13 }
 0x4c6   :  { %3493 = vmatpush1.bf16.msra.mxu0 %v5401_v51 }
 0x4c7   :  { %3494 = vmatprep.subr.bf16.mxu0 %v5406_v52 }
 0x4c8   :  { %3812 = vmatpush1.bf16.msra.mxu1 %v5455_v38 }
 0x4c9   :  { %3813 = vmatprep.subr.bf16.mxu1 %v5460_v25 }
 0x4ca   :  { %3495 = vmatpush1.bf16.msra.mxu0 %v5404_v53 }
 0x4cb   :  { %3496 = vmatprep.subr.bf16.mxu0 %v5409_v54 }
 0x4cc   :  { %3814 = vmatpush1.bf16.msra.mxu1 %v5458_v37 }
 0x4cd   :  { %3815 = vmatprep.subr.bf16.mxu1 %v5463_v41 }
 0x4ce   :  { %3497 = vmatpush1.bf16.msra.mxu0 %v5407_v55 }
 0x4cf   :  { %3498 = vmatprep.subr.bf16.mxu0 %v5412_v35 }
 0x4d0   :  { %3816 = vmatpush1.bf16.msra.mxu1 %v5461_v39 }
 0x4d1   :  { %3817 = vmatprep.subr.bf16.mxu1 %v5466_v40 }
 0x4d2   :  { %3499 = vmatpush1.bf16.msra.mxu0 %v5410_v56 }
 0x4d3   :  { %3500 = vmatprep.subr.bf16.mxu0 %v5415_v2 }
 0x4d4   :  { %3818 = vmatpush1.bf16.msra.mxu1 %v5464_v42 }
 0x4d5   :  { %3819 = vmatprep.subr.bf16.mxu1 %v5469_v43 }
 0x4d6   :  { %3501 = vmatpush1.bf16.msra.mxu0 %v5413_v10 }
 0x4d7   :  { %3502 = vmatprep.subr.bf16.mxu0 %v5418_v5 }
 0x4d8   :  { %3820 = vmatpush1.bf16.msra.mxu1 %v5467_v44  ;;  %v5491_v44 = vld [vmem:[#allocation16] ss:$8 sps:$4 sm:$0xff]  }
 0x4da   :  { %3503 = vmatpush1.bf16.msra.mxu0 %v5416_v6  ;;  %v5472_v6 = vld [vmem:[#allocation13 + $0x94] ss:$8 sps:$4 sm:$0xff]  }
 0x4db   :  { %3504 = vmatprep.subr.bf16.mxu0 %v5421_v7  ;;  %v5470_v7 = vld [vmem:[#allocation13 + $0x90] ss:$8 sps:$4 sm:$0xff]   ;;  %3821 = vmatprep.subr.bf16.mxu1 %v5472_v6  ;;  %v6427_v6 = vld [vmem:[#allocation14] sm:$0x77] }
 0x4dc   :  { %3822 = vmatpush1.bf16.msra.mxu1 %v5470_v7  ;;  %v3628_v7 = vrot.slane %v6427_v6, %v6153_v62 }
 0x4de   :  { %3505 = vmatpush1.bf16.msra.mxu0 %v5419_v8  ;;  %v5475_v8 = vld [vmem:[#allocation13 + $0xa4] ss:$8 sps:$4 sm:$0xff]  }
 0x4df   :  { %3506 = vmatprep.subr.bf16.mxu0 %v5424_v9  ;;  %v5473_v9 = vld [vmem:[#allocation13 + $0xa0] ss:$8 sps:$4 sm:$0xff]   ;;  %3823 = vmatprep.subr.bf16.mxu1 %v5475_v8  ;;  %v3632_v8 = vrot.slane %v6427_v6, %v6156_v63 }
 0x4e0   :  { %3824 = vmatpush1.bf16.msra.mxu1 %v5473_v9  ;;  %v3638_v9 = vrot.slane %v3628_v7, %v6153_v62 }
 0x4e2   :  { %3507 = vmatpush1.bf16.msra.mxu0 %v5422_v59  ;;  %v5476_v59 = vld [vmem:[#allocation13 + $0xb0] ss:$8 sps:$4 sm:$0xff]  }
 0x4e3   :  { %3508 = vmatprep.subr.bf16.mxu0 %v5427_v11  ;;  %v5478_v11 = vld [vmem:[#allocation13 + $0xb4] ss:$8 sps:$4 sm:$0xff]  }
 0x4e4   :  { %3825 = vmatprep.subr.bf16.mxu1 %v5478_v11 }
 0x4e5   :  { %3826 = vmatpush1.bf16.msra.mxu1 %v5476_v59  ;;  %v3642_v59 = vrot.slane %v3632_v8, %v6153_v62 }
 0x4e6   :  { %3509 = vmatpush1.bf16.msra.mxu0 %v5425_v30  ;;  %v5481_v30 = vld [vmem:[#allocation13 + $0xc4] ss:$8 sps:$4 sm:$0xff]  }
 0x4e7   :  { %3510 = vmatprep.subr.bf16.mxu0 %v5430_v12  ;;  %v5479_v12 = vld [vmem:[#allocation13 + $0xc0] ss:$8 sps:$4 sm:$0xff]   ;;  %3827 = vmatprep.subr.bf16.mxu1 %v5481_v30 }
 0x4e9   :  { %3828 = vmatpush1.bf16.msra.mxu1 %v5479_v12 }
 0x4ea   :  { %3511 = vmatpush1.bf16.msra.mxu0 %v5428_v19  ;;  %v5484_v19 = vld [vmem:[#allocation13 + $0xd4] ss:$8 sps:$4 sm:$0xff]  }
 0x4eb   :  { %3512 = vmatprep.subr.bf16.mxu0 %v5433_v0  ;;  %v5482_v0 = vld [vmem:[#allocation13 + $0xd0] ss:$8 sps:$4 sm:$0xff]   ;;  %3829 = vmatprep.subr.bf16.mxu1 %v5484_v19 }
 0x4ed   :  { %3830 = vmatpush1.bf16.msra.mxu1 %v5482_v0 }
 0x4ee   :  { %3513 = vmatpush1.bf16.msra.mxu0 %v5431_v15  ;;  %v5485_v15 = vld [vmem:[#allocation13 + $0xe0] ss:$8 sps:$4 sm:$0xff]   ;;  %3831 = vmatprep.subr.bf16.mxu1 %v5487_v14 }
 0x4ef   :  { %3514 = vmatprep.subr.bf16.mxu0 %v5436_v3  ;;  %v5490_v3 = vld [vmem:[#allocation13 + $0xf4] ss:$8 sps:$4 sm:$0xff]  }
 0x4f1   :  { %3832 = vmatpush1.bf16.msra.mxu1 %v5485_v15 }
 0x4f2   :  { %3515 = vmatpush1.bf16.msra.mxu0 %v5434_v22  ;;  %3833 = vmatprep.subr.bf16.mxu1 %v5490_v3 }
 0x4f3   :  { %3516 = vmatprep.subr.bf16.mxu0 %v5439_v23 }
 0x4f5   :  { %3834 = vmatpush1.bf16.msra.mxu1 %v5488_v16 }
 0x4f6   :  { %3517 = vmatpush1.bf16.msra.mxu0 %v5437_v27 }
 0x4f7   :  { %3518 = vmatprep.subr.bf16.mxu0 %v5442_v28 }
 0x4fa   :  { %3519 = vmatpush1.bf16.msra.mxu0 %v5440_v45  ;;  %v3550_v45 = vrot.slane %v6399_v46, %v6243_v57 }
 0x4fc   :  { %v3560_v33 = vrot.slane %v3550_v45, %v6243_v57  ;;  %v5524_v45 = vld [vmem:[#allocation16 + $0xb0] ss:$8 sps:$4 sm:$0xff]  }
 0x4fd   :  { %3521 = vmatmul.mubr.bf16.vlgmr.msra.gmra.mrb[12].mxu0 %v3041_v17  ;;  %v3570_v17 = vrot.slane %v6399_v46, %v6249_v61  ;;  %v5493_v46 = vld [vmem:[#allocation16 + $0x4] ss:$8 sps:$4 sm:$0xff]  }
 0x4fe   :  { %4120 = vmatprep.subr.bf16.mxu1 %v5493_v46  ;;  %v3885_v46 = vrot.slane %v6427_v6, %v6249_v61 }
 0x4ff   :  { %v3580_v13 = vrot.slane %v3570_v17, %v6249_v61  ;;  %v5527_v17 = vld [vmem:[#allocation16 + $0xc0] ss:$8 sps:$4 sm:$0xff]  }
 0x5d0   :  { %v3522_v51 = vpop.f32.mrb[12].mxu0 }
 0x5d1   :  { %v4907_v52 = vadd.f32 %v3522_v51, %v3122_v49  ;;  %v3524_v53 = vpop.f32.mrb[13].mxu0  ;;  %v5499_v49 = vld [vmem:[#allocation16 + $0x24] ss:$8 sps:$4 sm:$0xff]   ;;  %v5502_v51 = vld [vmem:[#allocation16 + $0x34] ss:$8 sps:$4 sm:$0xff]  }
 0x5d2   :  { %v4908_v54 = vadd.f32 %v3524_v53, %v3126_v50  ;;  %v3526_v55 = vpop.f32.mrb[14].mxu0  ;;  %v5497_v50 = vld [vmem:[#allocation16 + $0x20] ss:$8 sps:$4 sm:$0xff]   ;;  %v5505_v53 = vld [vmem:[#allocation16 + $0x44] ss:$8 sps:$4 sm:$0xff]  }
 0x5d3   :  { %v3527_v35 = vpop.f32.mrb[15].mxu0  ;;  %v3532_v56 = vmul.f32 %v4907_v52, %v4907_v52  ;;  %v5508_v55 = vld [vmem:[#allocation16 + $0x54] ss:$8 sps:$4 sm:$0xff]  }
 0x5d4   :  { %v3529_v2 = vadd.f32 %v4908_v54, %v4907_v52  ;;  %v3533_v10 = vmul.f32 %v4908_v54, %v4908_v54  ;;  %v5506_v35 = vld [vmem:[#allocation16 + $0x50] ss:$8 sps:$4 sm:$0xff]  }
 0x5d6   :  { %3530 = vadd.xlane.f32.xlu0 %v3529_v2  ;;  %v3534_v5 = vadd.f32 %v3533_v10, %v3532_v56  ;;  %v5511_v56 = vld [vmem:[#allocation16 + $0x64] ss:$8 sps:$4 sm:$0xff]   ;;  %v5509_v2 = vld [vmem:[#allocation16 + $0x60] ss:$8 sps:$4 sm:$0xff]   ;;  %v5514_v10 = vld [vmem:[#allocation16 + $0x74] ss:$8 sps:$4 sm:$0xff]  }
 0x5d8   :  { %3535 = vadd.xlane.f32.xlu1 %v3534_v5  ;;  %v5512_v5 = vld [vmem:[#allocation16 + $0x70] ss:$8 sps:$4 sm:$0xff]  }
 0x663   :  { %v3531_v21 = vpop.xlane.xlu0 %3530 }
 0x664   :  { %v3537_v22 = vmul.f32 0.00390625, %v3531_v21 }
 0x665   :  { %v3536_v23 = vpop.xlane.xlu1 %3535 }
 0x666   :  { %v3538_v24 = vmul.f32 0.00390625, %v3536_v23  ;;  %v3539_v26 = vmul.f32 %v3537_v22, %v3537_v22  ;;  %v3541_v20 = vsub.f32 %v4907_v52, %v3537_v22  ;;  %v3542_v32 = vsub.f32 %v4908_v54, %v3537_v22  ;;  %v5500_v52 = vld [vmem:[#allocation16 + $0x30] ss:$8 sps:$4 sm:$0xff]   ;;  %v5503_v54 = vld [vmem:[#allocation16 + $0x40] ss:$8 sps:$4 sm:$0xff]  }
 0x667   :  { %v5517_v22 = vld [vmem:[#allocation16 + $0x84] ss:$8 sps:$4 sm:$0xff]   ;;  %v5515_v23 = vld [vmem:[#allocation16 + $0x80] ss:$8 sps:$4 sm:$0xff]  }
 0x668   :  { %v3540_v27 = vsub.f32 %v3538_v24, %v3539_v26  ;;  %v5520_v24 = vld [vmem:[#allocation16 + $0x94] ss:$8 sps:$4 sm:$0xff]   ;;  %v5518_v26 = vld [vmem:[#allocation16 + $0x90] ss:$8 sps:$4 sm:$0xff]  }
 0x66a   :  { %v3543_v28 = vadd.f32 1e-05, %v3540_v27  ;;  %v5523_v27 = vld [vmem:[#allocation16 + $0xa4] ss:$8 sps:$4 sm:$0xff]  }
 0x66c   :  { %5559 = vrsqrt.f32 %v3543_v28  ;;  %v5521_v28 = vld [vmem:[#allocation16 + $0xa0] ss:$8 sps:$4 sm:$0xff]  }
 0x676   :  { %v5560_v18 = vpop.eup %5559 }
 0x677   :  { %v3546_v60 = vmul.f32 %v5560_v18, %v3542_v32  ;;  %v3545_v36 = vmul.f32 %v5560_v18, %v3541_v20  ;;  %v5530_v20 = vld [vmem:[#allocation16 + $0xd0] ss:$8 sps:$4 sm:$0xff]   ;;  %v5532_v32 = vld [vmem:[#allocation16 + $0xd4] ss:$8 sps:$4 sm:$0xff]  }
 0x678   :  { %v5538_v18 = vld [vmem:[#allocation16 + $0xf4] ss:$8 sps:$4 sm:$0xff]  }
 0x679   :  { %v3566_v38 = vmul.f32 %v3564_v4, %v3546_v60  ;;  %v3565_v25 = vmul.f32 %v3560_v33, %v3545_v36  ;;  %v5535_v4 = vld [vmem:[#allocation16 + $0xe4] ss:$8 sps:$4 sm:$0xff]   ;;  %v5533_v33 = vld [vmem:[#allocation16 + $0xe0] ss:$8 sps:$4 sm:$0xff]   ;;  %v5536_v60 = vld [vmem:[#allocation16 + $0xf0] ss:$8 sps:$4 sm:$0xff]  }
 0x67b   :  { %v3586_v37 = vadd.f32 %v3584_v34, %v3566_v38  ;;  %v3585_v41 = vadd.f32 %v3580_v13, %v3565_v25 }
 0x67d   :  { %v6419_v39 = vmax.f32 %v3586_v37, 0.0  ;;  %v6421_v40 = vmax.f32 %v3585_v41, 0.0 }
 0x67f   :  { %v3590_v42 = vpack.c.bf16 %v6419_v39, %v6419_v39  ;;  %v3589_v43 = vpack.c.bf16 %v6421_v40, %v6421_v40 }
 0x681   :  { %3835 = vmatprep.mubr.bf16.mxu1 %v3590_v42  ;;  %v3869_v42 = vrot.slane %v6427_v6, %v6246_v58 }
 0x682   :  { %3836 = vmatmul.mubr.bf16.vlgmr.msra.gmra.mrb[28].mxu1 %v3589_v43  ;;  %v3865_v43 = vrot.slane %v6427_v6, %v6243_v57 }
 0x683   :  { %4121 = vmatpush1.bf16.msra.mxu1 %v5491_v44  ;;  %v3889_v44 = vrot.slane %v6427_v6, %v6252_v1 }
 0x684   :  { %4122 = vmatprep.subr.bf16.mxu1 %v5496_v47 }
 0x687   :  { %4123 = vmatpush1.bf16.msra.mxu1 %v5494_v48 }
 0x688   :  { %4124 = vmatprep.subr.bf16.mxu1 %v5499_v49  ;;  %v3879_v49 = vrot.slane %v3869_v42, %v6243_v57 }
 0x68b   :  { %4125 = vmatpush1.bf16.msra.mxu1 %v5497_v50  ;;  %v3875_v50 = vrot.slane %v3865_v43, %v6243_v57 }
 0x68c   :  { %4126 = vmatprep.subr.bf16.mxu1 %v5502_v51 }
 0x68f   :  { %4127 = vmatpush1.bf16.msra.mxu1 %v5500_v52 }
 0x690   :  { %4128 = vmatprep.subr.bf16.mxu1 %v5505_v53 }
 0x693   :  { %4129 = vmatpush1.bf16.msra.mxu1 %v5503_v54  ;;  %v3899_v54 = vrot.slane %v3889_v44, %v6249_v61 }
 0x694   :  { %4130 = vmatprep.subr.bf16.mxu1 %v5508_v55  ;;  %v3895_v55 = vrot.slane %v3885_v46, %v6249_v61 }
 0x697   :  { %4131 = vmatpush1.bf16.msra.mxu1 %v5506_v35 }
 0x698   :  { %4132 = vmatprep.subr.bf16.mxu1 %v5511_v56 }
 0x69b   :  { %4133 = vmatpush1.bf16.msra.mxu1 %v5509_v2 }
 0x69c   :  { %4134 = vmatprep.subr.bf16.mxu1 %v5514_v10 }
 0x69f   :  { %4135 = vmatpush1.bf16.msra.mxu1 %v5512_v5 }
 0x6a0   :  { %4136 = vmatprep.subr.bf16.mxu1 %v5517_v22 }
 0x6a3   :  { %4137 = vmatpush1.bf16.msra.mxu1 %v5515_v23 }
 0x6a4   :  { %4138 = vmatprep.subr.bf16.mxu1 %v5520_v24 }
 0x6a7   :  { %4139 = vmatpush1.bf16.msra.mxu1 %v5518_v26  ;;  %v5540_v26 = vld [vmem:[%s6560_s13] sm:$0xff]  }
 0x6a8   :  { %4140 = vmatprep.subr.bf16.mxu1 %v5523_v27  ;;  %v5541_v27 = vld [vmem:[%s6560_s13 + $0x48] sm:$0xff]  }
 0x6ab   :  { %4141 = vmatpush1.bf16.msra.mxu1 %v5521_v28  ;;  %v5542_v28 = vld [vmem:[%s6560_s13 + $0x8] sm:$0xff]  }
 0x6ac   :  { %4142 = vmatprep.subr.bf16.mxu1 %v5526_v29  ;;  %v5543_v29 = vld [vmem:[%s6560_s13 + $0x50] sm:$0xff]  }
 0x6af   :  { %4143 = vmatpush1.bf16.msra.mxu1 %v5524_v45  ;;  %v5544_v45 = vld [vmem:[%s6560_s13 + $0x10] sm:$0xff]  }
 0x6b0   :  { %4144 = vmatprep.subr.bf16.mxu1 %v5529_v31  ;;  %v5545_v31 = vld [vmem:[%s6560_s13 + $0x58] sm:$0xff]  }
 0x6b3   :  { %4145 = vmatpush1.bf16.msra.mxu1 %v5527_v17  ;;  %v5546_v17 = vld [vmem:[%s6560_s13 + $0x18] sm:$0xff]  }
 0x6b4   :  { %4146 = vmatprep.subr.bf16.mxu1 %v5532_v32  ;;  %v5548_v32 = vld [vmem:[%s6560_s13 + $0x20] sm:$0xff]  }
 0x6b7   :  { %4147 = vmatpush1.bf16.msra.mxu1 %v5530_v20  ;;  %v5547_v20 = vld [vmem:[%s6560_s13 + $0x60] sm:$0xff]  }
 0x6b8   :  { %4148 = vmatprep.subr.bf16.mxu1 %v5535_v4  ;;  %v5549_v4 = vld [vmem:[%s6560_s13 + $0x68] sm:$0xff]  }
 0x6bb   :  { %4149 = vmatpush1.bf16.msra.mxu1 %v5533_v33  ;;  %v5550_v33 = vld [vmem:[%s6560_s13 + $0x28] sm:$0xff]  }
 0x6bc   :  { %4150 = vmatprep.subr.bf16.mxu1 %v5538_v18  ;;  %v5551_v18 = vld [vmem:[%s6560_s13 + $0x70] sm:$0xff]  }
 0x6bf   :  { %4151 = vmatpush1.bf16.msra.mxu1 %v5536_v60  ;;  %v5552_v60 = vld [vmem:[%s6560_s13 + $0x30] sm:$0xff]  }
 0x755   :  { %v3837_v11 = vpop.f32.mrb[28].mxu1 }
 0x756   :  { %v3838_v30 = vadd.f32 %v3837_v11, %v3638_v9  ;;  %v3839_v12 = vpop.f32.mrb[29].mxu1  ;;  %v6457_v11 = vld [vmem:[#allocation17] sm:$0x77] }
 0x757   :  { %v3840_v19 = vadd.f32 %v3839_v12, %v3642_v59  ;;  %v3841_v0 = vpop.f32.mrb[30].mxu1  ;;  %v4186_v44 = vrot.slane %v6457_v11, %v6246_v58  ;;  %v4182_v46 = vrot.slane %v6457_v11, %v6243_v57 }
 0x758   :  { %v3842_v14 = vpop.f32.mrb[31].mxu1  ;;  %v3847_v15 = vmul.f32 %v3838_v30, %v3838_v30 }
 0x759   :  { %v3844_v3 = vadd.f32 %v3840_v19, %v3838_v30  ;;  %v3848_v16 = vmul.f32 %v3840_v19, %v3840_v19 }
 0x75b   :  { %3845 = vadd.xlane.f32.xlu0 %v3844_v3  ;;  %v3849_v21 = vadd.f32 %v3848_v16, %v3847_v15 }
 0x75d   :  { %3850 = vadd.xlane.f32.xlu1 %v3849_v21 }
 0x7e8   :  { %v3846_v34 = vpop.xlane.xlu0 %3845 }
 0x7e9   :  { %v3852_v36 = vmul.f32 0.00390625, %v3846_v34  ;;  %v5553_v34 = vld [vmem:[%s6560_s13 + $0x78] sm:$0xff]  }
 0x7ea   :  { %v3851_v13 = vpop.xlane.xlu1 %3850 }
 0x7eb   :  { %v3853_v38 = vmul.f32 0.00390625, %v3851_v13  ;;  %v3854_v25 = vmul.f32 %v3852_v36, %v3852_v36  ;;  %v3856_v47 = vsub.f32 %v3838_v30, %v3852_v36  ;;  %v3857_v48 = vsub.f32 %v3840_v19, %v3852_v36  ;;  %v5554_v36 = vld [vmem:[%s6560_s13 + $0x38] sm:$0xff]  }
 0x7ec   :  { %v3945_v30 = vrot.slane %v6457_v11, %v6153_v62 }
 0x7ed   :  { %v3855_v37 = vsub.f32 %v3853_v38, %v3854_v25 }
 0x7ee   :  { %v3955_v12 = vrot.slane %v3945_v30, %v6153_v62 }
 0x7ef   :  { %v3858_v41 = vadd.f32 1e-05, %v3855_v37 }
 0x7f1   :  { %5561 = vrsqrt.f32 %v3858_v41 }
 0x7fb   :  { %v5562_v51 = vpop.eup %5561 }
 0x7fc   :  { %v3860_v52 = vmul.f32 %v5562_v51, %v3856_v47  ;;  %v3861_v53 = vmul.f32 %v5562_v51, %v3857_v48  ;;  %v4206_v47 = vrot.slane %v6457_v11, %v6252_v1  ;;  %v4202_v48 = vrot.slane %v6457_v11, %v6249_v61 }
 0x7fd   :  { %v4196_v51 = vrot.slane %v4186_v44, %v6243_v57 }
 0x7fe   :  { %v3881_v35 = vmul.f32 %v3879_v49, %v3861_v53  ;;  %v3880_v56 = vmul.f32 %v3875_v50, %v3860_v52  ;;  %v4192_v52 = vrot.slane %v4182_v46, %v6243_v57  ;;  %v4216_v58 = vrot.slane %v4206_v47, %v6249_v61 }
 0x800   :  { %v3901_v2 = vadd.f32 %v3899_v54, %v3881_v35  ;;  %v3900_v10 = vadd.f32 %v3895_v55, %v3880_v56  ;;  %v4212_v35 = vrot.slane %v4202_v48, %v6249_v61 }
 0x802   :  { %v3903_v5 = vmax.f32 %v3901_v2, 0.0  ;;  %v3902_v7 = vmax.f32 %v3900_v10, 0.0 }
 0x804   :  { %v6448_v6 = vadd.f32 %v3903_v5, %v6419_v39  ;;  %v6451_v8 = vadd.f32 %v3902_v7, %v6421_v40  ;;  %v3949_v39 = vrot.slane %v6457_v11, %v6156_v63  ;;  %v5539_v63 = vld [vmem:[%s6560_s13 + $0x40] sm:$0xff]  }
 0x805   :  { %4881 = vmatprep.subr.bf16.mxu0 %v5539_v63 }
 0x806   :  { %v3907_v9 = vpack.c.bf16 %v6448_v6, %v6448_v6  ;;  %v3906_v59 = vpack.c.bf16 %v6451_v8, %v6451_v8  ;;  %v3959_v40 = vrot.slane %v3949_v39, %v6153_v62  ;;  %4882 = vmatpush3.bf16.msra.mxu0 %v5540_v26  ;;  %v4223_v39 = vld [vmem:[%s6561_s14] sm:$0x7]  ;;  %s5842_s14 = smov [#allocation19]  }
 0x807   :  { %4883 = vmatprep.subr.bf16.mxu0 %v5541_v27  ;;  %v4414_v63 = vrot.slane %v4223_v39, %v6249_v61  ;;  %s4423_s11 = sshll.u32 %s5842_s14, 4  ;;  %s4424_s11 = int_to_ptr.vmem [resolvable:$true] %s4423_s11 }
 0x808   :  { %4152 = vmatprep.mubr.bf16.mxu1 %v3907_v9  ;;  %s5789_s2 = scalar_lea.vmem %s4424_s11, 128  ;;  %p5794_p11 = scmp.lt.s32.totalorder %s4424_s11, %s4424_s11 }
 0x809   :  { %4153 = vmatmul.mubr.bf16.vlgmr.msra.gmra.mrb[32].mxu1 %v3906_v59  ;;  %p5790_p10 = scmp.ne.s32.totalorder %s4424_s11, %s5789_s2  ;;  %p5795_p12 = scmp.lt.s32.totalorder %s5789_s2, %s5789_s2 }
 0x80a   :  { %4884 = vmatpush3.bf16.msra.mxu0 %v5542_v28 }
 0x80b   :  { %4885 = vmatprep.subr.bf16.mxu0 %v5543_v29  ;;  %p5796_p13 = por %p5795_p12, %p5794_p11 }
 0x80d   :  { %p5797_p0 = pnand %p5796_p13, %p5790_p10 }
 0x80e   :  { %4886 = vmatpush3.bf16.msra.mxu0 %v5544_v45 }
 0x80f   :  { %4887 = vmatprep.subr.bf16.mxu0 %v5545_v31 }
 0x812   :  { %4888 = vmatpush3.bf16.msra.mxu0 %v5546_v17 }
 0x813   :  { %4889 = vmatprep.subr.bf16.mxu0 %v5547_v20 }
 0x816   :  { %4890 = vmatpush3.bf16.msra.mxu0 %v5548_v32 }
 0x817   :  { %4891 = vmatprep.subr.bf16.mxu0 %v5549_v4 }
 0x81a   :  { %4892 = vmatpush3.bf16.msra.mxu0 %v5550_v33 }
 0x81b   :  { %4893 = vmatprep.subr.bf16.mxu0 %v5551_v18 }
 0x81e   :  { %4894 = vmatpush3.bf16.msra.mxu0 %v5552_v60 }
 0x81f   :  { %4895 = vmatprep.subr.bf16.mxu0 %v5553_v34 }
 0x822   :  { %4896 = vmatpush3.bf16.msra.mxu0 %v5554_v36 }
 0x8dc   :  { %v4154_v19 = vpop.f32.mrb[32].mxu1 }
 0x8dd   :  { %v4155_v0 = vadd.f32 %v4154_v19, %v3955_v12  ;;  %v4156_v14 = vpop.f32.mrb[33].mxu1 }
 0x8de   :  { %v4157_v15 = vadd.f32 %v4156_v14, %v3959_v40  ;;  %v4158_v3 = vpop.f32.mrb[34].mxu1  ;;  %v4261_v40 = vrot.slane %v4223_v39, %v6153_v62 }
 0x8df   :  { %v4159_v16 = vpop.f32.mrb[35].mxu1  ;;  %v4164_v21 = vmul.f32 %v4155_v0, %v4155_v0 }
 0x8e0   :  { %v4161_v22 = vadd.f32 %v4157_v15, %v4155_v0  ;;  %v4165_v23 = vmul.f32 %v4157_v15, %v4157_v15 }
 0x8e2   :  { %4162 = vadd.xlane.f32.xlu0 %v4161_v22  ;;  %v4166_v24 = vadd.f32 %v4165_v23, %v4164_v21  ;;  %v5568_v23 = vld [vmem:[#allocation5] sm:$0xff] }
 0x8e4   :  { %4167 = vadd.xlane.f32.xlu1 %v4166_v24 }
 0x96f   :  { %v4163_v13 = vpop.xlane.xlu0 %4162 }
 0x970   :  { %v4169_v38 = vmul.f32 0.00390625, %v4163_v13 }
 0x971   :  { %v4168_v25 = vpop.xlane.xlu1 %4167 }
 0x972   :  { %v4170_v37 = vmul.f32 0.00390625, %v4168_v25  ;;  %v4171_v41 = vmul.f32 %v4169_v38, %v4169_v38  ;;  %v4173_v49 = vsub.f32 %v4155_v0, %v4169_v38  ;;  %v4174_v50 = vsub.f32 %v4157_v15, %v4169_v38 }
 0x974   :  { %v4172_v42 = vsub.f32 %v4170_v37, %v4171_v41 }
 0x976   :  { %v4175_v43 = vadd.f32 1e-05, %v4172_v42 }
 0x978   :  { %5563 = vrsqrt.f32 %v4175_v43 }
 0x982   :  { %v5564_v53 = vpop.eup %5563 }
 0x983   :  { %v4177_v54 = vmul.f32 %v5564_v53, %v4173_v49  ;;  %v4178_v55 = vmul.f32 %v5564_v53, %v4174_v50 }
 0x985   :  { %v4198_v56 = vmul.f32 %v4196_v51, %v4178_v55  ;;  %v4197_v2 = vmul.f32 %v4192_v52, %v4177_v54 }
 0x987   :  { %v4218_v10 = vadd.f32 %v4216_v58, %v4198_v56  ;;  %v4217_v1 = vadd.f32 %v4212_v35, %v4197_v2 }
 0x989   :  { %v4220_v5 = vmax.f32 %v4218_v10, 0.0  ;;  %v4219_v7 = vmax.f32 %v4217_v1, 0.0 }
 0x98b   :  { %v4222_v9 = vadd.f32 %v4220_v5, %v6448_v6  ;;  %v4221_v59 = vadd.f32 %v4219_v7, %v6451_v8  ;;  %v4402_v6 = vrot.slane %v4223_v39, %v6243_v57  ;;  %v4405_v8 = vsub.f32 0.0, %v4223_v39 }
 0x98d   :  { %v4225_v11 = vpack.c.bf16 %v4222_v9, %v4222_v9  ;;  %v4224_v30 = vpack.c.bf16 %v4221_v59, %v4221_v59  ;;  %v4409_v22 = vrot.slane %v4405_v8, %v6249_v61 }
 0x98f   :  { %4390 = vmatprep.mubr.bf16.mxu0 %v4225_v11 }
 0x990   :  { %4391 = vmatmul.mubr.bf16.vlgmr.msra.gmra.mrb[16].mxu0 %v4224_v30 }
 0xa63   :  { %v4897_v12 = vpop.f32.mrb[16].mxu0 }
 0xa64   :  { %v4898_v19 = vpop.f32.mrb[17].mxu0 }
 0xa65   :  { %v4899_v0 = vadd.f32 %v4898_v19, %v4897_v12  ;;  %v4900_v14 = vpop.f32.mrb[18].mxu0 }
 0xa66   :  { %v4901_v15 = vpop.f32.mrb[19].mxu0 }
 0xa67   :  { %v4393_v3 = vadd.f32 %v4899_v0, %v4261_v40 }
 0xa69   :  { %5565 = vtanh.f32 %v4393_v3 }
 0xa73   :  { %v5566_v16 = vpop.eup %5565 }
 0xa74   :  { %v4403_v21 = vmul.f32 %v5566_v16, %v4402_v6 }
 0xa76   :  { %v4404_v24 = vadd.f32 %v5568_v23, %v4403_v21 }
 0xa78   :  { %v4410_v62 = vmax.f32 %v4409_v22, %v4404_v24 }
 0xa7a   :  { %v4415_v26 = vmin.f32 %v4414_v63, %v4410_v62 }
 0xa7c   :  { %4416 = vst.msk [vmem:[#allocation19] sm:$0xff] %vm290_vm1, %v4415_v26 }
 0xa7d   :  { %5800 = shalt.err (!%p5797_p0)
}
 0xa7e   :  { %s5801_s12 = scalar_lea.hbm %s6562_s15, 128 }
 0xa7f   :  { %p5802_p1 = scmp.ne.s32.totalorder %s6562_s15, %s5801_s12  ;;  %p5805_p2 = scmp.lt.u32.totalorder %s5801_s12, %s6562_s15 }
 0xa81   :  { %p5807_p3 = pnand %p5805_p2, %p5802_p1 }
 0xa83   :  { %5810 = shalt.err (!%p5807_p3)
}
 0xa84   :  { %4426 = dma.vmem_to_hbm [thread:$0]  %s4424_s11, 128, %s6562_s15, [#allocation4]  }
 0xa85   :  { %5823 = dma.done.wait [#allocation4], 128  }
 0xa86   :  { %5824 = vsyncadd [#allocation4], 4294967168 }
 0xa87   :  { %4430 = vsyncpa [#allocation3], 1 }
 0xa88   :  { %4431 = vsyncpa [#allocation6], 1 }
 0xa89   :  { %4432 = vsyncpa [#allocation9], 1 }
 0xa8a   :  { %4433 = vsyncpa [#allocation12], 1 }
 0xa8b   :  { %4434 = vsyncpa [#allocation15], 1 }
 0xa8c   :  { %4435 = vsyncpa [#allocation18], 1 }
 0xa8d   :  { %4436 = vsyncpa [#allocation4], 1 }

</bundles_post_ra>
